<compile_context>
chip_gen: v5e
topology: v5e:2x2
jax: 0.10.0
libtpu: 0.0.40
codegen_flags: <defaults>
</compile_context>

<pallas_src>
import functools
import math

import numpy as np

import jax
import jax.numpy as jnp
from jax import lax
from jax.experimental import pallas as pl
from jax.experimental.pallas import tpu as pltpu


# ----------------------------- configuration -----------------------------
B = 2                  # batch
S = 64                 # visual sequence length
SE = 16                # text (encoder) sequence length
QUERY_DIM = 128        # query_dim
ADDED_KV_DIM = 64      # added_kv_proj_dim
HEADS = 4
DIM_HEAD = 32
INNER_DIM = HEADS * DIM_HEAD      # 128
OUT_DIM = QUERY_DIM               # out_dim defaults to query_dim
OUT_CONTEXT_DIM = QUERY_DIM       # out_context_dim defaults to query_dim
EPS = 1e-5


# ----------------------------- fused Pallas kernel -----------------------------
def _mochi_fused_kernel(vl_ref,                      # (B,) int32 valid text lengths (SMEM, prefetched)
                        x_ref, e_ref,                # (1,S,QD) f32, (1,SE,AKD) f32
                        wqkv_x_ref, wqkv_e_ref,      # (QD,3I) bf16, (AKD,3I) bf16
                        bqkv_e_ref,                  # (1,3I) f32
                        normw_ref,                   # (4, I) f32: q*scale / k / added_q*scale / added_k
                        avg_ref,                     # (I, I) bf16 block-diag per-head averaging matrix
                        wout_ref, bout_ref,          # (I, OUT_DIM) bf16, (1, OUT_DIM) f32
                        waddout_ref, baddout_ref,    # (I, OUT_CTX)  bf16, (1, OUT_CTX)  f32
                        hs_out_ref, ehs_out_ref,     # (1,S,OUT_DIM), (1,SE,OUT_CTX)
                        qkv_vmem, attn_vmem,         # VMEM scratch: (T,3I) bf16, (T,I) f32
                        *, heads, dim_head, eps, s_vis, s_txt):
    inner = heads * dim_head
    T = s_vis + s_txt

    b = pl.program_id(0)
    valid = vl_ref[b]                                 # scalar int32 (prefix-mask length)

    x = x_ref[0].astype(jnp.bfloat16)                 # (S, QD)
    e = e_ref[0].astype(jnp.bfloat16)                 # (SE, AKD)

    # ---- fused QKV projections: bf16 operands, f32 accumulation ----
    qkv_x = jnp.dot(x, wqkv_x_ref[...], preferred_element_type=jnp.float32)            # (S, 3I) f32
    qkv_e = (jnp.dot(e, wqkv_e_ref[...], preferred_element_type=jnp.float32)
             + bqkv_e_ref[...])                                                        # (SE, 3I) f32

    avg = avg_ref[...]                                 # (I, I) bf16, constant across grid steps
    nw = normw_ref[...]                                # (4, I) f32 (scale folded into rows 0 and 2)

    def head_rmsnorm(t, w_row):
        # per-head mean(x^2), broadcast over the head's lanes via block-diag averaging matmul
        ms = jnp.dot((t * t).astype(jnp.bfloat16), avg, preferred_element_type=jnp.float32)
        return t * lax.rsqrt(ms + eps) * w_row

    # ---- write (normalized) Q/K and V into the shared bf16 QKV scratch (no concats) ----
    qkv_vmem[0:s_vis, 0:inner]             = head_rmsnorm(qkv_x[:, 0:inner],         nw[0:1, :]).astype(jnp.bfloat16)
    qkv_vmem[0:s_vis, inner:2 * inner]     = head_rmsnorm(qkv_x[:, inner:2 * inner], nw[1:2, :]).astype(jnp.bfloat16)
    qkv_vmem[0:s_vis, 2 * inner:3 * inner] = qkv_x[:, 2 * inner:3 * inner].astype(jnp.bfloat16)
    qkv_vmem[s_vis:T, 0:inner]             = head_rmsnorm(qkv_e[:, 0:inner],         nw[2:3, :]).astype(jnp.bfloat16)
    qkv_vmem[s_vis:T, inner:2 * inner]     = head_rmsnorm(qkv_e[:, inner:2 * inner], nw[3:4, :]).astype(jnp.bfloat16)
    qkv_vmem[s_vis:T, 2 * inner:3 * inner] = qkv_e[:, 2 * inner:3 * inner].astype(jnp.bfloat16)

    # TODO(synk): apply image_rotary_emb (RoPE) to q/k here if/when needed.

    # ---- (1, T) additive key-mask bias built from the prefetched scalar (no mask DMAs) ----
    limit = s_vis + valid
    kbias = jnp.where(lax.broadcasted_iota(jnp.int32, (1, T), 1) < limit,
                      0.0, -1e30)                                                       # (1, T) f32

    # ---- attention: head loop fully unrolled (heads is small & static) ----
    for h in range(heads):
        lo = h * dim_head
        qh = qkv_vmem[:, lo:lo + dim_head]                              # (T, Dh) bf16 (scale pre-folded)
        kh = qkv_vmem[:, inner + lo:inner + lo + dim_head]              # (T, Dh) bf16
        vh = qkv_vmem[:, 2 * inner + lo:2 * inner + lo + dim_head]      # (T, Dh) bf16
        scores = lax.dot_general(qh, kh, (((1,), (1,)), ((), ())),
                                 preferred_element_type=jnp.float32)    # (T, T) f32
        scores = scores + kbias
        m = jnp.max(scores, axis=-1, keepdims=True)
        p = jnp.exp(scores - m)
        denom = jnp.sum(p, axis=-1, keepdims=True)
        oh = jnp.dot(p.astype(jnp.bfloat16), vh, preferred_element_type=jnp.float32)
        oh = oh * pl.reciprocal(denom, approx=True)                     # EUP slot
        attn_vmem[:, lo:lo + dim_head] = oh

    # ---- fused output projections (bf16 operands, f32 accumulation) ----
    attn_vis = attn_vmem[0:s_vis, :].astype(jnp.bfloat16)
    hs = jnp.dot(attn_vis, wout_ref[...], preferred_element_type=jnp.float32) + bout_ref[...]
    hs_out_ref[0] = hs.astype(hs_out_ref.dtype)

    # zero padded text-query rows (matches torch gather/pad placement for prefix masks)
    qmask = (lax.broadcasted_iota(jnp.int32, (s_txt, 1), 0) < valid).astype(jnp.float32)
    attn_txt = (attn_vmem[s_vis:T, :] * qmask).astype(jnp.bfloat16)
    ehs = (jnp.dot(attn_txt, waddout_ref[...], preferred_element_type=jnp.float32)
           + baddout_ref[...])
    ehs_out_ref[0] = ehs.astype(ehs_out_ref.dtype)


# ----------------------------- parameters -----------------------------
def init_params(key):
    ks = jax.random.split(key, 20)

    def lin_w(k, fan_in, fan_out):
        return (jax.random.normal(k, (fan_in, fan_out), jnp.float32)
                / math.sqrt(fan_in))

    def lin_b(k, fan_out):
        return 0.02 * jax.random.normal(k, (1, fan_out), jnp.float32)

    def norm_w(k, d):
        return 1.0 + 0.1 * jax.random.normal(k, (1, d), jnp.float32)

    return {
        "to_q_w": lin_w(ks[0], QUERY_DIM, INNER_DIM),        # bias=False
        "to_k_w": lin_w(ks[1], QUERY_DIM, INNER_DIM),
        "to_v_w": lin_w(ks[2], QUERY_DIM, INNER_DIM),
        "add_q_w": lin_w(ks[3], ADDED_KV_DIM, INNER_DIM),
        "add_q_b": lin_b(ks[4], INNER_DIM),
        "add_k_w": lin_w(ks[5], ADDED_KV_DIM, INNER_DIM),
        "add_k_b": lin_b(ks[6], INNER_DIM),
        "add_v_w": lin_w(ks[7], ADDED_KV_DIM, INNER_DIM),
        "add_v_b": lin_b(ks[8], INNER_DIM),
        "to_out_w": lin_w(ks[9], INNER_DIM, OUT_DIM),
        "to_out_b": lin_b(ks[10], OUT_DIM),
        "to_add_out_w": lin_w(ks[11], INNER_DIM, OUT_CONTEXT_DIM),
        "to_add_out_b": lin_b(ks[12], OUT_CONTEXT_DIM),
        "norm_q_w": norm_w(ks[13], DIM_HEAD),
        "norm_k_w": norm_w(ks[14], DIM_HEAD),
        "norm_aq_w": norm_w(ks[15], DIM_HEAD),
        "norm_ak_w": norm_w(ks[16], DIM_HEAD),
    }


def pack_params(p, heads=HEADS, dim_head=DIM_HEAD):
    """One-time (init-time) weight packing: fused QKV slabs in bf16, head-tiled norm
    weights with the 1/sqrt(Dh) attention scale folded into the q-side rows, and the
    block-diagonal per-head averaging matrix used by the fused RMSNorm."""
    scale = 1.0 / math.sqrt(dim_head)
    inner = heads * dim_head

    wqkv_x = jnp.concatenate([p["to_q_w"], p["to_k_w"], p["to_v_w"]], axis=1).astype(jnp.bfloat16)
    wqkv_e = jnp.concatenate([p["add_q_w"], p["add_k_w"], p["add_v_w"]], axis=1).astype(jnp.bfloat16)
    bqkv_e = jnp.concatenate([p["add_q_b"], p["add_k_b"], p["add_v_b"]], axis=1)          # f32

    normw = jnp.concatenate([jnp.tile(p["norm_q_w"] * scale, (1, heads)),
                             jnp.tile(p["norm_k_w"], (1, heads)),
                             jnp.tile(p["norm_aq_w"] * scale, (1, heads)),
                             jnp.tile(p["norm_ak_w"], (1, heads))], axis=0)               # (4, I) f32

    row_h = np.arange(inner)[:, None] // dim_head
    col_h = np.arange(inner)[None, :] // dim_head
    avg = jnp.asarray((row_h == col_h).astype(np.float32) / dim_head).astype(jnp.bfloat16)  # (I, I)

    return {
        "wqkv_x": wqkv_x, "wqkv_e": wqkv_e, "bqkv_e": bqkv_e,
        "normw": normw, "avg": avg,
        "wout": p["to_out_w"].astype(jnp.bfloat16), "bout": p["to_out_b"],
        "waddout": p["to_add_out_w"].astype(jnp.bfloat16), "baddout": p["to_add_out_b"],
    }


# ----------------------------- Pallas forward (single fused pallas_call) -----------------------------
def mochi_attention_forward(packed, hidden_states, encoder_hidden_states, attention_mask):
    Bn, Sn, _ = hidden_states.shape
    Sen = encoder_hidden_states.shape[1]
    H, Dh = HEADS, DIM_HEAD
    inner = H * Dh
    T = Sn + Sen

    # Prefix-style text mask -> per-batch valid length (scalar prefetch, SMEM).
    valid_lens = jnp.sum(attention_mask.astype(jnp.int32), axis=1)                        # (B,)

    kernel = functools.partial(_mochi_fused_kernel, heads=H, dim_head=Dh, eps=EPS,
                               s_vis=Sn, s_txt=Sen)

    grid_spec = pltpu.PrefetchScalarGridSpec(
        num_scalar_prefetch=1,
        grid=(Bn,),
        in_specs=[
            pl.BlockSpec((1, Sn, QUERY_DIM), lambda b, vl: (b, 0, 0)),
            pl.BlockSpec((1, Sen, ADDED_KV_DIM), lambda b, vl: (b, 0, 0)),
            pl.BlockSpec((QUERY_DIM, 3 * inner), lambda b, vl: (0, 0)),
            pl.BlockSpec((ADDED_KV_DIM, 3 * inner), lambda b, vl: (0, 0)),
            pl.BlockSpec((1, 3 * inner), lambda b, vl: (0, 0)),
            pl.BlockSpec((4, inner), lambda b, vl: (0, 0)),
            pl.BlockSpec((inner, inner), lambda b, vl: (0, 0)),
            pl.BlockSpec((inner, OUT_DIM), lambda b, vl: (0, 0)),
            pl.BlockSpec((1, OUT_DIM), lambda b, vl: (0, 0)),
            pl.BlockSpec((inner, OUT_CONTEXT_DIM), lambda b, vl: (0, 0)),
            pl.BlockSpec((1, OUT_CONTEXT_DIM), lambda b, vl: (0, 0)),
        ],
        out_specs=[
            pl.BlockSpec((1, Sn, OUT_DIM), lambda b, vl: (b, 0, 0)),
            pl.BlockSpec((1, Sen, OUT_CONTEXT_DIM), lambda b, vl: (b, 0, 0)),
        ],
        scratch_shapes=[
            pltpu.VMEM((T, 3 * inner), jnp.bfloat16),   # fused (normalized) QKV slab
            pltpu.VMEM((T, inner), jnp.float32),        # per-head attention outputs
        ],
    )

    # Advisory cost estimate so XLA can overlap this launch/DMA-bound custom call.
    flops_per_batch = (
        2 * Sn * QUERY_DIM * 3 * inner
        + 2 * Sen * ADDED_KV_DIM * 3 * inner
        + 2 * 2 * (Sn + Sen) * inner * inner            # q/k RMSNorm averaging matmuls
        + 2 * 2 * H * T * T * Dh                        # scores + PV
        + 2 * Sn * inner * OUT_DIM
        + 2 * Sen * inner * OUT_CONTEXT_DIM)
    bytes_accessed = int(
        hidden_states.size * 4 + encoder_hidden_states.size * 4
        + (packed["wqkv_x"].size + packed["wqkv_e"].size + packed["avg"].size
           + packed["wout"].size + packed["waddout"].size) * 2
        + (packed["bqkv_e"].size + packed["normw"].size
           + packed["bout"].size + packed["baddout"].size) * 4
        + Bn * (Sn * OUT_DIM + Sen * OUT_CONTEXT_DIM) * 4)
    cost = pl.CostEstimate(flops=Bn * flops_per_batch,
                           transcendentals=Bn * H * T * T,
                           bytes_accessed=bytes_accessed)

    hs_out, ehs_out = pl.pallas_call(
        kernel,
        grid_spec=grid_spec,
        out_shape=(jax.ShapeDtypeStruct((Bn, Sn, OUT_DIM), hidden_states.dtype),
                   jax.ShapeDtypeStruct((Bn, Sen, OUT_CONTEXT_DIM), hidden_states.dtype)),
        compiler_params=pltpu.CompilerParams(dimension_semantics=("parallel",)),
        cost_estimate=cost,
    )(valid_lens, hidden_states, encoder_hidden_states,
      packed["wqkv_x"], packed["wqkv_e"], packed["bqkv_e"],
      packed["normw"], packed["avg"],
      packed["wout"], packed["bout"], packed["waddout"], packed["baddout"])

    return hs_out, ehs_out


# ------------------------ pure-JAX reference (torch semantics, f32) ------------------------
def reference_forward(p, hs, ehs, attention_mask):
    prec = lax.Precision.HIGHEST

    def linear(x, w, b=None):
        y = jnp.einsum("...k,kn->...n", x, w, precision=prec)
        return y if b is None else y + b

    def rmsnorm(x, w):
        xf = x.astype(jnp.float32)
        var = jnp.mean(xf * xf, axis=-1, keepdims=True)
        return (xf * lax.rsqrt(var + EPS) * w).astype(x.dtype)

    Bn, Sn, _ = hs.shape
    Sen = ehs.shape[1]
    H, Dh = HEADS, DIM_HEAD
    T = Sn + Sen

    q = rmsnorm(linear(hs, p["to_q_w"]).reshape(Bn, Sn, H, Dh), p["norm_q_w"])
    k = rmsnorm(linear(hs, p["to_k_w"]).reshape(Bn, Sn, H, Dh), p["norm_k_w"])
    v = linear(hs, p["to_v_w"]).reshape(Bn, Sn, H, Dh)
    eq = rmsnorm(linear(ehs, p["add_q_w"], p["add_q_b"]).reshape(Bn, Sen, H, Dh), p["norm_aq_w"])
    ek = rmsnorm(linear(ehs, p["add_k_w"], p["add_k_b"]).reshape(Bn, Sen, H, Dh), p["norm_ak_w"])
    ev = linear(ehs, p["add_v_w"], p["add_v_b"]).reshape(Bn, Sen, H, Dh)

    tr = lambda t: jnp.transpose(t, (0, 2, 1, 3))   # (B, H, L, Dh)
    q, k, v, eq, ek, ev = map(tr, (q, k, v, eq, ek, ev))

    scale = 1.0 / math.sqrt(Dh)
    mask_np = np.asarray(attention_mask)
    outs = []
    for b in range(Bn):
        idx = np.nonzero(mask_np[b])[0]
        vq = jnp.concatenate([q[b], eq[b][:, idx]], axis=1)
        vk = jnp.concatenate([k[b], ek[b][:, idx]], axis=1)
        vv = jnp.concatenate([v[b], ev[b][:, idx]], axis=1)
        sc = jnp.einsum("hqd,hkd->hqk", vq, vk, precision=prec) * scale
        pr = jax.nn.softmax(sc, axis=-1)
        o = jnp.einsum("hqk,hkd->hqd", pr, vv, precision=prec)
        pad = T - o.shape[1]
        o = jnp.pad(o, ((0, 0), (0, pad), (0, 0)))
        outs.append(o)
    out = jnp.stack(outs)                                   # (B, H, T, Dh)
    out = jnp.transpose(out, (0, 2, 1, 3)).reshape(Bn, T, H * Dh)
    hso, eho = out[:, :Sn], out[:, Sn:]
    hso = linear(hso, p["to_out_w"], p["to_out_b"])
    eho = linear(eho, p["to_add_out_w"], p["to_add_out_b"])
    return hso, eho


# ----------------------------- main -----------------------------
if __name__ == "__main__":
    key = jax.random.PRNGKey(0)
    k_param, k_hs, k_ehs = jax.random.split(key, 3)

    params = init_params(k_param)
    packed = pack_params(params)          # one-time packing, NOT in the per-call path

    hidden_states = jax.random.normal(k_hs, (B, S, QUERY_DIM), jnp.float32)
    encoder_hidden_states = jax.random.normal(k_ehs, (B, SE, ADDED_KV_DIM), jnp.float32)
    # prefix-style text masks (typical Mochi usage): batch 0 has 12 valid tokens, batch 1 all 16
    valid_lens = jnp.array([12, 16], dtype=jnp.int32)
    attention_mask = (jnp.arange(SE)[None, :] < valid_lens[:, None])

    fwd = jax.jit(mochi_attention_forward)
    hs_out, ehs_out = fwd(packed, hidden_states, encoder_hidden_states, attention_mask)
    hs_out = jax.block_until_ready(hs_out)
    ehs_out = jax.block_until_ready(ehs_out)

    # Correctness check against a pure-JAX f32 reference with exact torch-processor semantics.
    # Tolerance widened to 2e-2 (from the f32 kernel's 1e-2) because MXU operands are bf16
    # (f32 accumulation) per the perf guidance; softmax math stays f32.
    ref_hs, ref_ehs = reference_forward(
        params, hidden_states, encoder_hidden_states, attention_mask)
    np.testing.assert_allclose(np.asarray(hs_out), np.asarray(ref_hs),
                               rtol=2e-2, atol=2e-2)
    np.testing.assert_allclose(np.asarray(ehs_out), np.asarray(ref_ehs),
                               rtol=2e-2, atol=2e-2)

    print("KERNEL_OK")
</pallas_src>

<mosaic_0001>
module attributes {stable_mosaic.version = 11 : i64} {
  func.func @_mochi_fused_kernel(%arg0: i32, %arg1: memref<2xi32, #tpu.memory_space<smem>>, %arg2: memref<1x64x128xf32, #tpu.memory_space<vmem>>, %arg3: memref<1x16x64xf32, #tpu.memory_space<vmem>>, %arg4: memref<128x384xbf16, #tpu.memory_space<vmem>>, %arg5: memref<64x384xbf16, #tpu.memory_space<vmem>>, %arg6: memref<1x384xf32, #tpu.memory_space<vmem>>, %arg7: memref<4x128xf32, #tpu.memory_space<vmem>>, %arg8: memref<128x128xbf16, #tpu.memory_space<vmem>>, %arg9: memref<128x128xbf16, #tpu.memory_space<vmem>>, %arg10: memref<1x128xf32, #tpu.memory_space<vmem>>, %arg11: memref<128x128xbf16, #tpu.memory_space<vmem>>, %arg12: memref<1x128xf32, #tpu.memory_space<vmem>>, %arg13: memref<1x64x128xf32, #tpu.memory_space<vmem>>, %arg14: memref<1x16x128xf32, #tpu.memory_space<vmem>>, %arg15: memref<80x384xbf16, #tpu.memory_space<vmem>>, %arg16: memref<80x128xf32, #tpu.memory_space<vmem>>) attributes {dimension_semantics = [#tpu.dimension_semantics<parallel>], iteration_bounds = array<i64: 2>, scalar_prefetch = 1 : i64, scratch_operands = 2 : i64, tpu.core_type = #tpu.core_type<tc>, window_params = [{transform_indices = @transform_0, window_bounds = array<i64: 1, 64, 128>}, {transform_indices = @transform_1, window_bounds = array<i64: 1, 16, 64>}, {pipeline_mode = #tpu.pipeline_mode<synchronous>, transform_indices = @transform_2, window_bounds = array<i64: 128, 384>}, {pipeline_mode = #tpu.pipeline_mode<synchronous>, transform_indices = @transform_3, window_bounds = array<i64: 64, 384>}, {pipeline_mode = #tpu.pipeline_mode<synchronous>, transform_indices = @transform_4, window_bounds = array<i64: 1, 384>}, {pipeline_mode = #tpu.pipeline_mode<synchronous>, transform_indices = @transform_5, window_bounds = array<i64: 4, 128>}, {pipeline_mode = #tpu.pipeline_mode<synchronous>, transform_indices = @transform_6, window_bounds = array<i64: 128, 128>}, {pipeline_mode = #tpu.pipeline_mode<synchronous>, transform_indices = @transform_7, window_bounds = array<i64: 128, 128>}, {pipeline_mode = #tpu.pipeline_mode<synchronous>, transform_indices = @transform_8, window_bounds = array<i64: 1, 128>}, {pipeline_mode = #tpu.pipeline_mode<synchronous>, transform_indices = @transform_9, window_bounds = array<i64: 128, 128>}, {pipeline_mode = #tpu.pipeline_mode<synchronous>, transform_indices = @transform_10, window_bounds = array<i64: 1, 128>}, {transform_indices = @transform_11, window_bounds = array<i64: 1, 64, 128>}, {transform_indices = @transform_12, window_bounds = array<i64: 1, 16, 128>}]} {
    %0 = arith.index_cast %arg0 : i32 to index
    %1 = memref.load %arg1[%0] : memref<2xi32, #tpu.memory_space<smem>>
    %c0 = arith.constant 0 : index
    %c0_0 = arith.constant 0 : index
    %c0_1 = arith.constant 0 : index
    %2 = vector.load %arg2[%c0, %c0_0, %c0_1] : memref<1x64x128xf32, #tpu.memory_space<vmem>>, vector<1x64x128xf32>
    %3 = vector.shape_cast %2 : vector<1x64x128xf32> to vector<64x128xf32>
    %4 = arith.truncf %3 : vector<64x128xf32> to vector<64x128xbf16>
    %c0_2 = arith.constant 0 : index
    %c0_3 = arith.constant 0 : index
    %c0_4 = arith.constant 0 : index
    %5 = vector.load %arg3[%c0_2, %c0_3, %c0_4] : memref<1x16x64xf32, #tpu.memory_space<vmem>>, vector<1x16x64xf32>
    %6 = vector.shape_cast %5 : vector<1x16x64xf32> to vector<16x64xf32>
    %7 = arith.truncf %6 : vector<16x64xf32> to vector<16x64xbf16>
    %c0_5 = arith.constant 0 : index
    %c0_6 = arith.constant 0 : index
    %8 = vector.load %arg4[%c0_5, %c0_6] : memref<128x384xbf16, #tpu.memory_space<vmem>>, vector<128x384xbf16>
    %cst = arith.constant dense<0.000000e+00> : vector<64x384xf32>
    %9 = tpu.matmul %4, %8, %cst {dimension_numbers = #tpu.dot_dimension_numbers<[1], [0], [0], [1], [0, 0, 1, 1], [], []>} : vector<64x128xbf16>, vector<128x384xbf16>, vector<64x384xf32> -> vector<64x384xf32>
    %c0_7 = arith.constant 0 : index
    %c0_8 = arith.constant 0 : index
    %10 = vector.load %arg5[%c0_7, %c0_8] : memref<64x384xbf16, #tpu.memory_space<vmem>>, vector<64x384xbf16>
    %cst_9 = arith.constant dense<0.000000e+00> : vector<16x384xf32>
    %11 = tpu.matmul %7, %10, %cst_9 {dimension_numbers = #tpu.dot_dimension_numbers<[1], [0], [0], [1], [0, 0, 1, 1], [], []>} : vector<16x64xbf16>, vector<64x384xbf16>, vector<16x384xf32> -> vector<16x384xf32>
    %c0_10 = arith.constant 0 : index
    %c0_11 = arith.constant 0 : index
    %12 = vector.load %arg6[%c0_10, %c0_11] : memref<1x384xf32, #tpu.memory_space<vmem>>, vector<1x384xf32>
    %13 = vector.broadcast %12 : vector<1x384xf32> to vector<16x384xf32>
    %14 = arith.addf %11, %13 : vector<16x384xf32>
    %c0_12 = arith.constant 0 : index
    %c0_13 = arith.constant 0 : index
    %15 = vector.load %arg8[%c0_12, %c0_13] : memref<128x128xbf16, #tpu.memory_space<vmem>>, vector<128x128xbf16>
    %c0_14 = arith.constant 0 : index
    %c0_15 = arith.constant 0 : index
    %16 = vector.load %arg7[%c0_14, %c0_15] : memref<4x128xf32, #tpu.memory_space<vmem>>, vector<4x128xf32>
    %17 = vector.extract_strided_slice %9 {offsets = [0, 0], sizes = [64, 128], strides = [1, 1]} : vector<64x384xf32> to vector<64x128xf32>
    %18 = vector.extract_strided_slice %16 {offsets = [0, 0], sizes = [1, 128], strides = [1, 1]} : vector<4x128xf32> to vector<1x128xf32>
    %19 = arith.mulf %17, %17 : vector<64x128xf32>
    %20 = arith.truncf %19 : vector<64x128xf32> to vector<64x128xbf16>
    %cst_16 = arith.constant dense<0.000000e+00> : vector<64x128xf32>
    %21 = tpu.matmul %20, %15, %cst_16 {dimension_numbers = #tpu.dot_dimension_numbers<[1], [0], [0], [1], [0, 0, 1, 1], [], []>} : vector<64x128xbf16>, vector<128x128xbf16>, vector<64x128xf32> -> vector<64x128xf32>
    %cst_17 = arith.constant 9.99999974E-6 : f32
    %22 = vector.broadcast %cst_17 : f32 to vector<64x128xf32>
    %23 = arith.addf %21, %22 : vector<64x128xf32>
    %24 = math.rsqrt %23 : vector<64x128xf32>
    %25 = arith.mulf %17, %24 : vector<64x128xf32>
    %26 = vector.broadcast %18 : vector<1x128xf32> to vector<64x128xf32>
    %27 = arith.mulf %25, %26 : vector<64x128xf32>
    %28 = arith.truncf %27 : vector<64x128xf32> to vector<64x128xbf16>
    %c0_18 = arith.constant 0 : index
    %c0_19 = arith.constant 0 : index
    %29 = vector.load %arg15[%c0_18, %c0_19] : memref<80x384xbf16, #tpu.memory_space<vmem>>, vector<64x128xbf16>
    tpu.vector_store %arg15[%c0_18, %c0_19], %28 {strides = array<i32>} : memref<80x384xbf16, #tpu.memory_space<vmem>>, vector<64x128xbf16>,
    %30 = vector.extract_strided_slice %9 {offsets = [0, 128], sizes = [64, 128], strides = [1, 1]} : vector<64x384xf32> to vector<64x128xf32>
    %31 = vector.extract_strided_slice %16 {offsets = [1, 0], sizes = [1, 128], strides = [1, 1]} : vector<4x128xf32> to vector<1x128xf32>
    %32 = arith.mulf %30, %30 : vector<64x128xf32>
    %33 = arith.truncf %32 : vector<64x128xf32> to vector<64x128xbf16>
    %cst_20 = arith.constant dense<0.000000e+00> : vector<64x128xf32>
    %34 = tpu.matmul %33, %15, %cst_20 {dimension_numbers = #tpu.dot_dimension_numbers<[1], [0], [0], [1], [0, 0, 1, 1], [], []>} : vector<64x128xbf16>, vector<128x128xbf16>, vector<64x128xf32> -> vector<64x128xf32>
    %cst_21 = arith.constant 9.99999974E-6 : f32
    %35 = vector.broadcast %cst_21 : f32 to vector<64x128xf32>
    %36 = arith.addf %34, %35 : vector<64x128xf32>
    %37 = math.rsqrt %36 : vector<64x128xf32>
    %38 = arith.mulf %30, %37 : vector<64x128xf32>
    %39 = vector.broadcast %31 : vector<1x128xf32> to vector<64x128xf32>
    %40 = arith.mulf %38, %39 : vector<64x128xf32>
    %41 = arith.truncf %40 : vector<64x128xf32> to vector<64x128xbf16>
    %c0_22 = arith.constant 0 : index
    %c128 = arith.constant 128 : index
    %42 = vector.load %arg15[%c0_22, %c128] : memref<80x384xbf16, #tpu.memory_space<vmem>>, vector<64x128xbf16>
    tpu.vector_store %arg15[%c0_22, %c128], %41 {strides = array<i32>} : memref<80x384xbf16, #tpu.memory_space<vmem>>, vector<64x128xbf16>,
    %43 = vector.extract_strided_slice %9 {offsets = [0, 256], sizes = [64, 128], strides = [1, 1]} : vector<64x384xf32> to vector<64x128xf32>
    %44 = arith.truncf %43 : vector<64x128xf32> to vector<64x128xbf16>
    %c0_23 = arith.constant 0 : index
    %c256 = arith.constant 256 : index
    %45 = vector.load %arg15[%c0_23, %c256] : memref<80x384xbf16, #tpu.memory_space<vmem>>, vector<64x128xbf16>
    tpu.vector_store %arg15[%c0_23, %c256], %44 {strides = array<i32>} : memref<80x384xbf16, #tpu.memory_space<vmem>>, vector<64x128xbf16>,
    %46 = vector.extract_strided_slice %14 {offsets = [0, 0], sizes = [16, 128], strides = [1, 1]} : vector<16x384xf32> to vector<16x128xf32>
    %47 = vector.extract_strided_slice %16 {offsets = [2, 0], sizes = [1, 128], strides = [1, 1]} : vector<4x128xf32> to vector<1x128xf32>
    %48 = arith.mulf %46, %46 : vector<16x128xf32>
    %49 = arith.truncf %48 : vector<16x128xf32> to vector<16x128xbf16>
    %cst_24 = arith.constant dense<0.000000e+00> : vector<16x128xf32>
    %50 = tpu.matmul %49, %15, %cst_24 {dimension_numbers = #tpu.dot_dimension_numbers<[1], [0], [0], [1], [0, 0, 1, 1], [], []>} : vector<16x128xbf16>, vector<128x128xbf16>, vector<16x128xf32> -> vector<16x128xf32>
    %cst_25 = arith.constant 9.99999974E-6 : f32
    %51 = vector.broadcast %cst_25 : f32 to vector<16x128xf32>
    %52 = arith.addf %50, %51 : vector<16x128xf32>
    %53 = math.rsqrt %52 : vector<16x128xf32>
    %54 = arith.mulf %46, %53 : vector<16x128xf32>
    %55 = vector.broadcast %47 : vector<1x128xf32> to vector<16x128xf32>
    %56 = arith.mulf %54, %55 : vector<16x128xf32>
    %57 = arith.truncf %56 : vector<16x128xf32> to vector<16x128xbf16>
    %c64 = arith.constant 64 : index
    %c0_26 = arith.constant 0 : index
    %58 = vector.load %arg15[%c64, %c0_26] : memref<80x384xbf16, #tpu.memory_space<vmem>>, vector<16x128xbf16>
    tpu.vector_store %arg15[%c64, %c0_26], %57 {strides = array<i32>} : memref<80x384xbf16, #tpu.memory_space<vmem>>, vector<16x128xbf16>,
    %59 = vector.extract_strided_slice %14 {offsets = [0, 128], sizes = [16, 128], strides = [1, 1]} : vector<16x384xf32> to vector<16x128xf32>
    %60 = vector.extract_strided_slice %16 {offsets = [3, 0], sizes = [1, 128], strides = [1, 1]} : vector<4x128xf32> to vector<1x128xf32>
    %61 = arith.mulf %59, %59 : vector<16x128xf32>
    %62 = arith.truncf %61 : vector<16x128xf32> to vector<16x128xbf16>
    %cst_27 = arith.constant dense<0.000000e+00> : vector<16x128xf32>
    %63 = tpu.matmul %62, %15, %cst_27 {dimension_numbers = #tpu.dot_dimension_numbers<[1], [0], [0], [1], [0, 0, 1, 1], [], []>} : vector<16x128xbf16>, vector<128x128xbf16>, vector<16x128xf32> -> vector<16x128xf32>
    %cst_28 = arith.constant 9.99999974E-6 : f32
    %64 = vector.broadcast %cst_28 : f32 to vector<16x128xf32>
    %65 = arith.addf %63, %64 : vector<16x128xf32>
    %66 = math.rsqrt %65 : vector<16x128xf32>
    %67 = arith.mulf %59, %66 : vector<16x128xf32>
    %68 = vector.broadcast %60 : vector<1x128xf32> to vector<16x128xf32>
    %69 = arith.mulf %67, %68 : vector<16x128xf32>
    %70 = arith.truncf %69 : vector<16x128xf32> to vector<16x128xbf16>
    %c64_29 = arith.constant 64 : index
    %c128_30 = arith.constant 128 : index
    %71 = vector.load %arg15[%c64_29, %c128_30] : memref<80x384xbf16, #tpu.memory_space<vmem>>, vector<16x128xbf16>
    tpu.vector_store %arg15[%c64_29, %c128_30], %70 {strides = array<i32>} : memref<80x384xbf16, #tpu.memory_space<vmem>>, vector<16x128xbf16>,
    %72 = vector.extract_strided_slice %14 {offsets = [0, 256], sizes = [16, 128], strides = [1, 1]} : vector<16x384xf32> to vector<16x128xf32>
    %73 = arith.truncf %72 : vector<16x128xf32> to vector<16x128xbf16>
    %c64_31 = arith.constant 64 : index
    %c256_32 = arith.constant 256 : index
    %74 = vector.load %arg15[%c64_31, %c256_32] : memref<80x384xbf16, #tpu.memory_space<vmem>>, vector<16x128xbf16>
    tpu.vector_store %arg15[%c64_31, %c256_32], %73 {strides = array<i32>} : memref<80x384xbf16, #tpu.memory_space<vmem>>, vector<16x128xbf16>,
    %c64_i32 = arith.constant 64 : i32
    %75 = arith.addi %c64_i32, %1 : i32
    %76 = tpu.iota {dimensions = array<i32: 1>} : vector<1x80xi32>
    %77 = vector.broadcast %75 : i32 to vector<1x80xi32>
    %78 = arith.cmpi slt, %76, %77 : vector<1x80xi32>
    %cst_33 = arith.constant 0.000000e+00 : f32
    %cst_34 = arith.constant -1.000000e+30 : f32
    %79 = vector.broadcast %cst_33 : f32 to vector<1x80xf32>
    %80 = vector.broadcast %cst_34 : f32 to vector<1x80xf32>
    %81 = arith.select %78, %79, %80 : vector<1x80xi1>, vector<1x80xf32>
    %c0_35 = arith.constant 0 : index
    %c0_36 = arith.constant 0 : index
    %82 = vector.load %arg15[%c0_35, %c0_36] : memref<80x384xbf16, #tpu.memory_space<vmem>>, vector<80x32xbf16>
    %c0_37 = arith.constant 0 : index
    %c128_38 = arith.constant 128 : index
    %83 = vector.load %arg15[%c0_37, %c128_38] : memref<80x384xbf16, #tpu.memory_space<vmem>>, vector<80x32xbf16>
    %c0_39 = arith.constant 0 : index
    %c256_40 = arith.constant 256 : index
    %84 = vector.load %arg15[%c0_39, %c256_40] : memref<80x384xbf16, #tpu.memory_space<vmem>>, vector<80x32xbf16>
    %cst_41 = arith.constant dense<0.000000e+00> : vector<80x80xf32>
    %85 = tpu.matmul %82, %83, %cst_41 {dimension_numbers = #tpu.dot_dimension_numbers<[1], [1], [0], [0], [0, 0, 1, 0], [], []>} : vector<80x32xbf16>, vector<80x32xbf16>, vector<80x80xf32> -> vector<80x80xf32>
    %86 = vector.broadcast %81 : vector<1x80xf32> to vector<80x80xf32>
    %87 = arith.addf %85, %86 : vector<80x80xf32>
    %cst_42 = arith.constant dense<0xFF800000> : vector<80xf32>
    %88 = vector.multi_reduction <maximumf>, %87, %cst_42 [1] : vector<80x80xf32> to vector<80xf32>
    %89 = vector.shape_cast %88 : vector<80xf32> to vector<80x1xf32>
    %90 = vector.broadcast %89 : vector<80x1xf32> to vector<80x80xf32>
    %91 = arith.subf %87, %90 : vector<80x80xf32>
    %92 = math.exp %91 : vector<80x80xf32>
    %cst_43 = arith.constant dense<0.000000e+00> : vector<80xf32>
    %93 = vector.multi_reduction <add>, %92, %cst_43 [1] : vector<80x80xf32> to vector<80xf32>
    %94 = vector.shape_cast %93 : vector<80xf32> to vector<80x1xf32>
    %95 = arith.truncf %92 : vector<80x80xf32> to vector<80x80xbf16>
    %cst_44 = arith.constant dense<0.000000e+00> : vector<80x32xf32>
    %96 = tpu.matmul %95, %84, %cst_44 {dimension_numbers = #tpu.dot_dimension_numbers<[1], [0], [0], [1], [0, 0, 1, 1], [], []>} : vector<80x80xbf16>, vector<80x32xbf16>, vector<80x32xf32> -> vector<80x32xf32>
    %97 = tpu.reciprocal %94 {approx = true} : vector<80x1xf32> -> vector<80x1xf32>
    %98 = vector.broadcast %97 : vector<80x1xf32> to vector<80x32xf32>
    %99 = arith.mulf %96, %98 : vector<80x32xf32>
    %c0_45 = arith.constant 0 : index
    %c0_46 = arith.constant 0 : index
    %100 = vector.load %arg16[%c0_45, %c0_46] : memref<80x128xf32, #tpu.memory_space<vmem>>, vector<80x32xf32>
    tpu.vector_store %arg16[%c0_45, %c0_46], %99 {strides = array<i32>} : memref<80x128xf32, #tpu.memory_space<vmem>>, vector<80x32xf32>,
    %c0_47 = arith.constant 0 : index
    %c32 = arith.constant 32 : index
    %101 = vector.load %arg15[%c0_47, %c32] : memref<80x384xbf16, #tpu.memory_space<vmem>>, vector<80x32xbf16>
    %c0_48 = arith.constant 0 : index
    %c160 = arith.constant 160 : index
    %102 = vector.load %arg15[%c0_48, %c160] : memref<80x384xbf16, #tpu.memory_space<vmem>>, vector<80x32xbf16>
    %c0_49 = arith.constant 0 : index
    %c288 = arith.constant 288 : index
    %103 = vector.load %arg15[%c0_49, %c288] : memref<80x384xbf16, #tpu.memory_space<vmem>>, vector<80x32xbf16>
    %cst_50 = arith.constant dense<0.000000e+00> : vector<80x80xf32>
    %104 = tpu.matmul %101, %102, %cst_50 {dimension_numbers = #tpu.dot_dimension_numbers<[1], [1], [0], [0], [0, 0, 1, 0], [], []>} : vector<80x32xbf16>, vector<80x32xbf16>, vector<80x80xf32> -> vector<80x80xf32>
    %105 = vector.broadcast %81 : vector<1x80xf32> to vector<80x80xf32>
    %106 = arith.addf %104, %105 : vector<80x80xf32>
    %cst_51 = arith.constant dense<0xFF800000> : vector<80xf32>
    %107 = vector.multi_reduction <maximumf>, %106, %cst_51 [1] : vector<80x80xf32> to vector<80xf32>
    %108 = vector.shape_cast %107 : vector<80xf32> to vector<80x1xf32>
    %109 = vector.broadcast %108 : vector<80x1xf32> to vector<80x80xf32>
    %110 = arith.subf %106, %109 : vector<80x80xf32>
    %111 = math.exp %110 : vector<80x80xf32>
    %cst_52 = arith.constant dense<0.000000e+00> : vector<80xf32>
    %112 = vector.multi_reduction <add>, %111, %cst_52 [1] : vector<80x80xf32> to vector<80xf32>
    %113 = vector.shape_cast %112 : vector<80xf32> to vector<80x1xf32>
    %114 = arith.truncf %111 : vector<80x80xf32> to vector<80x80xbf16>
    %cst_53 = arith.constant dense<0.000000e+00> : vector<80x32xf32>
    %115 = tpu.matmul %114, %103, %cst_53 {dimension_numbers = #tpu.dot_dimension_numbers<[1], [0], [0], [1], [0, 0, 1, 1], [], []>} : vector<80x80xbf16>, vector<80x32xbf16>, vector<80x32xf32> -> vector<80x32xf32>
    %116 = tpu.reciprocal %113 {approx = true} : vector<80x1xf32> -> vector<80x1xf32>
    %117 = vector.broadcast %116 : vector<80x1xf32> to vector<80x32xf32>
    %118 = arith.mulf %115, %117 : vector<80x32xf32>
    %c0_54 = arith.constant 0 : index
    %c32_55 = arith.constant 32 : index
    %119 = vector.load %arg16[%c0_54, %c32_55] : memref<80x128xf32, #tpu.memory_space<vmem>>, vector<80x32xf32>
    tpu.vector_store %arg16[%c0_54, %c32_55], %118 {strides = array<i32>} : memref<80x128xf32, #tpu.memory_space<vmem>>, vector<80x32xf32>,
    %c0_56 = arith.constant 0 : index
    %c64_57 = arith.constant 64 : index
    %120 = vector.load %arg15[%c0_56, %c64_57] : memref<80x384xbf16, #tpu.memory_space<vmem>>, vector<80x32xbf16>
    %c0_58 = arith.constant 0 : index
    %c192 = arith.constant 192 : index
    %121 = vector.load %arg15[%c0_58, %c192] : memref<80x384xbf16, #tpu.memory_space<vmem>>, vector<80x32xbf16>
    %c0_59 = arith.constant 0 : index
    %c320 = arith.constant 320 : index
    %122 = vector.load %arg15[%c0_59, %c320] : memref<80x384xbf16, #tpu.memory_space<vmem>>, vector<80x32xbf16>
    %cst_60 = arith.constant dense<0.000000e+00> : vector<80x80xf32>
    %123 = tpu.matmul %120, %121, %cst_60 {dimension_numbers = #tpu.dot_dimension_numbers<[1], [1], [0], [0], [0, 0, 1, 0], [], []>} : vector<80x32xbf16>, vector<80x32xbf16>, vector<80x80xf32> -> vector<80x80xf32>
    %124 = vector.broadcast %81 : vector<1x80xf32> to vector<80x80xf32>
    %125 = arith.addf %123, %124 : vector<80x80xf32>
    %cst_61 = arith.constant dense<0xFF800000> : vector<80xf32>
    %126 = vector.multi_reduction <maximumf>, %125, %cst_61 [1] : vector<80x80xf32> to vector<80xf32>
    %127 = vector.shape_cast %126 : vector<80xf32> to vector<80x1xf32>
    %128 = vector.broadcast %127 : vector<80x1xf32> to vector<80x80xf32>
    %129 = arith.subf %125, %128 : vector<80x80xf32>
    %130 = math.exp %129 : vector<80x80xf32>
    %cst_62 = arith.constant dense<0.000000e+00> : vector<80xf32>
    %131 = vector.multi_reduction <add>, %130, %cst_62 [1] : vector<80x80xf32> to vector<80xf32>
    %132 = vector.shape_cast %131 : vector<80xf32> to vector<80x1xf32>
    %133 = arith.truncf %130 : vector<80x80xf32> to vector<80x80xbf16>
    %cst_63 = arith.constant dense<0.000000e+00> : vector<80x32xf32>
    %134 = tpu.matmul %133, %122, %cst_63 {dimension_numbers = #tpu.dot_dimension_numbers<[1], [0], [0], [1], [0, 0, 1, 1], [], []>} : vector<80x80xbf16>, vector<80x32xbf16>, vector<80x32xf32> -> vector<80x32xf32>
    %135 = tpu.reciprocal %132 {approx = true} : vector<80x1xf32> -> vector<80x1xf32>
    %136 = vector.broadcast %135 : vector<80x1xf32> to vector<80x32xf32>
    %137 = arith.mulf %134, %136 : vector<80x32xf32>
    %c0_64 = arith.constant 0 : index
    %c64_65 = arith.constant 64 : index
    %138 = vector.load %arg16[%c0_64, %c64_65] : memref<80x128xf32, #tpu.memory_space<vmem>>, vector<80x32xf32>
    tpu.vector_store %arg16[%c0_64, %c64_65], %137 {strides = array<i32>} : memref<80x128xf32, #tpu.memory_space<vmem>>, vector<80x32xf32>,
    %c0_66 = arith.constant 0 : index
    %c96 = arith.constant 96 : index
    %139 = vector.load %arg15[%c0_66, %c96] : memref<80x384xbf16, #tpu.memory_space<vmem>>, vector<80x32xbf16>
    %c0_67 = arith.constant 0 : index
    %c224 = arith.constant 224 : index
    %140 = vector.load %arg15[%c0_67, %c224] : memref<80x384xbf16, #tpu.memory_space<vmem>>, vector<80x32xbf16>
    %c0_68 = arith.constant 0 : index
    %c352 = arith.constant 352 : index
    %141 = vector.load %arg15[%c0_68, %c352] : memref<80x384xbf16, #tpu.memory_space<vmem>>, vector<80x32xbf16>
    %cst_69 = arith.constant dense<0.000000e+00> : vector<80x80xf32>
    %142 = tpu.matmul %139, %140, %cst_69 {dimension_numbers = #tpu.dot_dimension_numbers<[1], [1], [0], [0], [0, 0, 1, 0], [], []>} : vector<80x32xbf16>, vector<80x32xbf16>, vector<80x80xf32> -> vector<80x80xf32>
    %143 = vector.broadcast %81 : vector<1x80xf32> to vector<80x80xf32>
    %144 = arith.addf %142, %143 : vector<80x80xf32>
    %cst_70 = arith.constant dense<0xFF800000> : vector<80xf32>
    %145 = vector.multi_reduction <maximumf>, %144, %cst_70 [1] : vector<80x80xf32> to vector<80xf32>
    %146 = vector.shape_cast %145 : vector<80xf32> to vector<80x1xf32>
    %147 = vector.broadcast %146 : vector<80x1xf32> to vector<80x80xf32>
    %148 = arith.subf %144, %147 : vector<80x80xf32>
    %149 = math.exp %148 : vector<80x80xf32>
    %cst_71 = arith.constant dense<0.000000e+00> : vector<80xf32>
    %150 = vector.multi_reduction <add>, %149, %cst_71 [1] : vector<80x80xf32> to vector<80xf32>
    %151 = vector.shape_cast %150 : vector<80xf32> to vector<80x1xf32>
    %152 = arith.truncf %149 : vector<80x80xf32> to vector<80x80xbf16>
    %cst_72 = arith.constant dense<0.000000e+00> : vector<80x32xf32>
    %153 = tpu.matmul %152, %141, %cst_72 {dimension_numbers = #tpu.dot_dimension_numbers<[1], [0], [0], [1], [0, 0, 1, 1], [], []>} : vector<80x80xbf16>, vector<80x32xbf16>, vector<80x32xf32> -> vector<80x32xf32>
    %154 = tpu.reciprocal %151 {approx = true} : vector<80x1xf32> -> vector<80x1xf32>
    %155 = vector.broadcast %154 : vector<80x1xf32> to vector<80x32xf32>
    %156 = arith.mulf %153, %155 : vector<80x32xf32>
    %c0_73 = arith.constant 0 : index
    %c96_74 = arith.constant 96 : index
    %157 = vector.load %arg16[%c0_73, %c96_74] : memref<80x128xf32, #tpu.memory_space<vmem>>, vector<80x32xf32>
    tpu.vector_store %arg16[%c0_73, %c96_74], %156 {strides = array<i32>} : memref<80x128xf32, #tpu.memory_space<vmem>>, vector<80x32xf32>,
    %c0_75 = arith.constant 0 : index
    %c0_76 = arith.constant 0 : index
    %158 = vector.load %arg16[%c0_75, %c0_76] : memref<80x128xf32, #tpu.memory_space<vmem>>, vector<64x128xf32>
    %159 = arith.truncf %158 : vector<64x128xf32> to vector<64x128xbf16>
    %c0_77 = arith.constant 0 : index
    %c0_78 = arith.constant 0 : index
    %160 = vector.load %arg9[%c0_77, %c0_78] : memref<128x128xbf16, #tpu.memory_space<vmem>>, vector<128x128xbf16>
    %cst_79 = arith.constant dense<0.000000e+00> : vector<64x128xf32>
    %161 = tpu.matmul %159, %160, %cst_79 {dimension_numbers = #tpu.dot_dimension_numbers<[1], [0], [0], [1], [0, 0, 1, 1], [], []>} : vector<64x128xbf16>, vector<128x128xbf16>, vector<64x128xf32> -> vector<64x128xf32>
    %c0_80 = arith.constant 0 : index
    %c0_81 = arith.constant 0 : index
    %162 = vector.load %arg10[%c0_80, %c0_81] : memref<1x128xf32, #tpu.memory_space<vmem>>, vector<1x128xf32>
    %163 = vector.broadcast %162 : vector<1x128xf32> to vector<64x128xf32>
    %164 = arith.addf %161, %163 : vector<64x128xf32>
    %c0_82 = arith.constant 0 : index
    %c0_83 = arith.constant 0 : index
    %c0_84 = arith.constant 0 : index
    %165 = vector.load %arg13[%c0_82, %c0_83, %c0_84] : memref<1x64x128xf32, #tpu.memory_space<vmem>>, vector<1x64x128xf32>
    %166 = vector.shape_cast %165 : vector<1x64x128xf32> to vector<64x128xf32>
    %167 = vector.shape_cast %164 : vector<64x128xf32> to vector<1x64x128xf32>
    tpu.vector_store %arg13[%c0_82, %c0_83, %c0_84], %167 {strides = array<i32>} : memref<1x64x128xf32, #tpu.memory_space<vmem>>, vector<1x64x128xf32>,
    %168 = tpu.iota {dimensions = array<i32: 0>} : vector<16x1xi32>
    %169 = vector.broadcast %1 : i32 to vector<16x1xi32>
    %170 = arith.cmpi slt, %168, %169 : vector<16x1xi32>
    %171 = arith.extui %170 : vector<16x1xi1> to vector<16x1xi32>
    %172 = arith.sitofp %171 : vector<16x1xi32> to vector<16x1xf32>
    %c64_85 = arith.constant 64 : index
    %c0_86 = arith.constant 0 : index
    %173 = vector.load %arg16[%c64_85, %c0_86] : memref<80x128xf32, #tpu.memory_space<vmem>>, vector<16x128xf32>
    %174 = vector.broadcast %172 : vector<16x1xf32> to vector<16x128xf32>
    %175 = arith.mulf %173, %174 : vector<16x128xf32>
    %176 = arith.truncf %175 : vector<16x128xf32> to vector<16x128xbf16>
    %c0_87 = arith.constant 0 : index
    %c0_88 = arith.constant 0 : index
    %177 = vector.load %arg11[%c0_87, %c0_88] : memref<128x128xbf16, #tpu.memory_space<vmem>>, vector<128x128xbf16>
    %cst_89 = arith.constant dense<0.000000e+00> : vector<16x128xf32>
    %178 = tpu.matmul %176, %177, %cst_89 {dimension_numbers = #tpu.dot_dimension_numbers<[1], [0], [0], [1], [0, 0, 1, 1], [], []>} : vector<16x128xbf16>, vector<128x128xbf16>, vector<16x128xf32> -> vector<16x128xf32>
    %c0_90 = arith.constant 0 : index
    %c0_91 = arith.constant 0 : index
    %179 = vector.load %arg12[%c0_90, %c0_91] : memref<1x128xf32, #tpu.memory_space<vmem>>, vector<1x128xf32>
    %180 = vector.broadcast %179 : vector<1x128xf32> to vector<16x128xf32>
    %181 = arith.addf %178, %180 : vector<16x128xf32>
    %c0_92 = arith.constant 0 : index
    %c0_93 = arith.constant 0 : index
    %c0_94 = arith.constant 0 : index
    %182 = vector.load %arg14[%c0_92, %c0_93, %c0_94] : memref<1x16x128xf32, #tpu.memory_space<vmem>>, vector<1x16x128xf32>
    %183 = vector.shape_cast %182 : vector<1x16x128xf32> to vector<16x128xf32>
    %184 = vector.shape_cast %181 : vector<16x128xf32> to vector<1x16x128xf32>
    tpu.vector_store %arg14[%c0_92, %c0_93, %c0_94], %184 {strides = array<i32>} : memref<1x16x128xf32, #tpu.memory_space<vmem>>, vector<1x16x128xf32>,
    return
  }
  func.func @transform_0(%arg0: i32, %arg1: memref<2xi32, #tpu.memory_space<smem>>) -> (i32, i32, i32) {
    %c0_i32 = arith.constant 0 : i32
    %c0_i32_0 = arith.constant 0 : i32
    %c0_i32_1 = arith.constant 0 : i32
    return %arg0, %c0_i32, %c0_i32_0 : i32, i32, i32
  }
  func.func @transform_1(%arg0: i32, %arg1: memref<2xi32, #tpu.memory_space<smem>>) -> (i32, i32, i32) {
    %c0_i32 = arith.constant 0 : i32
    %c0_i32_0 = arith.constant 0 : i32
    %c0_i32_1 = arith.constant 0 : i32
    return %arg0, %c0_i32, %c0_i32_0 : i32, i32, i32
  }
  func.func @transform_2(%arg0: i32, %arg1: memref<2xi32, #tpu.memory_space<smem>>) -> (i32, i32) {
    %c0_i32 = arith.constant 0 : i32
    %c0_i32_0 = arith.constant 0 : i32
    %c0_i32_1 = arith.constant 0 : i32
    return %c0_i32, %c0_i32_0 : i32, i32
  }
  func.func @transform_3(%arg0: i32, %arg1: memref<2xi32, #tpu.memory_space<smem>>) -> (i32, i32) {
    %c0_i32 = arith.constant 0 : i32
    %c0_i32_0 = arith.constant 0 : i32
    %c0_i32_1 = arith.constant 0 : i32
    return %c0_i32, %c0_i32_0 : i32, i32
  }
  func.func @transform_4(%arg0: i32, %arg1: memref<2xi32, #tpu.memory_space<smem>>) -> (i32, i32) {
    %c0_i32 = arith.constant 0 : i32
    %c0_i32_0 = arith.constant 0 : i32
    %c0_i32_1 = arith.constant 0 : i32
    return %c0_i32, %c0_i32_0 : i32, i32
  }
  func.func @transform_5(%arg0: i32, %arg1: memref<2xi32, #tpu.memory_space<smem>>) -> (i32, i32) {
    %c0_i32 = arith.constant 0 : i32
    %c0_i32_0 = arith.constant 0 : i32
    %c0_i32_1 = arith.constant 0 : i32
    return %c0_i32, %c0_i32_0 : i32, i32
  }
  func.func @transform_6(%arg0: i32, %arg1: memref<2xi32, #tpu.memory_space<smem>>) -> (i32, i32) {
    %c0_i32 = arith.constant 0 : i32
    %c0_i32_0 = arith.constant 0 : i32
    %c0_i32_1 = arith.constant 0 : i32
    return %c0_i32, %c0_i32_0 : i32, i32
  }
  func.func @transform_7(%arg0: i32, %arg1: memref<2xi32, #tpu.memory_space<smem>>) -> (i32, i32) {
    %c0_i32 = arith.constant 0 : i32
    %c0_i32_0 = arith.constant 0 : i32
    %c0_i32_1 = arith.constant 0 : i32
    return %c0_i32, %c0_i32_0 : i32, i32
  }
  func.func @transform_8(%arg0: i32, %arg1: memref<2xi32, #tpu.memory_space<smem>>) -> (i32, i32) {
    %c0_i32 = arith.constant 0 : i32
    %c0_i32_0 = arith.constant 0 : i32
    %c0_i32_1 = arith.constant 0 : i32
    return %c0_i32, %c0_i32_0 : i32, i32
  }
  func.func @transform_9(%arg0: i32, %arg1: memref<2xi32, #tpu.memory_space<smem>>) -> (i32, i32) {
    %c0_i32 = arith.constant 0 : i32
    %c0_i32_0 = arith.constant 0 : i32
    %c0_i32_1 = arith.constant 0 : i32
    return %c0_i32, %c0_i32_0 : i32, i32
  }
  func.func @transform_10(%arg0: i32, %arg1: memref<2xi32, #tpu.memory_space<smem>>) -> (i32, i32) {
    %c0_i32 = arith.constant 0 : i32
    %c0_i32_0 = arith.constant 0 : i32
    %c0_i32_1 = arith.constant 0 : i32
    return %c0_i32, %c0_i32_0 : i32, i32
  }
  func.func @transform_11(%arg0: i32, %arg1: memref<2xi32, #tpu.memory_space<smem>>) -> (i32, i32, i32) {
    %c0_i32 = arith.constant 0 : i32
    %c0_i32_0 = arith.constant 0 : i32
    %c0_i32_1 = arith.constant 0 : i32
    return %arg0, %c0_i32, %c0_i32_0 : i32, i32, i32
  }
  func.func @transform_12(%arg0: i32, %arg1: memref<2xi32, #tpu.memory_space<smem>>) -> (i32, i32, i32) {
    %c0_i32 = arith.constant 0 : i32
    %c0_i32_0 = arith.constant 0 : i32
    %c0_i32_1 = arith.constant 0 : i32
    return %arg0, %c0_i32, %c0_i32_0 : i32, i32, i32
  }
}

</mosaic_0001>

<bundles_post_ra>
// kernel: mochi_attention_forward.1
= control target key start
LH: loop header
LB: loop body
LE: loop exit
PB: predicated region body
PF: predicated region fallthrough
CT: control target
= control target key end

     0   :  { %s4998_s28 = smov [#allocation5]   ;;  %s6561_s0 = inlined_call_operand.vmem [shape: s32[2], index: 0, kind: input, shape index: {}]   ;;  %s6562_s1 = inlined_call_operand.hbm [shape: f32[2,64,128], index: 1, kind: input, shape index: {}]   ;;  %s6563_s2 = inlined_call_operand.hbm [shape: f32[2,16,64], index: 2, kind: input, shape index: {}]   ;;  %s6564_s3 = inlined_call_operand.hbm [shape: bf16[128,384], index: 3, kind: input, shape index: {}]   ;;  %s6565_s4 = inlined_call_operand.hbm [shape: bf16[64,384], index: 4, kind: input, shape index: {}]   ;;  %s6566_s5 = inlined_call_operand.hbm [shape: f32[1,384], index: 5, kind: input, shape index: {}]   ;;  %s6567_s6 = inlined_call_operand.vmem [shape: f32[4,128], index: 6, kind: input, shape index: {}]   ;;  %s6568_s7 = inlined_call_operand.hbm [shape: bf16[128,128], index: 7, kind: input, shape index: {}]   ;;  %s6569_s8 = inlined_call_operand.hbm [shape: bf16[128,128], index: 8, kind: input, shape index: {}]   ;;  %s6570_s9 = inlined_call_operand.vmem [shape: f32[1,128], index: 9, kind: input, shape index: {}]   ;;  %s6571_s10 = inlined_call_operand.hbm [shape: bf16[128,128], index: 10, kind: input, shape index: {}]   ;;  %s6572_s11 = inlined_call_operand.hbm [shape: f32[1,128], index: 11, kind: input, shape index: {}]   ;;  %s6573_s12 = inlined_call_operand.hbm [shape: f32[2,64,128], index: 12, kind: output, shape index: {0}]   ;;  %s6574_s13 = inlined_call_operand.hbm [shape: f32[2,16,128], index: 13, kind: output, shape index: {1}]  }
   0x1   :  { %6578 = sst [smem:[#allocation35_spill]] %s6562_s1  ;;  %s20_s27 = sshll.u32 %s6561_s0, 4  ;;  %s21_s27 = int_to_ptr.vmem [resolvable:$true] %s20_s27 }
   0x2   :  { %6579 = sst [smem:[#allocation36_spill]] %s6564_s3 }
   0x3   :  { %6580 = sst [smem:[#allocation37_spill]] %s6565_s4 }
   0x4   :  { %6581 = sst [smem:[#allocation38_spill]] %s6566_s5 }
   0x5   :  { %6582 = sst [smem:[#allocation39_spill]] %s6568_s7 }
   0x6   :  { %6583 = sst [smem:[#allocation40_spill]] %s6569_s8 }
   0x7   :  { %6584 = sst [smem:[#allocation41_spill]] %s6571_s10 }
   0x8   :  { %6585 = sst [smem:[#allocation42_spill]] %s6572_s11 }
   0x9   :  { %6586 = sst [smem:[#allocation43_spill]] %s6573_s12 }
   0xa   :  { %6587 = sst [smem:[#allocation44_spill]] %s6574_s13 }
   0xb   :  { %23 = dma.vmem_to_smem %s21_s27, 16, %s4998_s28, [#allocation4] }
   0xc   :  { %4948 = dma.done.wait [#allocation4], 16 }
   0xd   :  { %4949 = vsyncadd [#allocation4], 4294967280 }
   0xe   :  { %26 = sfence }
   0xf   :  { %27 = vsyncpa [#allocation7], 0 }
  0x10   :  { %29 = vsyncpa [#allocation7 + $0x1], 0 }
  0x11   :  { %30 = vsyncpa [#allocation10], 0 }
  0x12   :  { %32 = vsyncpa [#allocation10 + $0x1], 0 }
  0x13   :  { %33 = vsyncpa [#allocation13], 0 }
  0x14   :  { %34 = vsyncpa [#allocation16], 0 }
  0x15   :  { %35 = vsyncpa [#allocation19], 0 }
  0x16   :  { %36 = vsyncpa [#allocation8], 0 }
  0x17   :  { %38 = vsyncpa [#allocation8 + $0x1], 0 }
  0x18   :  { %39 = vsyncpa [#allocation23], 0 }
  0x19   :  { %41 = vsyncpa [#allocation23 + $0x1], 0  ;;  %s5092_s29 = smov 0   ;;  %s5094_s0 = smov 0  }
  0x1a   :  { %s5096_s30 = smov 0   ;;  %s5098_s14 = smov 0  }
  0x1b LB: > { %6588 = sst [smem:[#allocation33_spill]] %s4992_s30  ;;  %s5116_s18 = sadd.s32 4294967295, %s4996_s14   ;;  %s4996_s14 = sphi %s5098_s14, %s6630_s14   ;;  %s4992_s30 = sphi %s5096_s30, %s6627_s30   ;;  %s4988_s0 = sphi %s5094_s0, %s6629_s0   ;;  %s4984_s29 = sphi %s5092_s29, %s6628_s29  }
  0x1c   : > { %s6589_s3 = sld [smem:[#allocation36_spill]]  ;;  %p3553_p0 = scmp.ge.s32.totalorder %s4996_s14, 1 }
  0x1d   : > { %p68_p1 = scmp.eq.s32.totalorder %s5116_s18, 0  ;;  %p345_p2 = scmp.lt.s32.totalorder %s4996_s14, 3 }
  0x1e   : > { %s4999_s20 = smov [#allocation11]   ;;  %s6591_s4 = sld [smem:[#allocation37_spill]] }
  0x1f   : > { %p5121_p3 = pnand %p3553_p0, %p345_p2  ;;  %s358_s21 = sshll.u32 %s4999_s20, 4  ;;  %s359_s21 = int_to_ptr.vmem [resolvable:$true] %s358_s21 }
  0x20   : > { %s6593_s7 = sld [smem:[#allocation39_spill]]  ;;  %s5000_s15 = smov [#allocation12]  }
  0x21   : > { %p4287_p4 = pneg %p5121_p3  ;;  %s372_s16 = sshll.u32 %s5000_s15, 4  ;;  %s373_s16 = int_to_ptr.vmem [resolvable:$true] %s372_s16 }
  0x22   : > { %s356_s17 = sshll.u32 %s6589_s3, 4  ;;  %s5001_s20 = smov 192   ;;  %s357_s17 = int_to_ptr.hbm [resolvable:$true] %s356_s17 }
  0x23   : > { %p5133_p6 = pnand %p4287_p4, %p68_p1  ;;  %s5002_s3 = smov 12  }
  0x24   : > { %s370_s24 = sshll.u32 %s6591_s4, 4  ;;  %s5003_s22 = smov [#allocation15]   ;;  %s371_s24 = int_to_ptr.hbm [resolvable:$true] %s370_s24 }
  0x25   : > { %4290 = dma.hbm_to_vmem [thread:$0]  (!%p5133_p6), %s357_s17, 3072, %s359_s21, [#allocation10], %s5001_s20, %s5001_s20, %s5002_s3  }
  0x26   : > { %s399_s28 = sshll.u32 %s6593_s7, 4  ;;  %s401_s23 = sshll.u32 %s5003_s22, 4  ;;  %s400_s28 = int_to_ptr.hbm [resolvable:$true] %s399_s28  ;;  %s402_s23 = int_to_ptr.vmem [resolvable:$true] %s401_s23 }
  0x27   : > { %4293 = dma.hbm_to_vmem [thread:$0]  (!%p5133_p6), %s371_s24, 1536, %s373_s16, [#allocation13], %s5001_s20, %s5001_s20, %s5002_s3  }
  0x28   : > { %s6594_s10 = sld [smem:[#allocation41_spill]]  ;;  %s5004_s27 = smov 64  }
  0x29   : > { %s5005_s7 = smov 4   ;;  %s5006_s15 = smov [#allocation18]  }
  0x2a   : > { %4299 = dma.hbm_to_vmem [thread:$0]  (!%p5133_p6), %s400_s28, 1024, %s402_s23, [#allocation16], %s5004_s27, %s5004_s27, %s5005_s7  }
  0x2b   : > { %s432_s17 = sshll.u32 %s5006_s15, 4  ;;  %s6595_s5 = sld [smem:[#allocation38_spill]]  ;;  %s433_s17 = int_to_ptr.vmem [resolvable:$true] %s432_s17 }
  0x2c   : > { %s6596_s8 = sld [smem:[#allocation40_spill]]  ;;  %s5007_s16 = smov [#allocation14]  }
  0x2d   : > { %s387_s28 = sshll.u32 %s5007_s16, 4  ;;  %s5008_s12 = smov [#allocation17]   ;;  %s388_s28 = int_to_ptr.vmem [resolvable:$true] %s387_s28 }
  0x2e   : > { %s430_s26 = sshll.u32 %s6594_s10, 4  ;;  %s415_s20 = sshll.u32 %s5008_s12, 4  ;;  %s431_s26 = int_to_ptr.hbm [resolvable:$true] %s430_s26  ;;  %s416_s20 = int_to_ptr.vmem [resolvable:$true] %s415_s20 }
  0x2f   : > { %4305 = dma.hbm_to_vmem [thread:$0]  (!%p5133_p6), %s431_s26, 1024, %s433_s17, [#allocation19], %s5004_s27, %s5004_s27, %s5005_s7  }
  0x30   : > { %s6597_s11 = sld [smem:[#allocation42_spill]]  ;;  %s5009_s15 = smov [#allocation20]  }
  0x31   : > { %s385_s3 = sshll.u32 %s6595_s5, 4  ;;  %s447_s17 = sshll.u32 %s5009_s15, 4  ;;  %s386_s3 = int_to_ptr.hbm [resolvable:$true] %s385_s3  ;;  %s448_s17 = int_to_ptr.vmem [resolvable:$true] %s447_s17 }
  0x32   : > { %s413_s13 = sshll.u32 %s6596_s8, 4  ;;  %s3552_s21 = sadd.s32 4294967294, %s4996_s14   ;;  %s414_s13 = int_to_ptr.hbm [resolvable:$true] %s413_s13 }
  0x33   : > { %4296 = dma.hbm_to_vmem [thread:$0]  (!%p5133_p6), %s386_s3, 48, %s388_s28, [#allocation13]  }
  0x34   : > { %4302 = dma.hbm_to_vmem [thread:$0]  (!%p5133_p6), %s414_s13, 1024, %s416_s20, [#allocation16], %s5004_s27, %s5004_s27, %s5005_s7  }
  0x35   : > { %s5168_s3 = sadd.s32 1, %s4996_s14   ;;  %s54_s24 = sadd.s32 1, %s4992_s30 }
  0x36   : > { %s445_s26 = sshll.u32 %s6597_s11, 4  ;;  %s51_s4 = ssub.s32 %s4996_s14, %s5168_s3  ;;  %s446_s26 = int_to_ptr.hbm [resolvable:$true] %s445_s26 }
  0x37   : > { %4308 = dma.hbm_to_vmem [thread:$0]  (!%p5133_p6), %s446_s26, 16, %s448_s17, [#allocation19]  }
  0x38   : > { %p61_p7 = scmp.ne.s32.totalorder %s4992_s30, %s4988_s0  ;;  %p52_p8 = scmp.eq.s32.totalorder %s51_s4, 0 }
  0x39   : > { %p62_p9 = scmp.eq.s32.totalorder %s4996_s14, 0  ;;  %p67_p10 = scmp.ne.s32.totalorder %s4988_s0, %s4984_s29 }
  0x3a   : > { %p306_p11 = scmp.eq.s32.totalorder %s5116_s18, 1  ;;  %p312_p2 = scmp.eq.s32.totalorder %s3552_s21, 1 }
  0x3b   : > { %s5180_s7 = scalar_select %p52_p8, %s4992_s30, %s54_s24  }
  0x3c   : > { %p5182_p12 = por %p62_p9, %p61_p7  ;;  %p5188_p13 = por %p68_p1, %p67_p10 }
  0x3d   : > { %6598 = sst [smem:[#allocation34_spill]] %s5180_s7  ;;  %p5192_p0 = por %p306_p11, %p61_p7 }
  0x3e   : > { %p4330_p4 = scmp.lt.s32.totalorder %s4996_s14, 2  ;;  %s5198_s16 = sand.u32 1, %s4992_s30  }
  0x3f   : > { %p5200_p6 = por %p312_p2, %p67_p10  ;;  %s3562_s12 = sshll.u32 %s5198_s16, 6 }
  0x40   : > { %s4113_s20 = sshll.u32 %s4996_s14, 6  ;;  %s6603_s1 = sld [smem:[#allocation35_spill]] }
  0x41   : > { %s462_s17 = scalar_lea.vmem [#allocation6], %s3562_s12  ;;  %p5211_p7 = pnand %p4330_p4, %p5182_p12 }
  0x42   : > { %s470_s24 = sshll.u32 %s462_s17, 4  ;;  %s480_s4 = sand.u32 1, %s4996_s14   ;;  %s471_s24 = int_to_ptr.vmem [resolvable:$true] %s470_s24 }
  0x43   : > { %s459_s5 = scalar_lea.sflag [#allocation7], %s5198_s16  ;;  %p4820_p9 = pneg %p5211_p7 }
  0x46   : > { %s467_s26 = scalar_lea.hbm %s6603_s1, %s4113_s20  ;;  %s4823_s20 = scalar_lea.hbm %s6603_s1, 128 }
  0x47   : > { %s468_s15 = sshll.u32 %s467_s26, 4  ;;  %s469_s15 = int_to_ptr.hbm [resolvable:$true] %s468_s15 }
  0x48   : > { %s4816_s8 = sshra.s32 %s469_s15, 4  ;;  %s4817_s8 = int_to_ptr.hbm [resolvable:$true] %s4816_s8 }
  0x49   : > { %s4818_s10 = scalar_lea.hbm %s4817_s8, 64  ;;  %p4824_p12 = scmp.lt.s32.totalorder %s4817_s8, %s6603_s1 }
  0x4a   : > { %p4819_p8 = scmp.ne.s32.totalorder %s4817_s8, %s4818_s10  ;;  %p4825_p2 = scmp.lt.s32.totalorder %s4823_s20, %s4818_s10 }
  0x4c   : > { %p4821_p10 = pnand %p4820_p9, %p4819_p8  ;;  %p4826_p4 = por %p4825_p2, %p4824_p12 }
  0x4e   : > { %p4822_p11 = pneg %p4821_p10 }
  0x50   : > { %p4827_p5 = pnand %p4826_p4, %p4822_p11 }
  0x52   : > { %4830 = shalt.err (!%p4827_p5)
}
  0x53   : > { %s5010_s26 = smov 128   ;;  %s5011_s17 = smov 8  }
  0x54   : > { %4312 = dma.hbm_to_vmem [thread:$0]  (!%p5211_p7), %s469_s15, 1024, %s471_s24, %s459_s5, %s5010_s26, %s5010_s26, %s5011_s17  }
  0x55   : > { %s3565_s11 = sshll.u32 %s5198_s16, 4  ;;  %s4114_s7 = sshll.u32 %s4996_s14, 4 }
  0x56   : > { %s489_s30 = scalar_lea.hbm %s6563_s2, %s4114_s7  ;;  %s484_s8 = scalar_lea.vmem [#allocation9], %s3565_s11 }
  0x57   : > { %s490_s22 = sshll.u32 %s489_s30, 4  ;;  %s492_s10 = sshll.u32 %s484_s8, 4  ;;  %s491_s22 = int_to_ptr.hbm [resolvable:$true] %s490_s22  ;;  %s493_s10 = int_to_ptr.vmem [resolvable:$true] %s492_s10 }
  0x58   : > { %s481_s20 = scalar_lea.sflag [#allocation10], %s480_s4  ;;  %s4846_s23 = sshra.s32 %s491_s22, 4  ;;  %s4847_s23 = int_to_ptr.hbm [resolvable:$true] %s4846_s23 }
  0x59   : > { %s4848_s1 = scalar_lea.hbm %s4847_s23, 16  ;;  %s4853_s15 = scalar_lea.hbm %s6563_s2, 32 }
  0x5a   : > { %p4849_p5 = scmp.ne.s32.totalorder %s4847_s23, %s4848_s1  ;;  %p4854_p11 = scmp.lt.s32.totalorder %s4847_s23, %s6563_s2 }
  0x5b   : > { %p4855_p12 = scmp.lt.s32.totalorder %s4853_s15, %s4848_s1 }
  0x5c   : > { %p4851_p8 = pnand %p4849_p5, %p4820_p9 }
  0x5d   : > { %p4856_p2 = por %p4855_p12, %p4854_p11 }
  0x5e   : > { %p4852_p10 = pneg %p4851_p8 }
  0x60   : > { %p4857_p4 = pnand %p4856_p2, %p4852_p10 }
  0x62   : > { %4860 = shalt.err (!%p4857_p4)
}
  0x63   : > { %4315 = dma.hbm_to_vmem [thread:$0]  (!%p5211_p7), %s491_s22, 256, %s493_s10, %s481_s20, %s5010_s26, %s5010_s26, %s5011_s17  }
  0x64   : > { %504 = sbr.rel (%p5121_p3) target bundleno = 1766 (0x6e6), region = 64  ;;  %s5249_s11 = sand.u32 (!%p5121_p3), 1, %s4988_s0  }
  0x65   : > { %s3569_s30 = sshll.u32 (!%p5121_p3), %s5249_s11, 6  ;;  %s507_s4 = scalar_lea.sflag (!%p5121_p3), [#allocation7], %s5249_s11 }
  0x66   : > { %s5255_s1 = scalar_lea.vmem (!%p5121_p3), [#allocation6], %s3569_s30 }
  0x69   : > { %4951 = dma.done.wait (%p5188_p13), %s507_s4, 1024  }
  0x6a   : > { %4953 = vsyncadd (%p5188_p13), %s507_s4, 4294966272  ;;  %s516_s19 = sand.u32 1, %s5116_s18   ;;  %s3570_s21 = sshll.u32 %s5249_s11, 4 }
  0x6b   : > { %s517_s26 = scalar_lea.sflag [#allocation10], %s516_s19  ;;  %s5265_s17 = scalar_lea.vmem [#allocation9], %s3570_s21 }
  0x6c   : > { %4955 = dma.done.wait (%p5188_p13), %s517_s26, 256  }
  0x6d   : > { %4957 = vsyncadd (%p5188_p13), %s517_s26, 4294967040 }
  0x6e   : > { %4959 = dma.done.wait (%p68_p1), [#allocation10], 3072  }
  0x6f   : > { %4961 = vsyncadd (%p68_p1), [#allocation10], 4294964224 }
  0x70   : > { %4963 = dma.done.wait (%p68_p1), [#allocation13], 1584  }
  0x71   : > { %4965 = vsyncadd (%p68_p1), [#allocation13], 4294965712 }
  0x72   : > { %4967 = dma.done.wait (%p68_p1), [#allocation16], 2048  }
  0x73   : > { %4969 = vsyncadd (%p68_p1), [#allocation16], 4294965248 }
  0x74   : > { %4971 = dma.done.wait (%p68_p1), [#allocation19], 1040  }
  0x75   : > { %4973 = vsyncadd (%p68_p1), [#allocation19], 4294966256  ;;  %v3666_v0 = vld [vmem:[#allocation11 + $0xa8] sm:$0xf]  ;;  %v4137_v1 = vld [vmem:[#allocation11 + $0xb0] sm:$0xf0] }
  0x76   : > { %v4136_v2 = vld [vmem:[#allocation11 + $0xac] sm:$0xf]  ;;  %v3667_v3 = vor.u32 %v4137_v1, %v3666_v0  ;;  %v3668_v4 = vld [vmem:[#allocation11 + $0xb4] sm:$0xf0]  ;;  %v3714_v5 = vld [vmem:[#allocation12 + $0x48] sm:$0xf] }
  0x77   : > { %v4149_v6 = vld [vmem:[#allocation12 + $0x50] sm:$0xf0]  ;;  %v3671_v7 = vor.u32 %v4136_v2, %v3668_v4  ;;  %v3654_v9 = vld [vmem:[#allocation11 + $0x90] sm:$0xf]  ;;  %v4134_v10 = vld [vmem:[#allocation11 + $0x98] sm:$0xf0] }
  0x78   : > { %v3715_v8 = vor.u32 %v4149_v6, %v3714_v5  ;;  %v4133_v11 = vld [vmem:[#allocation11 + $0x94] sm:$0xf]  ;;  %784 = vmatpush.bf16.msra.mxu0 %v3667_v3  ;;  %v3655_v12 = vor.u32 %v4134_v10, %v3654_v9  ;;  %v3656_v13 = vld [vmem:[#allocation11 + $0x9c] sm:$0xf0]  ;;  %v3702_v14 = vld [vmem:[#allocation12 + $0x30] sm:$0xf] }
  0x79   : > { %v4146_v15 = vld [vmem:[#allocation12 + $0x38] sm:$0xf0]  ;;  %813 = vmatpush.bf16.msra.mxu1 %v3671_v7  ;;  %v3659_v16 = vor.u32 %v4133_v11, %v3656_v13  ;;  %v3642_v18 = vld [vmem:[#allocation11 + $0x78] sm:$0xf]  ;;  %v4131_v19 = vld [vmem:[#allocation11 + $0x80] sm:$0xf0] }
  0x7a   : > { %967 = vmatpush.bf16.msra.mxu3 %v3715_v8  ;;  %v3703_v17 = vor.u32 %v4146_v15, %v3702_v14  ;;  %v4130_v20 = vld [vmem:[#allocation11 + $0x7c] sm:$0xf]  ;;  %v3644_v21 = vld [vmem:[#allocation11 + $0x84] sm:$0xf0]  ;;  %v3690_v22 = vld [vmem:[#allocation12 + $0x18] sm:$0xf]  ;;  %v3643_v24 = vor.u32 %v4131_v19, %v3642_v18 }
  0x7b   : > { %v4143_v23 = vld [vmem:[#allocation12 + $0x20] sm:$0xf0]  ;;  %v3647_v25 = vor.u32 %v4130_v20, %v3644_v21  ;;  %v3630_v27 = vld [vmem:[#allocation11 + $0x60] sm:$0xf]  ;;  %v4128_v28 = vld [vmem:[#allocation11 + $0x68] sm:$0xf0] }
  0x7c   : > { %785 = vmatpush.bf16.msra.mxu0 %v3655_v12  ;;  %v3691_v26 = vor.u32 %v4143_v23, %v3690_v22  ;;  %v4127_v29 = vld [vmem:[#allocation11 + $0x64] sm:$0xf]  ;;  %v3632_v30 = vld [vmem:[#allocation11 + $0x6c] sm:$0xf0]  ;;  %v3678_v31 = vld [vmem:[#allocation12] sm:$0xf]  ;;  %v3631_v35 = vor.u32 %v4128_v28, %v3630_v27 }
  0x7d   : > { %814 = vmatpush.bf16.msra.mxu1 %v3659_v16  ;;  %v4140_v32 = vld [vmem:[#allocation12 + $0x8] sm:$0xf0]  ;;  %v3716_v34 = vld [vmem:[#allocation12 + $0x54] sm:$0xf0]  ;;  %v621_v36 = vld [vmem:[%s5265_s17] sm:$0xff]  ;;  %v3635_v37 = vor.u32 %v4127_v29, %v3632_v30  ;;  %vm959_vm0 = vcmask 523264  }
  0x7e   : > { %968 = vmatpush.bf16.msra.mxu3 %v3703_v17  ;;  %v4148_v33 = vld [vmem:[#allocation12 + $0x4c] sm:$0xf]  ;;  %v3679_v38 = vor.u32 %v4140_v32, %v3678_v31  ;;  %v3618_v40 = vld [vmem:[#allocation11 + $0x48] sm:$0xf]  ;;  %v4125_v41 = vld [vmem:[#allocation11 + $0x50] sm:$0xf0] }
  0x7f   : > { %v622_v39 = vld [vmem:[%s5265_s17 + $0x8] sm:$0xff]  ;;  %v3719_v44 = vor.u32 %v4148_v33, %v3716_v34  ;;  %v4145_v45 = vld [vmem:[#allocation12 + $0x34] sm:$0xf]  ;;  %v3704_v46 = vld [vmem:[#allocation12 + $0x3c] sm:$0xf0]  ;;  %v3619_v48 = vor.u32 %v4125_v41, %v3618_v40  ;;  %s5012_s27 = smov 96  }
  0x80   : > { %786 = vmatpush.bf16.msra.mxu0 %v3643_v24  ;;  %v4124_v42 = vld [vmem:[#allocation11 + $0x4c] sm:$0xf]  ;;  %v3620_v43 = vld [vmem:[#allocation11 + $0x54] sm:$0xf0]  ;;  %v5289_v47 = vpack.c.bf16 %v622_v39, %v621_v36  ;;  %v3606_v50 = vld [vmem:[#allocation11 + $0x30] sm:$0xf]  ;;  %v3707_v54 = vor.u32 %v4145_v45, %v3704_v46 }
  0x81   : > { %815 = vmatpush.bf16.msra.mxu1 %v3647_v25  ;;  %v3623_v49 = vor.u32 %v4124_v42, %v3620_v43  ;;  %v4122_v51 = vld [vmem:[#allocation11 + $0x38] sm:$0xf0]  ;;  %v4121_v52 = vld [vmem:[#allocation11 + $0x34] sm:$0xf]  ;;  %v3608_v53 = vld [vmem:[#allocation11 + $0x3c] sm:$0xf0] }
  0x82   : > { %969 = vmatpush.bf16.msra.mxu3 %v3691_v26  ;;  %v4142_v55 = vld [vmem:[#allocation12 + $0x1c] sm:$0xf]  ;;  %v3692_v56 = vld [vmem:[#allocation12 + $0x24] sm:$0xf0]  ;;  %v3607_v57 = vor.u32 %v4122_v51, %v3606_v50  ;;  %v3611_v58 = vor.u32 %v4121_v52, %v3608_v53  ;;  %v3594_v59 = vld [vmem:[#allocation11 + $0x18] sm:$0xf] }
  0x83   : > { %v4119_v60 = vld [vmem:[#allocation11 + $0x20] sm:$0xf0]  ;;  %v4118_v61 = vld [vmem:[#allocation11 + $0x1c] sm:$0xf]  ;;  %v3596_v62 = vld [vmem:[#allocation11 + $0x24] sm:$0xf0]  ;;  %v3695_v63 = vor.u32 %v4142_v55, %v3692_v56 }
  0x84   : > { %787 = vmatpush.bf16.msra.mxu0 %v3631_v35  ;;  %v4139_v0 = vld [vmem:[#allocation12 + $0x4] sm:$0xf]  ;;  %v3680_v1 = vld [vmem:[#allocation12 + $0xc] sm:$0xf0]  ;;  %v3595_v2 = vor.u32 %v4119_v60, %v3594_v59  ;;  %v3599_v3 = vor.u32 %v4118_v61, %v3596_v62  ;;  %v3582_v4 = vld [vmem:[#allocation11] sm:$0xf] }
  0x85   : > { %816 = vmatpush.bf16.msra.mxu1 %v3635_v37  ;;  %v4116_v5 = vld [vmem:[#allocation11 + $0x8] sm:$0xf0]  ;;  %v4115_v6 = vld [vmem:[#allocation11 + $0x4] sm:$0xf]  ;;  %v3584_v7 = vld [vmem:[#allocation11 + $0xc] sm:$0xf0]  ;;  %v3683_v8 = vor.u32 %v4139_v0, %v3680_v1 }
  0x86   : > { %970 = vmatpush.bf16.msra.mxu3 %v3679_v38  ;;  %v3583_v9 = vor.u32 %v4116_v5, %v3582_v4  ;;  %v609_v10 = vld [vmem:[%s5255_s1] sm:$0xff]  ;;  %v610_v11 = vld [vmem:[%s5255_s1 + $0x8] sm:$0xff]  ;;  %v3587_v12 = vor.u32 %v4115_v6, %v3584_v7  ;;  %v611_v14 = vld [vmem:[%s5255_s1 + $0x10] sm:$0xff]  ;;  %s5013_s22 = smov 32   ;;  %s5014_s8 = smov 64  }
  0x87   : > { %v5295_v13 = vpack.c.bf16 %v610_v11, %v609_v10  ;;  %v612_v15 = vld [vmem:[%s5255_s1 + $0x18] sm:$0xff]  ;;  %v3674_v17 = vld [vmem:[#allocation11 + $0xb0] sm:$0xf]  ;;  %v4135_v21 = vld [vmem:[#allocation11 + $0xa0] sm:$0xf0]  ;;  %s5858_s10 = sld [smem:[#allocation5 + %s5116_s18]] }
  0x88   : > { %788 = vmatpush.bf16.msra.mxu0 %v3619_v48  ;;  %v5303_v16 = vpack.c.bf16 %v612_v15, %v611_v14  ;;  %v4138_v18 = vld [vmem:[#allocation11 + $0xb8] sm:$0xf0]  ;;  %v3662_v19 = vld [vmem:[#allocation11 + $0x98] sm:$0xf]  ;;  %v3650_v23 = vld [vmem:[#allocation11 + $0x80] sm:$0xf] }
  0x89   : > { %3724 = vmatmul.msk.bf16.vlgmr.msra.gmra.mxu3 %vm959_vm0, %v5289_v47  ;;  %817 = vmatpush.bf16.msra.mxu1 %v3623_v49  ;;  %v3675_v20 = vor.u32 %v4138_v18, %v3674_v17  ;;  %v3663_v22 = vor.u32 %v4135_v21, %v3662_v19  ;;  %v4132_v24 = vld [vmem:[#allocation11 + $0x88] sm:$0xf0]  ;;  %v5307_v25 = vld [vmem:[#allocation15 + $0x38] sm:$0xff]  ;;  %v5310_v26 = vld [vmem:[#allocation15 + $0x30] sm:$0xff]  ;;  %s6489_s16 = scalar_lea.vmem [#allocation21], %s3569_s30  ;;  %s4235_s15 = sshll.u32 %s5116_s18, 6 }
  0x8a   : > { %981 = vmatpush.bf16.msrb.mxu3 %v3719_v44  ;;  %v3722_v27 = vld [vmem:[#allocation12 + $0x50] sm:$0xf]  ;;  %v4150_v28 = vld [vmem:[#allocation12 + $0x58] sm:$0xf0]  ;;  %v613_v29 = vld [vmem:[%s5255_s1 + $0x20] sm:$0xff]  ;;  %v3651_v30 = vor.u32 %v4132_v24, %v3650_v23  ;;  %s3337_s24 = sshll.u32 %s6489_s16, 4  ;;  %s6504_s24 = int_to_ptr.vmem [resolvable:$true] %s3337_s24 }
  0x8b   : > { %842 = vmatpush.bf16.msra.mxu2 %v3675_v20  ;;  %v3723_v31 = vor.u32 %v4150_v28, %v3722_v27  ;;  %v614_v32 = vld [vmem:[%s5255_s1 + $0x28] sm:$0xff]  ;;  %v4129_v34 = vld [vmem:[#allocation11 + $0x70] sm:$0xf0]  ;;  %v3626_v38 = vld [vmem:[#allocation11 + $0x50] sm:$0xf]  ;;  %s6623_s4 = sld [smem:[#allocation43_spill]] }
  0x8c   : > { %789 = vmatpush.bf16.msra.mxu0 %v3607_v57  ;;  %v3638_v33 = vld [vmem:[#allocation11 + $0x68] sm:$0xf]  ;;  %v4156_v35 = vld [vmem:[#allocation15 + $0x28] sm:$0xff]  ;;  %v5317_v36 = vpack.c.bf16 %v614_v32, %v613_v29  ;;  %v4126_v39 = vld [vmem:[#allocation11 + $0x58] sm:$0xf0]  ;;  %s4236_s19 = sshll.u32 %s5116_s18, 4 }
  0x8d   : > { %818 = vmatpush.bf16.msra.mxu1 %v3611_v58  ;;  %v3639_v37 = vor.u32 %v4129_v34, %v3638_v33  ;;  %v3627_v40 = vor.u32 %v4126_v39, %v3626_v38  ;;  %v3614_v41 = vld [vmem:[#allocation11 + $0x38] sm:$0xf]  ;;  %v4123_v42 = vld [vmem:[#allocation11 + $0x40] sm:$0xf0]  ;;  %v3698_v49 = vld [vmem:[#allocation12 + $0x20] sm:$0xf] }
  0x8e   : > { %982 = vmatpush.bf16.msrb.mxu3 %v3707_v54  ;;  %v3710_v43 = vld [vmem:[#allocation12 + $0x38] sm:$0xf]  ;;  %v4147_v44 = vld [vmem:[#allocation12 + $0x40] sm:$0xf0]  ;;  %v3615_v46 = vor.u32 %v4123_v42, %v3614_v41  ;;  %v4144_v50 = vld [vmem:[#allocation12 + $0x28] sm:$0xf0] }
  0x8f   : > { %843 = vmatpush.bf16.msra.mxu2 %v3663_v22  ;;  %v4155_v45 = vld [vmem:[#allocation15 + $0x20] sm:$0xff]  ;;  %v3711_v48 = vor.u32 %v4147_v44, %v3710_v43  ;;  %v3602_v51 = vld [vmem:[#allocation11 + $0x20] sm:$0xf]  ;;  %v4120_v52 = vld [vmem:[#allocation11 + $0x28] sm:$0xf0]  ;;  %v3699_v54 = vor.u32 %v4144_v50, %v3698_v49  ;;  %s1490_s20 = sadd.s32 64, %s5858_s10 }
  0x90   : > { %790 = vmatpush.bf16.msra.mxu0 %v3595_v2  ;;  %v4154_v53 = vld [vmem:[#allocation15 + $0x18] sm:$0xff]  ;;  %v3686_v55 = vld [vmem:[#allocation12 + $0x8] sm:$0xf]  ;;  %v4141_v56 = vld [vmem:[#allocation12 + $0x10] sm:$0xf0]  ;;  %v3603_v58 = vor.u32 %v4120_v52, %v3602_v51  ;;  %s6508_s17 = scalar_lea.vmem [#allocation22], %s3570_s21 }
  0x91   : > { %819 = vmatpush.bf16.msra.mxu1 %v3599_v3  ;;  %v615_v57 = vld [vmem:[%s5255_s1 + $0x30] sm:$0xff]  ;;  %v616_v59 = vld [vmem:[%s5255_s1 + $0x38] sm:$0xff]  ;;  %v3590_v60 = vld [vmem:[#allocation11 + $0x8] sm:$0xf]  ;;  %v3687_v62 = vor.u32 %v4141_v56, %v3686_v55  ;;  %s3336_s1 = scalar_lea.hbm %s6623_s4, %s4235_s15  ;;  %s3354_s25 = sshll.u32 %s6508_s17, 4  ;;  %s6515_s25 = int_to_ptr.vmem [resolvable:$true] %s3354_s25 }
  0x92   : > { %983 = vmatpush.bf16.msrb.mxu3 %v3695_v63  ;;  %v4117_v61 = vld [vmem:[#allocation11 + $0x10] sm:$0xf0]  ;;  %v620_v63 = vpack.c.bf16 %v616_v59, %v615_v57  ;;  %v4151_v2 = vld [vmem:[#allocation15] sm:$0xff]  ;;  %v5332_v3 = vld [vmem:[#allocation14] sm:$0x7]  ;;  %s3339_s26 = sshll.u32 %s3336_s1, 4  ;;  %s3340_s26 = int_to_ptr.hbm [resolvable:$true] %s3339_s26 }
  0x93   : > { %844 = vmatpush.bf16.msra.mxu2 %v3651_v30  ;;  %v3591_v0 = vor.u32 %v4117_v61, %v3590_v60  ;;  %v4153_v1 = vld [vmem:[#allocation15 + $0x10] sm:$0xff]  ;;  %v889_v5 = vperm.slane %v5332_v3, 0  ;;  %s4890_s21 = sshra.s32 %s3340_s26, 4  ;;  %s4896_s15 = scalar_lea.hbm %s6623_s4, 128  ;;  %s4891_s21 = int_to_ptr.hbm [resolvable:$true] %s4890_s21 }
  0x94   : > { %791 = vmatpush.bf16.msra.mxu0 %v3583_v9  ;;  %p4897_p7 = scmp.lt.s32.totalorder %s4891_s21, %s6623_s4 }
  0x95   : > { %820 = vmatpush.bf16.msra.mxu1 %v3587_v12 }
  0x96   : > { %984 = vmatpush.bf16.msrb.mxu3 %v3683_v8 }
  0x97   : > { %792 = vmatmul.bf16.vlgmr.msra.gmra.mxu0 %v5295_v13  ;;  %845 = vmatpush.bf16.msra.mxu2 %v3639_v37 }
  0x98   : > { %821 = vmatmul.bf16.vlgmr.msra.gmra.mxu1 %v5295_v13  ;;  %1236 = vmatpush.bf16.msrb.mxu0 %v5307_v25 }
  0x99   : > { %3725 = vmatmul.msk.bf16.vlgmr.msrb.gmra.mxu3 %vm959_vm0, %v5289_v47  ;;  %1397 = vmatpush.bf16.msrb.mxu1 %v5307_v25 }
  0x9a   : > { %995 = vmatpush.bf16.msra.mxu3 %v3723_v31 }
  0x9b   : > { %846 = vmatpush.bf16.msra.mxu2 %v3627_v40 }
  0x9c   : > { %1237 = vmatpush.bf16.msrb.mxu0 %v5310_v26 }
  0x9d   : > { %1398 = vmatpush.bf16.msrb.mxu1 %v5310_v26 }
  0x9e   : > { %996 = vmatpush.bf16.msra.mxu3 %v3711_v48 }
  0x9f   : > { %847 = vmatpush.bf16.msra.mxu2 %v3615_v46 }
  0xa0   : > { %1238 = vmatpush.bf16.msrb.mxu0 %v4156_v35 }
  0xa1   : > { %1399 = vmatpush.bf16.msrb.mxu1 %v4156_v35 }
  0xa2   : > { %997 = vmatpush.bf16.msra.mxu3 %v3699_v54 }
  0xa3   : > { %848 = vmatpush.bf16.msra.mxu2 %v3603_v58 }
  0xa4   : > { %1239 = vmatpush.bf16.msrb.mxu0 %v4155_v45 }
  0xa5   : > { %1400 = vmatpush.bf16.msrb.mxu1 %v4155_v45 }
  0xa6   : > { %998 = vmatpush.bf16.msra.mxu3 %v3687_v62 }
  0xa7   : > { %797 = vmatmul.bf16.gmra.mxu0 %v5303_v16  ;;  %849 = vmatpush.bf16.msra.mxu2 %v3591_v0 }
  0xa8   : > { %826 = vmatmul.bf16.gmra.mxu1 %v5303_v16  ;;  %1240 = vmatpush.bf16.msrb.mxu0 %v4154_v53 }
  0xa9   : > { %1401 = vmatpush.bf16.msrb.mxu1 %v4154_v53  ;;  %3726 = vmatmul.msk.bf16.vlgmr.msra.gmra.mxu3 %vm959_vm0, %v5289_v47  ;;  %v4152_v47 = vld [vmem:[#allocation15 + $0x8] sm:$0xff] }
  0xaa   : > { %1082 = vmatpush.bf16.msrb.mxu3 %v5307_v25  ;;  %850 = vmatmul.bf16.vlgmr.msra.gmra.mxu2 %v5295_v13 }
  0xab   : > { %1443 = vmatpush.bf16.msrb.mxu2 %v5307_v25 }
  0xac   : > { %1241 = vmatpush.bf16.msrb.mxu0 %v4153_v1 }
  0xad   : > { %1402 = vmatpush.bf16.msrb.mxu1 %v4153_v1 }
  0xae   : > { %1083 = vmatpush.bf16.msrb.mxu3 %v5310_v26 }
  0xaf   : > { %1444 = vmatpush.bf16.msrb.mxu2 %v5310_v26 }
  0xb0   : > { %1242 = vmatpush.bf16.msrb.mxu0 %v4152_v47 }
  0xb1   : > { %1403 = vmatpush.bf16.msrb.mxu1 %v4152_v47 }
  0xb2   : > { %1084 = vmatpush.bf16.msrb.mxu3 %v4156_v35 }
  0xb3   : > { %1445 = vmatpush.bf16.msrb.mxu2 %v4156_v35 }
  0xb4   : > { %1243 = vmatpush.bf16.msrb.mxu0 %v4151_v2 }
  0xb5   : > { %1404 = vmatpush.bf16.msrb.mxu1 %v4151_v2 }
  0xb6   : > { %1085 = vmatpush.bf16.msrb.mxu3 %v4155_v45 }
  0xb7   : > { %802 = vmatmul.bf16.gmra.mxu0 %v5317_v36  ;;  %1446 = vmatpush.bf16.msrb.mxu2 %v4155_v45 }
  0xb8   : > { %831 = vmatmul.bf16.gmra.mxu1 %v5317_v36 }
  0xba   : > { %1086 = vmatpush.bf16.msrb.mxu3 %v4154_v53  ;;  %855 = vmatmul.bf16.gmra.mxu2 %v5303_v16  ;;  %v890_v16 = vperm.slane %v5332_v3, 1 }
  0xbb   : > { %1447 = vmatpush.bf16.msrb.mxu2 %v4154_v53 }
  0xbe   : > { %1087 = vmatpush.bf16.msrb.mxu3 %v4153_v1 }
  0xbf   : > { %1448 = vmatpush.bf16.msrb.mxu2 %v4153_v1  ;;  %v891_v1 = vperm.slane %v5332_v3, 2 }
  0xc2   : > { %1088 = vmatpush.bf16.msrb.mxu3 %v4152_v47 }
  0xc3   : > { %1449 = vmatpush.bf16.msrb.mxu2 %v4152_v47 }
  0xc6   : > { %1089 = vmatpush.bf16.msrb.mxu3 %v4151_v2 }
  0xc7   : > { %807 = vmatmul.bf16.gmra.mxu0 %v620_v63  ;;  %1450 = vmatpush.bf16.msrb.mxu2 %v4151_v2 }
  0xc8   : > { %836 = vmatmul.bf16.gmra.mxu1 %v620_v63 }
  0xca   : > { %860 = vmatmul.bf16.gmra.mxu2 %v5317_v36 }
  0xda   : > { %865 = vmatmul.bf16.gmra.mxu2 %v620_v63 }
 0x10c   : > { %v972_v4 = vpop.f32.mrf.mxu3 }
 0x10d   : > { %v5335_v6 = vadd.f32 %v972_v4, %v889_v5 }
 0x10f   : > { %v1394_v8 = vmul.f32 %v5335_v6, %v5335_v6 }
 0x114   : > { %v974_v7 = vpop.f32.mrf.mxu3  ;;  %v5341_v10 = vpop.f32.mrf.mxu0 }
 0x115   : > { %v5339_v9 = vadd.f32 %v974_v7, %v889_v5  ;;  %v5343_v11 = vpop.f32.mrf.mxu1  ;;  %v1022_v14 = vmul.f32 %v5341_v10, %v5341_v10 }
 0x116   : > { %v1224_v20 = vmul.f32 %v5343_v11, %v5343_v11 }
 0x117   : > { %v1395_v12 = vmul.f32 %v5339_v9, %v5339_v9 }
 0x119   : > { %v1396_v13 = vpack.c.bf16 %v1395_v12, %v1394_v8 }
 0x11b   : > { %1405 = vmatmul.bf16.vlgmr.msrb.gmra.mxu1 %v1396_v13 }
 0x11c   : > { %v986_v15 = vpop.f32.mrf.mxu3  ;;  %v5350_v17 = vpop.f32.mrf.mxu0 }
 0x11d   : > { %v1023_v18 = vmul.f32 %v5350_v17, %v5350_v17  ;;  %v5354_v19 = vpop.f32.mrf.mxu1  ;;  %v5360_v23 = vadd.f32 %v986_v15, %v890_v16 }
 0x11e   : > { %v1225_v21 = vmul.f32 %v5354_v19, %v5354_v19 }
 0x11f   : > { %v1030_v22 = vpack.c.bf16 %v1023_v18, %v1022_v14  ;;  %v1440_v26 = vmul.f32 %v5360_v23, %v5360_v23 }
 0x120   : > { %v1232_v24 = vpack.c.bf16 %v1225_v21, %v1224_v20 }
 0x121   : > { %1090 = vmatmul.bf16.vlgmr.msrb.gmra.mxu3 %v1030_v22 }
 0x122   : > { %1244 = vmatmul.bf16.vlgmr.msrb.gmra.mxu0 %v1232_v24 }
 0x124   : > { %v988_v25 = vpop.f32.mrf.mxu3  ;;  %v5366_v28 = vpop.f32.mrf.mxu0 }
 0x125   : > { %v5364_v27 = vadd.f32 %v988_v25, %v890_v16  ;;  %v5368_v29 = vpop.f32.mrf.mxu1  ;;  %v1024_v32 = vmul.f32 %v5366_v28, %v5366_v28 }
 0x126   : > { %v1226_v36 = vmul.f32 %v5368_v29, %v5368_v29 }
 0x127   : > { %v1441_v30 = vmul.f32 %v5364_v27, %v5364_v27 }
 0x129   : > { %v1442_v31 = vpack.c.bf16 %v1441_v30, %v1440_v26 }
 0x12b   : > { %1451 = vmatmul.bf16.vlgmr.msrb.gmra.mxu2 %v1442_v31 }
 0x12c   : > { %v5374_v33 = vpop.f32.mrf.mxu0  ;;  %v1000_v47 = vpop.f32.mrf.mxu3 }
 0x12d   : > { %v5376_v34 = vpop.f32.mrf.mxu1  ;;  %v1025_v35 = vmul.f32 %v5374_v33, %v5374_v33  ;;  %v851_v57 = vpop.f32.mrf.mxu2  ;;  %v1001_v2 = vadd.f32 %v1000_v47, %v891_v1 }
 0x12e   : > { %v1227_v37 = vmul.f32 %v5376_v34, %v5376_v34  ;;  %v1378_v60 = vpack.c.bf16 %v851_v57, %v851_v57 }
 0x12f   : > { %v1031_v38 = vpack.c.bf16 %v1025_v35, %v1024_v32  ;;  %v1486_v4 = vpack.c.bf16 %v1001_v2, %v1001_v2 }
 0x130   : > { %v1233_v39 = vpack.c.bf16 %v1227_v37, %v1226_v36  ;;  %1386 = vst [vmem:[#allocation2 + $0x8] sm:$0xf] %v1378_v60 }
 0x131   : > { %1095 = vmatmul.bf16.gmra.mxu3 %v1031_v38  ;;  %1488 = vst [vmem:[#allocation2 + $0x68] sm:$0xf] %v1486_v4 }
 0x132   : > { %1249 = vmatmul.bf16.gmra.mxu0 %v1233_v39 }
 0x134   : > { %v5384_v40 = vpop.f32.mrf.mxu0  ;;  %v5419_v26 = vpop.f32.mrf.mxu3 }
 0x135   : > { %v5386_v41 = vpop.f32.mrf.mxu1  ;;  %v1026_v42 = vmul.f32 %v5384_v40, %v5384_v40  ;;  %v853_v63 = vpop.f32.mrf.mxu2 }
 0x136   : > { %v1228_v46 = vmul.f32 %v5386_v41, %v5386_v41  ;;  %v1379_v0 = vpack.c.bf16 %v853_v63, %v853_v63 }
 0x138   : > { %1387 = vst [vmem:[#allocation2 + $0x14] sm:$0xf] %v1379_v0 }
 0x13c   : > { %v5390_v43 = vpop.f32.mrf.mxu0 }
 0x13d   : > { %v5392_v44 = vpop.f32.mrf.mxu1  ;;  %v1027_v45 = vmul.f32 %v5390_v43, %v5390_v43  ;;  %v856_v5 = vpop.f32.mrf.mxu2 }
 0x13e   : > { %v1229_v48 = vmul.f32 %v5392_v44, %v5392_v44  ;;  %v1380_v7 = vpack.c.bf16 %v856_v5, %v856_v5 }
 0x13f   : > { %v1032_v49 = vpack.c.bf16 %v1027_v45, %v1026_v42 }
 0x140   : > { %v1234_v50 = vpack.c.bf16 %v1229_v48, %v1228_v46  ;;  %1388 = vst [vmem:[#allocation2 + $0x20] sm:$0xf] %v1380_v7  ;;  %v5427_v46 = vld [vmem:[%s6567_s6] sm:$0xf] }
 0x141   : > { %1100 = vmatmul.bf16.gmra.mxu3 %v1032_v49  ;;  %v5435_v63 = vperm.slane %v5427_v46, 1 }
 0x142   : > { %1254 = vmatmul.bf16.gmra.mxu0 %v1234_v50 }
 0x144   : > { %v5400_v51 = vpop.f32.mrf.mxu0 }
 0x145   : > { %v5402_v52 = vpop.f32.mrf.mxu1  ;;  %v1028_v53 = vmul.f32 %v5400_v51, %v5400_v51  ;;  %v858_v8 = vpop.f32.mrf.mxu2 }
 0x146   : > { %v1230_v58 = vmul.f32 %v5402_v52, %v5402_v52  ;;  %v1381_v12 = vpack.c.bf16 %v858_v8, %v858_v8 }
 0x148   : > { %1389 = vst [vmem:[#allocation2 + $0x2c] sm:$0xf] %v1381_v12 }
 0x14c   : > { %v5406_v54 = vpop.f32.mrf.mxu0 }
 0x14d   : > { %v5408_v55 = vpop.f32.mrf.mxu1  ;;  %v1029_v56 = vmul.f32 %v5406_v54, %v5406_v54  ;;  %v861_v13 = vpop.f32.mrf.mxu2 }
 0x14e   : > { %v1231_v59 = vmul.f32 %v5408_v55, %v5408_v55  ;;  %v1382_v14 = vpack.c.bf16 %v861_v13, %v861_v13 }
 0x14f   : > { %v1033_v61 = vpack.c.bf16 %v1029_v56, %v1028_v53 }
 0x150   : > { %v1235_v62 = vpack.c.bf16 %v1231_v59, %v1230_v58  ;;  %1390 = vst [vmem:[#allocation2 + $0x38] sm:$0xf] %v1382_v14  ;;  %v1433_v59 = vperm.slane %v5427_v46, 2 }
 0x151   : > { %1105 = vmatmul.bf16.gmra.mxu3 %v1033_v61 }
 0x152   : > { %1259 = vmatmul.bf16.gmra.mxu0 %v1235_v62 }
 0x155   : > { %v863_v15 = vpop.f32.mrf.mxu2 }
 0x156   : > { %v1383_v16 = vpack.c.bf16 %v863_v15, %v863_v15 }
 0x158   : > { %1391 = vst [vmem:[#allocation2 + $0x44] sm:$0xf] %v1383_v16 }
 0x15d   : > { %v866_v18 = vpop.f32.mrf.mxu2 }
 0x15e   : > { %v1384_v20 = vpack.c.bf16 %v866_v18, %v866_v18 }
 0x160   : > { %1392 = vst [vmem:[#allocation2 + $0x50] sm:$0xf] %v1384_v20 }
 0x165   : > { %v868_v24 = vpop.f32.mrf.mxu2 }
 0x166   : > { %v1385_v25 = vpack.c.bf16 %v868_v24, %v868_v24 }
 0x168   : > { %1393 = vst [vmem:[#allocation2 + $0x5c] sm:$0xf] %v1385_v25 }
 0x198   : > { %v1406_v21 = vpop.f32.mrf.mxu1 }
 0x199   : > { %v1407_v22 = vadd.f32 1e-05, %v1406_v21 }
 0x19b   : > { %4394 = vrsqrt.f32 %v1407_v22  ;;  %vm1417_vm1 = vweird.f32 %v1407_v22 }
 0x19f   : > { %v1245_v30 = vpop.f32.mrf.mxu0 }
 0x1a0   : > { %v1408_v31 = vpop.f32.mrf.mxu1  ;;  %v1246_v35 = vadd.f32 1e-05, %v1245_v30 }
 0x1a1   : > { %v4395_v32 = vpop.eup %4394  ;;  %v5421_v36 = vadd.f32 1e-05, %v1408_v31 }
 0x1a2   : > { %v1412_v37 = vmul.f32 %v4395_v32, %v1407_v22  ;;  %4396 = vrsqrt.f32 %v1246_v35  ;;  %vm1418_vm2 = vweird.f32 %v4395_v32  ;;  %vm1271_vm4 = vweird.f32 %v1246_v35 }
 0x1a3   : > { %4398 = vrsqrt.f32 %v5421_v36  ;;  %vm1419_vm3 = vmor %vm1417_vm1, %vm1418_vm2  ;;  %vm1427_vm5 = vweird.f32 %v5421_v36 }
 0x1a4   : > { %v1413_v38 = vmul.f32 %v4395_v32, %v1412_v37  ;;  %v1091_v39 = vpop.f32.mrf.mxu3  ;;  %v5460_v37 = vperm.slane %v5427_v46, 0 }
 0x1a5   : > { %v1092_v45 = vadd.f32 1e-05, %v1091_v39 }
 0x1a6   : > { %v1414_v42 = vmul.f32 0.5, %v1413_v38  ;;  %v5465_v38 = vadd.f32 %v5419_v26, %v891_v1 }
 0x1a7   : > { %4400 = vrsqrt.f32 %v1092_v45  ;;  %v1247_v49 = vpop.f32.mrf.mxu0  ;;  %vm1117_vm8 = vweird.f32 %v1092_v45 }
 0x1a8   : > { %v1415_v48 = vsub.f32 1.5, %v1414_v42  ;;  %v4397_v50 = vpop.eup %4396  ;;  %v5429_v53 = vadd.f32 1e-05, %v1247_v49 }
 0x1a9   : > { %v4399_v56 = vpop.eup %4398  ;;  %v1266_v58 = vmul.f32 %v4397_v50, %v1246_v35  ;;  %vm1272_vm6 = vweird.f32 %v4397_v50 }
 0x1aa   : > { %v1416_v57 = vmul.f32 %v4395_v32, %v1415_v48  ;;  %v1422_v60 = vmul.f32 %v4399_v56, %v5421_v36  ;;  %4402 = vrsqrt.f32 %v5429_v53  ;;  %vm1428_vm7 = vweird.f32 %v4399_v56  ;;  %vm1273_vm9 = vmor %vm1271_vm4, %vm1272_vm6 }
 0x1ab   : > { %v1267_v62 = vmul.f32 %v4397_v50, %v1266_v58  ;;  %vm1429_vm11 = vmor %vm1427_vm5, %vm1428_vm7  ;;  %vm1281_vm12 = vweird.f32 %v5429_v53 }
 0x1ac   : > { %v1420_v61 = vsel %vm1419_vm3, %v4395_v32, %v1416_v57  ;;  %v1423_v47 = vmul.f32 %v4399_v56, %v1422_v60  ;;  %v1093_v2 = vpop.f32.mrf.mxu3 }
 0x1ad   : > { %v1431_v0 = vmul.f32 %v1420_v61, %v5335_v6  ;;  %v5438_v4 = vpop.eup %4400  ;;  %v1268_v5 = vmul.f32 0.5, %v1267_v62  ;;  %v5441_v7 = vadd.f32 1e-05, %v1093_v2 }
 0x1ae   : > { %v1452_v8 = vpop.f32.mrf.mxu2  ;;  %v1424_v13 = vmul.f32 0.5, %v1423_v47  ;;  %v1112_v14 = vmul.f32 %v5438_v4, %v1092_v45  ;;  %vm1118_vm10 = vweird.f32 %v5438_v4 }
 0x1af   : > { %v1434_v12 = vmul.f32 %v1433_v59, %v1431_v0  ;;  %v1269_v15 = vsub.f32 1.5, %v1268_v5  ;;  %4404 = vrsqrt.f32 %v5441_v7  ;;  %v5445_v6 = vadd.f32 1e-05, %v1452_v8  ;;  %v1250_v16 = vpop.f32.mrf.mxu0  ;;  %vm5477_vm13 = vmor %vm1117_vm8, %vm1118_vm10 }
 0x1b0   : > { %v5447_v18 = vpop.eup %4402  ;;  %v1425_v21 = vsub.f32 1.5, %v1424_v13  ;;  %v1113_v22 = vmul.f32 %v5438_v4, %v1112_v14  ;;  %v5450_v24 = vadd.f32 1e-05, %v1250_v16  ;;  %vm1127_vm14 = vweird.f32 %v5441_v7 }
 0x1b1   : > { %v1436_v20 = vpack.c.bf16 %v1434_v12, %v1434_v12  ;;  %v1270_v25 = vmul.f32 %v4397_v50, %v1269_v15  ;;  %v1276_v30 = vmul.f32 %v5447_v18, %v5429_v53  ;;  %4406 = vrsqrt.f32 %v5445_v6 }
 0x1b2   : > { %v1426_v31 = vmul.f32 %v4399_v56, %v1425_v21  ;;  %v1114_v32 = vmul.f32 0.5, %v1113_v22  ;;  %4408 = vrsqrt.f32 %v5450_v24  ;;  %vm1282_vm15 = vweird.f32 %v5447_v18 }
 0x1b3   : > { %1438 = vst [vmem:[#allocation2 + $0x60] sm:$0xf] %v1436_v20  ;;  %v1274_v39 = vsel %vm1273_vm9, %v4397_v50, %v1270_v25  ;;  %v1277_v35 = vmul.f32 %v5447_v18, %v1276_v30  ;;  %vm1463_vm0 = vweird.f32 %v5445_v6  ;;  %vm1283_vm2 = vmor %vm1281_vm12, %vm1282_vm15  ;;  %vm1291_vm5 = vweird.f32 %v5450_v24 }
 0x1b4   : > { %v1345_v42 = vmul.f32 %v1274_v39, %v5343_v11  ;;  %v1430_v48 = vsel %vm1429_vm11, %v4399_v56, %v1426_v31  ;;  %v1115_v49 = vsub.f32 1.5, %v1114_v32  ;;  %v1096_v57 = vpop.f32.mrf.mxu3 }
 0x1b5   : > { %v5473_v58 = vpop.eup %4404  ;;  %v1432_v3 = vmul.f32 %v1430_v48, %v5339_v9  ;;  %v1278_v26 = vmul.f32 0.5, %v1277_v35  ;;  %v5482_v36 = vadd.f32 1e-05, %v1096_v57  ;;  %v1479_v35 = vperm.slane %v5427_v46, 3 }
 0x1b6   : > { %v1354_v11 = vmul.f32 %v5435_v63, %v1345_v42  ;;  %v1116_v50 = vmul.f32 %v5438_v4, %v1115_v49  ;;  %v1122_v56 = vmul.f32 %v5473_v58, %v5441_v7  ;;  %v1454_v8 = vpop.f32.mrf.mxu2  ;;  %vm1128_vm1 = vweird.f32 %v5473_v58 }
 0x1b7   : > { %v5489_v9 = vpop.eup %4406  ;;  %v1435_v45 = vmul.f32 %v1433_v59, %v1432_v3  ;;  %v1279_v60 = vsub.f32 1.5, %v1278_v26  ;;  %4410 = vrsqrt.f32 %v5482_v36  ;;  %v1252_v61 = vpop.f32.mrf.mxu0  ;;  %v5514_v20 = vadd.f32 1e-05, %v1454_v8  ;;  %vm5526_vm4 = vmor %vm1127_vm14, %vm1128_vm1 }
 0x1b8   : > { %v5493_v62 = vpop.eup %4408  ;;  %v1362_v0 = vpack.c.bf16 %v1354_v11, %v1354_v11  ;;  %v1120_v47 = vsel %vm5477_vm13, %v5438_v4, %v1116_v50  ;;  %v1123_v2 = vmul.f32 %v5473_v58, %v1122_v56  ;;  %v1458_v5 = vmul.f32 %v5489_v9, %v5445_v6 }
 0x1b9   : > { %v1437_v59 = vpack.c.bf16 %v1435_v45, %v1435_v45  ;;  %v1191_v12 = vmul.f32 %v1120_v47, %v5341_v10  ;;  %v1280_v13 = vmul.f32 %v5447_v18, %v1279_v60  ;;  %vm1464_vm3 = vweird.f32 %v5489_v9 }
 0x1ba   : > { %1370 = vst [vmem:[#allocation2 + $0x4] sm:$0xf] %v1362_v0  ;;  %v1124_v4 = vmul.f32 0.5, %v1123_v2  ;;  %v1459_v14 = vmul.f32 %v5489_v9, %v1458_v5  ;;  %v1286_v15 = vmul.f32 %v5493_v62, %v5450_v24  ;;  %v5516_v21 = vadd.f32 1e-05, %v1252_v61  ;;  %vm5539_vm6 = vmor %vm1463_vm0, %vm1464_vm3 }
 0x1bb   : > { %1439 = vst [vmem:[#allocation2 + $0x6c] sm:$0xf] %v1437_v59  ;;  %v1200_v10 = vmul.f32 %v5460_v37, %v1191_v12  ;;  %v1284_v16 = vsel %vm1283_vm2, %v5447_v18, %v1280_v13  ;;  %4412 = vrsqrt.f32 %v5514_v20  ;;  %vm1292_vm7 = vweird.f32 %v5493_v62  ;;  %v3847_v60 = vld [vmem:[#allocation2 + $0x60] sm:$0xf] }
 0x1bc   : > { %v1346_v53 = vmul.f32 %v1284_v16, %v5354_v19  ;;  %v1125_v22 = vsub.f32 1.5, %v1124_v4  ;;  %v1460_v25 = vmul.f32 0.5, %v1459_v14  ;;  %v1287_v30 = vmul.f32 %v5493_v62, %v1286_v15  ;;  %v1098_v31 = vpop.f32.mrf.mxu3  ;;  %vm1293_vm10 = vmor %vm1291_vm5, %vm1292_vm7 }
 0x1bd   : > { %v5520_v32 = vpop.eup %4410  ;;  %v1208_v39 = vpack.c.bf16 %v1200_v10, %v1200_v10  ;;  %4414 = vrsqrt.f32 %v5516_v21  ;;  %v5547_v3 = vadd.f32 1e-05, %v1098_v31  ;;  %vm1137_vm8 = vweird.f32 %v5482_v36 }
 0x1be   : > { %v1355_v19 = vmul.f32 %v5435_v63, %v1346_v53  ;;  %v1126_v42 = vmul.f32 %v5473_v58, %v1125_v22  ;;  %v1461_v48 = vsub.f32 1.5, %v1460_v25  ;;  %v1288_v49 = vmul.f32 0.5, %v1287_v30 }
 0x1bf   : > { %1216 = vst [vmem:[#allocation2] sm:$0xf] %v1208_v39  ;;  %v1132_v57 = vmul.f32 %v5520_v32, %v5482_v36  ;;  %v1255_v1 = vpop.f32.mrf.mxu0  ;;  %4416 = vrsqrt.f32 %v5547_v3  ;;  %vm1138_vm9 = vweird.f32 %v5520_v32  ;;  %vm1473_vm11 = vweird.f32 %v5514_v20 }
 0x1c0   : > { %v1363_v26 = vpack.c.bf16 %v1355_v19, %v1355_v19  ;;  %v1130_v11 = vsel %vm5526_vm4, %v5473_v58, %v1126_v42  ;;  %v1462_v6 = vmul.f32 %v5489_v9, %v1461_v48  ;;  %v1289_v50 = vsub.f32 1.5, %v1288_v49  ;;  %vm5587_vm12 = vmor %vm1137_vm8, %vm1138_vm9 }
 0x1c1   : > { %v1192_v56 = vmul.f32 %v1130_v11, %v5350_v17  ;;  %v1133_v45 = vmul.f32 %v5520_v32, %v1132_v57  ;;  %v5562_v58 = vadd.f32 1e-05, %v1255_v1  ;;  %v5564_v17 = vpop.eup %4412  ;;  %vm1301_vm13 = vweird.f32 %v5516_v21  ;;  %v3991_v11 = vld [vmem:[#allocation2 + $0x4] sm:$0xf] }
 0x1c2   : > { %1371 = vst [vmem:[#allocation2 + $0x10] sm:$0xf] %v1363_v26  ;;  %v1466_v61 = vsel %vm5539_vm6, %v5489_v9, %v1462_v6  ;;  %v1290_v0 = vmul.f32 %v5493_v62, %v1289_v50  ;;  %v4178_v47 = vld [vmem:[#allocation2 + $0x68] sm:$0xf0]  ;;  %v1468_v12 = vmul.f32 %v5564_v17, %v5514_v20  ;;  %vm1147_vm14 = vweird.f32 %v5547_v3 }
 0x1c3   : > { %v1201_v2 = vmul.f32 %v5460_v37, %v1192_v56  ;;  %v1477_v5 = vmul.f32 %v1466_v61, %v5360_v23  ;;  %v1134_v8 = vmul.f32 0.5, %v1133_v45  ;;  %v3848_v9 = vor.u32 %v4178_v47, %v3847_v60  ;;  %v5577_v4 = vpop.eup %4414 }
 0x1c4   : > { %v1294_v59 = vsel %vm1293_vm10, %v5493_v62, %v1290_v0  ;;  %4418 = vrsqrt.f32 %v5562_v58  ;;  %v1101_v13 = vpop.f32.mrf.mxu3  ;;  %v1469_v10 = vmul.f32 %v5564_v17, %v1468_v12  ;;  %v1296_v16 = vmul.f32 %v5577_v4, %v5516_v21  ;;  %v3921_v0 = vld [vmem:[#allocation2 + $0x4] sm:$0xf] }
 0x1c5   : > { %v1209_v23 = vpack.c.bf16 %v1201_v2, %v1201_v2  ;;  %v1480_v14 = vmul.f32 %v1479_v35, %v1477_v5  ;;  %v1347_v24 = vmul.f32 %v1294_v59, %v5368_v29  ;;  %v1135_v15 = vsub.f32 1.5, %v1134_v8  ;;  %1909 = vrot.lane.b32.xlu0 %v3848_v9, %s5012_s27  ;;  %v5596_v29 = vpop.eup %4416 }
 0x1c6   : > { %v5600_v25 = vadd.f32 1e-05, %v1101_v13  ;;  %v1470_v31 = vmul.f32 0.5, %v1469_v10  ;;  %vm1474_vm15 = vweird.f32 %v5564_v17  ;;  %v1297_v39 = vmul.f32 %v5577_v4, %v1296_v16 }
 0x1c7   : > { %1217 = vst [vmem:[#allocation2 + $0xc] sm:$0xf] %v1209_v23  ;;  %v1482_v53 = vpack.c.bf16 %v1480_v14, %v1480_v14  ;;  %v1356_v22 = vmul.f32 %v5435_v63, %v1347_v24  ;;  %v1136_v36 = vmul.f32 %v5520_v32, %v1135_v15  ;;  %v1257_v30 = vpop.f32.mrf.mxu0  ;;  %v1142_v18 = vmul.f32 %v5596_v29, %v5547_v3  ;;  %vm1475_vm2 = vmor %vm1473_vm11, %vm1474_vm15  ;;  %v3851_v23 = vld [vmem:[#allocation2 + $0x4] sm:$0xf] }
 0x1c8   : > { %vm1302_vm0 = vweird.f32 %v5577_v4  ;;  %4420 = vrsqrt.f32 %v5600_v25  ;;  %v1471_v57 = vsub.f32 1.5, %v1470_v31  ;;  %v1298_v1 = vmul.f32 0.5, %v1297_v39 }
 0x1c9   : > { %1484 = vst [vmem:[#allocation2 + $0x64] sm:$0xf] %v1482_v53  ;;  %v1364_v19 = vpack.c.bf16 %v1356_v22, %v1356_v22  ;;  %v1140_v42 = vsel %vm5587_vm12, %v5520_v32, %v1136_v36  ;;  %v4209_v48 = vld [vmem:[#allocation2 + $0xc] sm:$0xf0]  ;;  %v1143_v26 = vmul.f32 %v5596_v29, %v1142_v18  ;;  %vm1148_vm1 = vweird.f32 %v5596_v29  ;;  %vm5636_vm4 = vmor %vm1301_vm13, %vm1302_vm0 }
 0x1ca   : > { %v5611_v49 = vpop.eup %4418  ;;  %v1193_v7 = vmul.f32 %v1140_v42, %v5366_v28  ;;  %v4194_v6 = vld [vmem:[#allocation2 + $0xc] sm:$0xf0]  ;;  %v5618_v50 = vadd.f32 1e-05, %v1257_v30  ;;  %v3992_v56 = vor.u32 %v4209_v48, %v3991_v11  ;;  %v1472_v60 = vmul.f32 %v5564_v17, %v1471_v57  ;;  %vm5647_vm5 = vmor %vm1147_vm14, %vm1148_vm1  ;;  %v5691_v11 = vld [vmem:[#allocation2 + $0x58] sm:$0xf0] }
 0x1cb   : > { %1372 = vst [vmem:[#allocation2 + $0x1c] sm:$0xf] %v1364_v19  ;;  %v1306_v32 = vmul.f32 %v5611_v49, %v5562_v58  ;;  %v1299_v28 = vsub.f32 1.5, %v1298_v1  ;;  %v1144_v61 = vmul.f32 0.5, %v1143_v26  ;;  %v4179_v47 = vld [vmem:[#allocation2 + $0xc] sm:$0xf0]  ;;  %vm1311_vm3 = vweird.f32 %v5562_v58 }
 0x1cc   : > { %v1202_v45 = vmul.f32 %v5460_v37, %v1193_v7  ;;  %v1103_v2 = vpop.f32.mrf.mxu3  ;;  %4422 = vrsqrt.f32 %v5618_v50  ;;  %2774 = vrot.lane.b32.xlu2 %v3992_v56, %s5013_s22  ;;  %v3922_v8 = vor.u32 %v4194_v6, %v3921_v0  ;;  %v1476_v59 = vsel %vm1475_vm2, %v5564_v17, %v1472_v60  ;;  %v3901_v26 = vld [vmem:[#allocation2] sm:$0xf] }
 0x1cd   : > { %v1307_v5 = vmul.f32 %v5611_v49, %v1306_v32  ;;  %v1300_v12 = vmul.f32 %v5577_v4, %v1299_v28  ;;  %v1145_v13 = vsub.f32 1.5, %v1144_v61  ;;  %v1478_v24 = vmul.f32 %v1476_v59, %v5364_v27  ;;  %v3831_v60 = vld [vmem:[#allocation2] sm:$0xf] }
 0x1ce   : > { %v1210_v9 = vpack.c.bf16 %v1202_v45, %v1202_v45  ;;  %v5640_v14 = vpop.eup %4420  ;;  %2355 = vrot.lane.b32.xlu1 %v3922_v8, %s5014_s8  ;;  %v3852_v21 = vor.u32 %v4179_v47, %v3851_v23  ;;  %v5652_v62 = vadd.f32 1e-05, %v1103_v2  ;;  %vm1312_vm6 = vweird.f32 %v5611_v49  ;;  %v4189_v19 = vld [vmem:[#allocation2 + $0x8] sm:$0xf0]  ;;  %v3971_v28 = vld [vmem:[#allocation2] sm:$0xf] }
 0x1cf   : > { %v1308_v15 = vmul.f32 0.5, %v1307_v5  ;;  %v1260_v10 = vpop.f32.mrf.mxu0  ;;  %v1304_v27 = vsel %vm5636_vm4, %v5577_v4, %v1300_v12  ;;  %v1146_v16 = vmul.f32 %v5596_v29, %v1145_v13  ;;  %v1152_v3 = vmul.f32 %v5640_v14, %v5600_v25  ;;  %vm1313_vm8 = vmor %vm1311_vm3, %vm1312_vm6  ;;  %v4204_v48 = vld [vmem:[#allocation2 + $0x8] sm:$0xf0] }
 0x1d0   : > { %1218 = vst [vmem:[#allocation2 + $0x18] sm:$0xf] %v1210_v9  ;;  %v1481_v53 = vmul.f32 %v1479_v35, %v1478_v24  ;;  %v1348_v22 = vmul.f32 %v1304_v27, %v5376_v34  ;;  %1936 = vrot.lane.b32.xlu0 %v3852_v21, %s5012_s27  ;;  %4424 = vrsqrt.f32 %v5652_v62  ;;  %vm1157_vm7 = vweird.f32 %v5600_v25  ;;  %v3822_v21 = vld [vmem:[#allocation2 + $0x68] sm:$0xf] }
 0x1d1   : > { %v1309_v36 = vsub.f32 1.5, %v1308_v15  ;;  %v1150_v4 = vsel %vm5647_vm5, %v5596_v29, %v1146_v16  ;;  %v1153_v30 = vmul.f32 %v5640_v14, %v1152_v3  ;;  %v5671_v31 = vadd.f32 1e-05, %v1260_v10  ;;  %v3797_v16 = vld [vmem:[#allocation2 + $0x64] sm:$0xf] }
 0x1d2   : > { %v5673_v39 = vpop.eup %4422  ;;  %v4240_v46 = vpack.c.bf16 %v5465_v38, %v1481_v53  ;;  %v1357_v34 = vmul.f32 %v5435_v63, %v1348_v22  ;;  %v1194_v35 = vmul.f32 %v1150_v4, %v5374_v33  ;;  %vm1158_vm9 = vweird.f32 %v5640_v14  ;;  %v4174_v38 = vld [vmem:[#allocation2 + $0x8] sm:$0xf0]  ;;  %v5687_v33 = vld [vmem:[#allocation2 + $0x50] sm:$0xf]  ;;  %v3925_v22 = vld [vmem:[#allocation2 + $0x1c] sm:$0xf] }
 0x1d3   : > { %v1310_v18 = vmul.f32 %v5611_v49, %v1309_v36  ;;  %v1154_v29 = vmul.f32 0.5, %v1153_v30  ;;  %v1316_v42 = vmul.f32 %v5673_v39, %v5618_v50  ;;  %4426 = vrsqrt.f32 %v5671_v31  ;;  %vm5701_vm10 = vmor %vm1157_vm7, %vm1158_vm9 }
 0x1d4   : > { %v1106_v7 = vpop.f32.mrf.mxu3  ;;  %4242 = vst [vmem:[#allocation2 + $0x70] sm:$0xff] %v4240_v46   ;;  %v1365_v57 = vpack.c.bf16 %v1357_v34, %v1357_v34  ;;  %v1203_v1 = vmul.f32 %v5460_v37, %v1194_v35  ;;  %v3902_v45 = vor.u32 %v4189_v19, %v3901_v26  ;;  %v3832_v47 = vor.u32 %v4174_v38, %v3831_v60 }
 0x1d5   : > { %v1314_v58 = vsel %vm1313_vm8, %v5611_v49, %v1310_v18  ;;  %v1155_v32 = vsub.f32 1.5, %v1154_v29  ;;  %v1317_v56 = vmul.f32 %v5673_v39, %v1316_v42  ;;  %v5705_v2 = vadd.f32 1e-05, %v1106_v7 }
 0x1d6   : > { %v1349_v6 = vmul.f32 %v1314_v58, %v5386_v41  ;;  %v5695_v61 = vpop.eup %4424  ;;  %1373 = vst [vmem:[#allocation2 + $0x28] sm:$0xf] %v1365_v57  ;;  %v1211_v0 = vpack.c.bf16 %v1203_v1, %v1203_v1  ;;  %v3972_v41 = vor.u32 %v4204_v48, %v3971_v28  ;;  %2320 = vrot.lane.b32.xlu2 %v3902_v45, %s5014_s8  ;;  %vm1322_vm11 = vweird.f32 %v5673_v39  ;;  %v4007_v1 = vld [vmem:[#allocation2 + $0x64] sm:$0xf] }
 0x1d7   : > { %v1262_v5 = vpop.f32.mrf.mxu0  ;;  %v1156_v9 = vmul.f32 %v5640_v14, %v1155_v32  ;;  %v1318_v59 = vmul.f32 0.5, %v1317_v56  ;;  %v1162_v12 = vmul.f32 %v5695_v61, %v5652_v62  ;;  %1901 = vrot.lane.b32.xlu1 %v3832_v47, %s5012_s27  ;;  %4428 = vrsqrt.f32 %v5705_v2  ;;  %v3867_v32 = vld [vmem:[#allocation2 + $0x64] sm:$0xf] }
 0x1d8   : > { %v1358_v8 = vmul.f32 %v5435_v63, %v1349_v6  ;;  %1219 = vst [vmem:[#allocation2 + $0x24] sm:$0xf] %v1211_v0  ;;  %2739 = vrot.lane.b32.xlu0 %v3972_v41, %s5013_s22  ;;  %v5716_v25 = vadd.f32 1e-05, %v1262_v5  ;;  %v3819_v20 = vor.u32 %v5691_v11, %v5687_v33  ;;  %vm1321_vm12 = vweird.f32 %v5618_v50  ;;  %v3814_v41 = vld [vmem:[#allocation2 + $0x38] sm:$0xf] }
 0x1d9   : > { %v5720_v13 = vpop.eup %4426  ;;  %v1160_v24 = vsel %vm5701_vm10, %v5640_v14, %v1156_v9  ;;  %v1319_v17 = vsub.f32 1.5, %v1318_v59  ;;  %v1163_v15 = vmul.f32 %v5695_v61, %v1162_v12  ;;  %vm1167_vm13 = vweird.f32 %v5652_v62  ;;  %vm1323_vm15 = vmor %vm1321_vm12, %vm1322_vm11  ;;  %v4171_v5 = vld [vmem:[#allocation2 + $0x40] sm:$0xf0]  ;;  %v3810_v12 = vld [vmem:[#allocation2 + $0x20] sm:$0xf] }
 0x1da   : > { %v1366_v23 = vpack.c.bf16 %v1358_v8, %v1358_v8  ;;  %v1195_v10 = vmul.f32 %v1160_v24, %v5384_v40  ;;  %v1326_v27 = vmul.f32 %v5720_v13, %v5671_v31  ;;  %4430 = vrsqrt.f32 %v5716_v25  ;;  %v4170_v11 = vld [vmem:[#allocation2 + $0x28] sm:$0xf0] }
 0x1db   : > { %v1320_v3 = vmul.f32 %v5673_v39, %v1319_v17  ;;  %v1164_v53 = vmul.f32 0.5, %v1163_v15  ;;  %vm1168_vm14 = vweird.f32 %v5695_v61  ;;  %v4173_v14 = vld [vmem:[#allocation2 + $0x70] sm:$0xf0]  ;;  %v4168_v4 = vld [vmem:[#allocation2 + $0x6c] sm:$0xf0]  ;;  %vm1576_vm0 = vcmask 261120  }
 0x1dc   : > { %1374 = vst [vmem:[#allocation2 + $0x34] sm:$0xf] %v1366_v23  ;;  %v1204_v40 = vmul.f32 %v5460_v37, %v1195_v10  ;;  %v1327_v50 = vmul.f32 %v5720_v13, %v1326_v27  ;;  %v3823_v36 = vor.u32 %v4173_v14, %v3822_v21  ;;  %v4213_v30 = vld [vmem:[#allocation2 + $0x6c] sm:$0xf0]  ;;  %vm1332_vm1 = vweird.f32 %v5720_v13  ;;  %v1108_v29 = vpop.f32.mrf.mxu3  ;;  %vm5747_vm2 = vmor %vm1167_vm13, %vm1168_vm14  ;;  %v3995_v10 = vld [vmem:[#allocation2 + $0x1c] sm:$0xf] }
 0x1dd   : > { %v1324_v46 = vsel %vm1323_vm15, %v5673_v39, %v1320_v3  ;;  %v1165_v34 = vsub.f32 1.5, %v1164_v53  ;;  %v3798_v35 = vor.u32 %v4168_v4, %v3797_v16  ;;  %v4195_v18 = vld [vmem:[#allocation2 + $0x24] sm:$0xf0]  ;;  %v4183_v19 = vld [vmem:[#allocation2 + $0x6c] sm:$0xf0]  ;;  %v5740_v42 = vpop.eup %4428  ;;  %vm1331_vm3 = vweird.f32 %v5671_v31 }
 0x1de   : > { %v1212_v38 = vpack.c.bf16 %v1204_v40, %v1204_v40  ;;  %v1350_v48 = vmul.f32 %v1324_v46, %v5392_v44  ;;  %v1328_v39 = vmul.f32 0.5, %v1327_v50  ;;  %1785 = vmatpush.bf16.msra.mxu2 %v3823_v36  ;;  %v3926_v57 = vor.u32 %v4195_v18, %v3925_v22  ;;  %vm1333_vm4 = vmor %vm1331_vm3, %vm1332_vm1  ;;  %v4180_v33 = vld [vmem:[#allocation2 + $0x24] sm:$0xf0]  ;;  %v4198_v27 = vld [vmem:[#allocation2 + $0x6c] sm:$0xf0] }
 0x1df   : > { %v1166_v58 = vmul.f32 %v5695_v61, %v1165_v34  ;;  %v1172_v26 = vmul.f32 %v5740_v42, %v5705_v2  ;;  %v1605_v6 = vsel %vm1576_vm0, %v3798_v35, 0  ;;  %v4008_v44 = vor.u32 %v4213_v30, %v4007_v1  ;;  %v3855_v53 = vld [vmem:[#allocation2 + $0x1c] sm:$0xf]  ;;  %v3937_v50 = vld [vmem:[#allocation2 + $0x64] sm:$0xf] }
 0x1e0   : > { %v5755_v56 = vpop.eup %4430  ;;  %1220 = vst [vmem:[#allocation2 + $0x30] sm:$0xf] %v1212_v38  ;;  %v1359_v62 = vmul.f32 %v5435_v63, %v1350_v48  ;;  %v1329_v45 = vsub.f32 1.5, %v1328_v39  ;;  %1610 = vmatpush.bf16.xpose.msra.mxu1 %v1605_v6  ;;  %2357 = vrot.lane.b32.xlu2 %v3926_v57, %s5014_s8  ;;  %v3868_v60 = vor.u32 %v4183_v19, %v3867_v32  ;;  %v5759_v28 = vadd.f32 1e-05, %v1108_v29 }
 0x1e1   : > { %v1170_v0 = vsel %vm5747_vm2, %v5695_v61, %v1166_v58  ;;  %v1173_v49 = vmul.f32 %v5740_v42, %v1172_v26  ;;  %v1336_v47 = vmul.f32 %v5755_v56, %v5716_v25  ;;  %2782 = vrot.lane.b32.xlu1 %v4008_v44, %s5013_s22  ;;  %vm1177_vm5 = vweird.f32 %v5705_v2  ;;  %v4210_v61 = vld [vmem:[#allocation2 + $0x24] sm:$0xf0]  ;;  %v4169_v19 = vld [vmem:[#allocation2 + $0x10] sm:$0xf0]  ;;  %v4190_v38 = vld [vmem:[#allocation2 + $0x20] sm:$0xf0] }
 0x1e2   : > { %v1367_v8 = vpack.c.bf16 %v1359_v62, %v1359_v62  ;;  %v1196_v9 = vmul.f32 %v1170_v0, %v5390_v43  ;;  %v1330_v59 = vmul.f32 %v5720_v13, %v1329_v45  ;;  %1944 = vrot.lane.b32.xlu0 %v3868_v60, %s5012_s27  ;;  %4432 = vrsqrt.f32 %v5759_v28  ;;  %1786 = vmatpush.bf16.msra.mxu2 %v3819_v20  ;;  %v3806_v18 = vld [vmem:[#allocation2 + $0x8] sm:$0xf]  ;;  %v4175_v57 = vld [vmem:[#allocation2 + $0x20] sm:$0xf0]  ;;  %v3835_v32 = vld [vmem:[#allocation2 + $0x18] sm:$0xf] }
 0x1e3   : > { %v1174_v31 = vmul.f32 0.5, %v1173_v49  ;;  %vm1178_vm6 = vweird.f32 %v5740_v42  ;;  %v1337_v43 = vmul.f32 %v5755_v56, %v1336_v47  ;;  %v3815_v17 = vor.u32 %v4171_v5, %v3814_v41  ;;  %v4205_v58 = vld [vmem:[#allocation2 + $0x20] sm:$0xf0]  ;;  %v3975_v45 = vld [vmem:[#allocation2 + $0x18] sm:$0xf] }
 0x1e4   : > { %1375 = vst [vmem:[#allocation2 + $0x40] sm:$0xf] %v1367_v8  ;;  %v1205_v23 = vmul.f32 %v5460_v37, %v1196_v9  ;;  %v1334_v24 = vsel %vm1333_vm4, %v5720_v13, %v1330_v59  ;;  %vm5788_vm7 = vmor %vm1177_vm5, %vm1178_vm6  ;;  %vm1342_vm8 = vweird.f32 %v5755_v56  ;;  %v3996_v13 = vor.u32 %v4210_v61, %v3995_v10  ;;  %v3929_v41 = vld [vmem:[#allocation2 + $0x34] sm:$0xf] }
 0x1e5   : > { %v1351_v20 = vmul.f32 %v1334_v24, %v5402_v52  ;;  %v1175_v15 = vsub.f32 1.5, %v1174_v31  ;;  %v1338_v21 = vmul.f32 0.5, %v1337_v43  ;;  %v3856_v40 = vor.u32 %v4180_v33, %v3855_v53  ;;  %v3859_v9 = vld [vmem:[#allocation2 + $0x34] sm:$0xf] }
 0x1e6   : > { %v1213_v16 = vpack.c.bf16 %v1205_v23, %v1205_v23  ;;  %1787 = vmatpush.bf16.msra.mxu2 %v3815_v17  ;;  %vm1341_vm9 = vweird.f32 %v5716_v25  ;;  %v3938_v2 = vor.u32 %v4198_v27, %v3937_v50  ;;  %v3811_v4 = vor.u32 %v4170_v11, %v3810_v12  ;;  %v3999_v11 = vld [vmem:[#allocation2 + $0x34] sm:$0xf]  ;;  %v4165_v50 = vld [vmem:[#allocation2 + $0x24] sm:$0xf0] }
 0x1e7   : > { %v1360_v52 = vmul.f32 %v5435_v63, %v1351_v20  ;;  %v1176_v14 = vmul.f32 %v5740_v42, %v1175_v15  ;;  %v1339_v22 = vsub.f32 1.5, %v1338_v21  ;;  %vm1343_vm10 = vmor %vm1341_vm9, %vm1342_vm8  ;;  %v3807_v39 = vor.u32 %v4169_v19, %v3806_v18  ;;  %v3909_v21 = vld [vmem:[#allocation2 + $0x30] sm:$0xf] }
 0x1e8   : > { %v4433_v36 = vpop.eup %4432  ;;  %1221 = vst [vmem:[#allocation2 + $0x3c] sm:$0xf] %v1213_v16  ;;  %2776 = vrot.lane.b32.xlu2 %v3996_v13, %s5013_s22  ;;  %vm1187_vm11 = vweird.f32 %v5759_v28  ;;  %v3836_v62 = vor.u32 %v4175_v57, %v3835_v32  ;;  %v3789_v16 = vld [vmem:[#allocation2 + $0x34] sm:$0xf]  ;;  %v3979_v18 = vld [vmem:[#allocation2 + $0x30] sm:$0xf] }
 0x1e9   : > { %v1368_v30 = vpack.c.bf16 %v1360_v52, %v1360_v52  ;;  %v1180_v46 = vsel %vm5788_vm7, %v5740_v42, %v1176_v14  ;;  %v1340_v34 = vmul.f32 %v5755_v56, %v1339_v22  ;;  %v1182_v35 = vmul.f32 %v4433_v36, %v5759_v28  ;;  %1938 = vrot.lane.b32.xlu1 %v3856_v40, %s5012_s27  ;;  %v3839_v40 = vld [vmem:[#allocation2 + $0x30] sm:$0xf]  ;;  %v4159_v57 = vld [vmem:[#allocation2 + $0x8] sm:$0xf0] }
 0x1ea   : > { %v1197_v29 = vmul.f32 %v1180_v46, %v5400_v51  ;;  %2363 = vrot.lane.b32.xlu0 %v3938_v2, %s5014_s8  ;;  %1788 = vmatpush.bf16.msra.mxu2 %v3811_v4  ;;  %vm1188_vm12 = vweird.f32 %v4433_v36  ;;  %v3905_v51 = vld [vmem:[#allocation2 + $0x18] sm:$0xf]  ;;  %v4164_v19 = vld [vmem:[#allocation2 + $0xc] sm:$0xf0]  ;;  %vm1641_vm15 = vcmask 654336   ;;  %vm2254_vm1 = vcmask 523520  }
 0x1eb   : > { %1376 = vst [vmem:[#allocation2 + $0x4c] sm:$0xf] %v1368_v30  ;;  %v1344_v25 = vsel %vm1343_vm10, %v5755_v56, %v1340_v34  ;;  %v1183_v42 = vmul.f32 %v4433_v36, %v1182_v35  ;;  %v3906_v44 = vor.u32 %v4190_v38, %v3905_v51  ;;  %vm1189_vm13 = vmor %vm1187_vm11, %vm1188_vm12  ;;  %v4181_v47 = vld [vmem:[#allocation2 + $0x3c] sm:$0xf0]  ;;  %v3785_v30 = vld [vmem:[#allocation2 + $0x1c] sm:$0xf] }
 0x1ec   : > { %v1206_v48 = vmul.f32 %v5460_v37, %v1197_v29  ;;  %v1352_v7 = vmul.f32 %v1344_v25, %v5408_v55  ;;  %v3976_v55 = vor.u32 %v4205_v58, %v3975_v45  ;;  %v3860_v59 = vor.u32 %v4181_v47, %v3859_v9  ;;  %v4166_v20 = vld [vmem:[#allocation2 + $0x3c] sm:$0xf0]  ;;  %v3781_v25 = vld [vmem:[#allocation2 + $0x4] sm:$0xf] }
 0x1ed   : > { %v1184_v1 = vmul.f32 0.5, %v1183_v42  ;;  %v3790_v3 = vor.u32 %v4166_v20, %v3789_v16  ;;  %v3786_v46 = vor.u32 %v4165_v50, %v3785_v30  ;;  %v3782_v42 = vor.u32 %v4164_v19, %v3781_v25  ;;  %v4160_v58 = vld [vmem:[#allocation2 + $0x20] sm:$0xf0] }
 0x1ee   : > { %v1214_v26 = vpack.c.bf16 %v1206_v48, %v1206_v48  ;;  %v1361_v6 = vmul.f32 %v5435_v63, %v1352_v7  ;;  %1789 = vmatpush.bf16.msra.mxu2 %v3807_v39  ;;  %v4196_v63 = vld [vmem:[#allocation2 + $0x3c] sm:$0xf0]  ;;  %v1493_v30 = vstv %s1490_s20  ;;  %vm3092_vm2 = vcmask 1048320   ;;  %s4892_s20 = scalar_lea.hbm %s4891_s21, 64 }
 0x1ef   : > { %v1185_v56 = vsub.f32 1.5, %v1184_v1  ;;  %v3930_v8 = vor.u32 %v4196_v63, %v3929_v41  ;;  %v4191_v33 = vld [vmem:[#allocation2 + $0x38] sm:$0xf0]  ;;  %v1599_v22 = vsel %vm1576_vm0, %v3790_v3, 0  ;;  %v1596_v35 = vsel %vm1576_vm0, %v3786_v46, 0  ;;  %p4893_p1 = scmp.ne.s32.totalorder %s4891_s21, %s4892_s20  ;;  %p4898_p9 = scmp.lt.s32.totalorder %s4896_s15, %s4892_s20 }
 0x1f0   : > { %1222 = vst [vmem:[#allocation2 + $0x48] sm:$0xf] %v1214_v26  ;;  %v1369_v60 = vpack.c.bf16 %v1361_v6, %v1361_v6  ;;  %2322 = vrot.lane.b32.xlu2 %v3906_v44, %s5014_s8  ;;  %v3910_v10 = vor.u32 %v4191_v33, %v3909_v21  ;;  %v4176_v52 = vld [vmem:[#allocation2 + $0x38] sm:$0xf0]  ;;  %v1593_v48 = vsel %vm1576_vm0, %v3782_v42, 0 }
 0x1f1   : > { %v1186_v0 = vmul.f32 %v4433_v36, %v1185_v56  ;;  %1903 = vrot.lane.b32.xlu1 %v3836_v62, %s5012_s27  ;;  %v4206_v34 = vld [vmem:[#allocation2 + $0x38] sm:$0xf0]  ;;  %v3761_v1 = vld [vmem:[#allocation2] sm:$0xf]  ;;  %v3765_v26 = vld [vmem:[#allocation2 + $0x18] sm:$0xf]  ;;  %p4894_p3 = pnand %p4893_p1, %p5192_p0  ;;  %p4899_p5 = por %p4898_p9, %p4897_p7 }
 0x1f2   : > { %1377 = vst [vmem:[#allocation2 + $0x58] sm:$0xf] %v1369_v60  ;;  %2741 = vrot.lane.b32.xlu0 %v3976_v55, %s5013_s22  ;;  %v3863_v43 = vld [vmem:[#allocation2 + $0x4c] sm:$0xf]  ;;  %v3980_v29 = vor.u32 %v4206_v34, %v3979_v18  ;;  %v3762_v51 = vor.u32 %v4159_v57, %v3761_v1  ;;  %v3766_v6 = vor.u32 %v4160_v58, %v3765_v26  ;;  %v4161_v44 = vld [vmem:[#allocation2 + $0x38] sm:$0xf0] }
 0x1f3   : > { %v1190_v28 = vsel %vm1189_vm13, %v4433_v36, %v1186_v0  ;;  %v3793_v12 = vld [vmem:[#allocation2 + $0x4c] sm:$0xf]  ;;  %v3840_v36 = vor.u32 %v4176_v52, %v3839_v40  ;;  %v3769_v56 = vld [vmem:[#allocation2 + $0x30] sm:$0xf]  ;;  %v1491_v40 = vlaneseq  ;;  %v5015_v34 = vmov -1e+30   ;;  %p4895_p13 = pneg %p4894_p3 }
 0x1f4   : > { %v1198_v49 = vmul.f32 %v1190_v28, %v5406_v54  ;;  %v4211_v54 = vld [vmem:[#allocation2 + $0x3c] sm:$0xf0]  ;;  %v3933_v13 = vld [vmem:[#allocation2 + $0x4c] sm:$0xf]  ;;  %v3770_v62 = vor.u32 %v4161_v44, %v3769_v56 }
 0x1f5   : > { %v4000_v15 = vor.u32 %v4211_v54, %v3999_v11  ;;  %v4003_v2 = vld [vmem:[#allocation2 + $0x4c] sm:$0xf]  ;;  %p4900_p8 = pnand %p4899_p5, %p4895_p13 }
 0x1f6   : > { %v1207_v5 = vmul.f32 %v5460_v37, %v1198_v49 }
 0x1f7   : > { %v3843_v7 = vld [vmem:[#allocation2 + $0x48] sm:$0xf] }
 0x1f8   : > { %v1215_v31 = vpack.c.bf16 %v1207_v5, %v1207_v5  ;;  %2359 = vrot.lane.b32.xlu2 %v3930_v8, %s5014_s8  ;;  %v3773_v0 = vld [vmem:[#allocation2 + $0x48] sm:$0xf] }
 0x1f9   : > { %1940 = vrot.lane.b32.xlu1 %v3860_v59, %s5012_s27  ;;  %v4182_v61 = vld [vmem:[#allocation2 + $0x54] sm:$0xf0]  ;;  %v4163_v59 = vld [vmem:[#allocation2 + $0x68] sm:$0xf0] }
 0x1fa   : > { %v4167_v23 = vld [vmem:[#allocation2 + $0x54] sm:$0xf0]  ;;  %1223 = vst [vmem:[#allocation2 + $0x54] sm:$0xf] %v1215_v31  ;;  %v3864_v24 = vor.u32 %v4182_v61, %v3863_v43  ;;  %v3777_v31 = vld [vmem:[#allocation2 + $0x60] sm:$0xf] }
 0x1fb   : > { %v3794_v17 = vor.u32 %v4167_v23, %v3793_v12  ;;  %v4197_v27 = vld [vmem:[#allocation2 + $0x54] sm:$0xf0]  ;;  %v3778_v43 = vor.u32 %v4163_v59, %v3777_v31 }
 0x1fc   : > { %1942 = vrot.lane.b32.xlu0 %v3864_v24, %s5012_s27  ;;  %v3934_v53 = vor.u32 %v4197_v27, %v3933_v13  ;;  %v4212_v14 = vld [vmem:[#allocation2 + $0x54] sm:$0xf0] }
 0x1fd   : > { %v1602_v37 = vsel %vm1576_vm0, %v3794_v17, 0  ;;  %v4004_v4 = vor.u32 %v4212_v14, %v4003_v2 }
 0x1fe   : > { %1611 = vmatpush.bf16.xpose.msra.mxu1 %v1602_v37 }
 0x200   : > { %2778 = vrot.lane.b32.xlu2 %v4000_v15, %s5013_s22 }
 0x201   : > { %2324 = vrot.lane.b32.xlu1 %v3910_v10, %s5014_s8  ;;  %v4177_v38 = vld [vmem:[#allocation2 + $0x50] sm:$0xf0] }
 0x202   : > { %v3844_v39 = vor.u32 %v4177_v38, %v3843_v7  ;;  %v4162_v55 = vld [vmem:[#allocation2 + $0x50] sm:$0xf0] }
 0x203   : > { %v3774_v63 = vor.u32 %v4162_v55, %v3773_v0 }
 0x204   : > { %2361 = vrot.lane.b32.xlu0 %v3934_v53, %s5014_s8 }
 0x206   : > { %1612 = vmatpush.bf16.xpose.msra.mxu1 %v1599_v22 }
 0x208   : > { %1905 = vrot.lane.b32.xlu2 %v3840_v36, %s5012_s27 }
 0x209   : > { %2780 = vrot.lane.b32.xlu1 %v4004_v4, %s5013_s22  ;;  %v1492_v4 = vand.u32 127, %v1491_v40 }
 0x20b   : > { %vm1494_vm14 = vcmp.lt.s32.totalorder %v1492_v4, %v1493_v30  ;;  %v3876_v4 = vld [vmem:[#allocation2 + $0x8] sm:$0xf]  ;;  %v4184_v30 = vld [vmem:[#allocation2 + $0x10] sm:$0xf0] }
 0x20e   : > { %1613 = vmatpush.bf16.xpose.msra.mxu1 %v1596_v35  ;;  %v5868_v35 = vsel %vm1494_vm14, 0.0, %v5015_v34 }
 0x210   : > { %2743 = vrot.lane.b32.xlu2 %v3980_v29, %s5013_s22 }
 0x216   : > { %1614 = vmatpush.bf16.xpose.msra.mxu1 %v1593_v48 }
 0x218   : > { %1907 = vrot.lane.b32.xlu2 %v3844_v39, %s5012_s27 }
 0x21d   : > { %3799 = vmatmul.msk.bf16.vlgmr.msra.gmra.mxu1 %vm1576_vm0, %v3762_v51 }
 0x226   : > { %v5836_v28 = vpop.permute.xlu2 %2774 }
 0x227   : > { %v2800_v39 = vsel %vm1576_vm0, %v5836_v28, 0 }
 0x22d   : > { %3800 = vmatmul.msk.bf16.gmra.mxu1 %vm1576_vm0, %v3766_v6 }
 0x230   : > { %v5841_v41 = vpop.permute.xlu2 %2320 }
 0x237   : > { %v5833_v32 = vpop.permute.xlu0 %1909 }
 0x23a   : > { %v2358_v23 = vpop.permute.xlu2 %2357 }
 0x23b   : > { %v2384_v14 = vsel %vm1576_vm0, %v2358_v23, 0  ;;  %v4193_v23 = vld [vmem:[#allocation2 + $0x68] sm:$0xf0] }
 0x23d   : > { %3801 = vmatmul.msk.bf16.gmra.mxu1 %vm1576_vm0, %v3770_v62 }
 0x240   : > { %v2356_v45 = vpop.permute.xlu1 %2355 }
 0x241   : > { %v2381_v36 = vsel %vm1576_vm0, %v2356_v45, 0 }
 0x242   : > { %v1937_v60 = vpop.permute.xlu0 %1936  ;;  %v2777_v54 = vpop.permute.xlu2 %2776 }
 0x243   : > { %v1962_v52 = vsel %vm1576_vm0, %v1937_v60, 0  ;;  %v2803_v42 = vsel %vm1576_vm0, %v2777_v54, 0  ;;  %v4188_v54 = vld [vmem:[#allocation2 + $0x70] sm:$0xf0] }
 0x249   : > { %v1902_v47 = vpop.permute.xlu1 %1901 }
 0x24a   : > { %v5838_v49 = vpop.permute.xlu0 %2739  ;;  %v5849_v20 = vpop.permute.xlu2 %2322 }
 0x24d   : > { %3802 = vmatmul.msk.bf16.gmra.mxu1 %vm1576_vm0, %v3774_v63 }
 0x252   : > { %v2360_v16 = vpop.permute.xlu2 %2359 }
 0x253   : > { %v2783_v9 = vpop.permute.xlu1 %2782  ;;  %v2387_v13 = vsel %vm1576_vm0, %v2360_v16, 0  ;;  %v3962_v16 = vld [vmem:[#allocation2 + $0x68] sm:$0xf] }
 0x254   : > { %v1945_v5 = vpop.permute.xlu0 %1944  ;;  %v2812_v22 = vsel %vm1576_vm0, %v2783_v9, 0 }
 0x255   : > { %v1974_v8 = vsel %vm1576_vm0, %v1945_v5, 0 }
 0x256   : > { %1979 = vmatpush.bf16.xpose.msra.mxu3 %v1974_v8 }
 0x25a   : > { %v2779_v46 = vpop.permute.xlu2 %2778 }
 0x25b   : > { %v1939_v24 = vpop.permute.xlu1 %1938  ;;  %v2806_v18 = vsel %vm1576_vm0, %v2779_v46, 0  ;;  %v3877_v46 = vor.u32 %v4184_v30, %v3876_v4 }
 0x25c   : > { %v2364_v61 = vpop.permute.xlu0 %2363  ;;  %v1965_v3 = vsel %vm1576_vm0, %v1939_v24, 0  ;;  %v3892_v24 = vld [vmem:[#allocation2 + $0x68] sm:$0xf] }
 0x25d   : > { %3803 = vmatmul.msk.bf16.gmra.mxu1 %vm1576_vm0, %v3778_v43  ;;  %v2393_v12 = vsel %vm1576_vm0, %v2364_v61, 0  ;;  %v4207_v43 = vld [vmem:[#allocation2 + $0x50] sm:$0xf0]  ;;  %v3983_v61 = vld [vmem:[#allocation2 + $0x48] sm:$0xf] }
 0x25e   : > { %2398 = vmatpush.bf16.xpose.msrb.mxu2 %v2393_v12  ;;  %v3984_v12 = vor.u32 %v4207_v43, %v3983_v61 }
 0x262   : > { %v1906_v1 = vpop.permute.xlu2 %1905 }
 0x263   : > { %v1904_v33 = vpop.permute.xlu1 %1903 }
 0x264   : > { %v5846_v17 = vpop.permute.xlu0 %2741 }
 0x26a   : > { %v2744_v44 = vpop.permute.xlu2 %2743 }
 0x26b   : > { %v1941_v15 = vpop.permute.xlu1 %1940 }
 0x26c   : > { %v1968_v10 = vsel %vm1576_vm0, %v1941_v15, 0  ;;  %v3913_v15 = vld [vmem:[#allocation2 + $0x48] sm:$0xf] }
 0x26e   : > { %v1943_v37 = vpop.permute.xlu0 %1942 }
 0x26f   : > { %v1971_v11 = vsel %vm1576_vm0, %v1943_v37, 0  ;;  %v3893_v37 = vor.u32 %v4188_v54, %v3892_v24 }
 0x270   : > { %1980 = vmatpush.bf16.xpose.msra.mxu3 %v1971_v11  ;;  %v4192_v11 = vld [vmem:[#allocation2 + $0x50] sm:$0xf0] }
 0x272   : > { %v1908_v55 = vpop.permute.xlu2 %1907 }
 0x273   : > { %v5855_v53 = vpop.permute.xlu1 %2324 }
 0x276   : > { %v2362_v21 = vpop.permute.xlu0 %2361 }
 0x277   : > { %v2390_v27 = vsel %vm1576_vm0, %v2362_v21, 0  ;;  %v3914_v21 = vor.u32 %v4192_v11, %v3913_v15 }
 0x278   : > { %1981 = vmatpush.bf16.xpose.msra.mxu3 %v1968_v10  ;;  %2399 = vmatpush.bf16.xpose.msrb.mxu2 %v2390_v27  ;;  %v3888_v10 = vld [vmem:[#allocation2 + $0x50] sm:$0xf]  ;;  %v4187_v27 = vld [vmem:[#allocation2 + $0x58] sm:$0xf0] }
 0x27b   : > { %v2781_v50 = vpop.permute.xlu1 %2780 }
 0x27c   : > { %v2809_v2 = vsel %vm1576_vm0, %v2781_v50, 0  ;;  %v3880_v50 = vld [vmem:[#allocation2 + $0x20] sm:$0xf] }
 0x280   : > { %1982 = vmatpush.bf16.xpose.msra.mxu3 %v1965_v3  ;;  %2400 = vmatpush.bf16.xpose.msrb.mxu2 %v2387_v13  ;;  %v4203_v3 = vld [vmem:[#allocation2 + $0x70] sm:$0xf0] }
 0x281   : > { %v3963_v13 = vor.u32 %v4203_v3, %v3962_v16  ;;  %v4202_v16 = vld [vmem:[#allocation2 + $0x58] sm:$0xf0] }
 0x288   : > { %1983 = vmatpush.bf16.xpose.msra.mxu3 %v1962_v52  ;;  %2401 = vmatpush.bf16.xpose.msrb.mxu2 %v2384_v14  ;;  %v3884_v52 = vld [vmem:[#allocation2 + $0x38] sm:$0xf]  ;;  %v4186_v14 = vld [vmem:[#allocation2 + $0x40] sm:$0xf0] }
 0x28f   : > { %3869 = vmatmul.msk.bf16.vlgmr.msra.gmra.mxu3 %vm1576_vm0, %v1902_v47 }
 0x290   : > { %2817 = vmatpush.bf16.xpose.msrb.mxu3 %v2812_v22  ;;  %2402 = vmatpush.bf16.xpose.msrb.mxu2 %v2381_v36  ;;  %v3885_v22 = vor.u32 %v4186_v14, %v3884_v52  ;;  %v4185_v36 = vld [vmem:[#allocation2 + $0x28] sm:$0xf0] }
 0x298   : > { %2818 = vmatpush.bf16.xpose.msrb.mxu3 %v2809_v2  ;;  %v3881_v2 = vor.u32 %v4185_v36, %v3880_v50  ;;  %v4201_v36 = vld [vmem:[#allocation2 + $0x40] sm:$0xf0] }
 0x29a   : > { %v1616_v19 = vpop.f32.mrf.mxu1 }
 0x29b   : > { %v5872_v29 = vadd.f32 %v1616_v19, %v5868_v35 }
 0x29d   : > { %v1642_v25 = vsel %vm1641_vm15, %v5872_v29, -inf }
 0x29e   : > { %1643 = vmax.xlane.f32.xlu2 %v1642_v25 }
 0x29f   : > { %3870 = vmatmul.msk.bf16.gmra.mxu3 %vm1576_vm0, %v1904_v33 }
 0x2a0   : > { %2819 = vmatpush.bf16.xpose.msrb.mxu3 %v2806_v18  ;;  %v4032_v18 = vld [vmem:[#allocation2 + $0x68] sm:$0xf] }
 0x2a2   : > { %v1618_v38 = vpop.f32.mrf.mxu1 }
 0x2a3   : > { %v5879_v48 = vadd.f32 %v1618_v38, %v5868_v35 }
 0x2a5   : > { %v1645_v7 = vsel %vm1641_vm15, %v5879_v48, -inf }
 0x2a6   : > { %1646 = vmax.xlane.f32.xlu2 %v1645_v7  ;;  %v4028_v7 = vld [vmem:[#allocation2 + $0x50] sm:$0xf] }
 0x2a8   : > { %2820 = vmatpush.bf16.xpose.msrb.mxu3 %v2803_v42 }
 0x2aa   : > { %v1621_v57 = vpop.f32.mrf.mxu1 }
 0x2ab   : > { %v5886_v51 = vadd.f32 %v1621_v57, %v5868_v35 }
 0x2ad   : > { %v1648_v58 = vsel %vm1641_vm15, %v5886_v51, -inf }
 0x2ae   : > { %1649 = vmax.xlane.f32.xlu2 %v1648_v58 }
 0x2af   : > { %3871 = vmatmul.msk.bf16.gmra.mxu3 %vm1576_vm0, %v1906_v1 }
 0x2b0   : > { %2821 = vmatpush.bf16.xpose.msrb.mxu3 %v2800_v39  ;;  %v4217_v39 = vld [vmem:[#allocation2 + $0x58] sm:$0xf0] }
 0x2b2   : > { %v1623_v26 = vpop.f32.mrf.mxu1 }
 0x2b3   : > { %v5892_v6 = vadd.f32 %v1623_v26, %v5868_v35  ;;  %v4029_v26 = vor.u32 %v4217_v39, %v4028_v7 }
 0x2b5   : > { %v1651_v56 = vsel %vm1641_vm15, %v5892_v6, -inf }
 0x2b6   : > { %1652 = vmax.xlane.f32.xlu0 %v1651_v56 }
 0x2ba   : > { %v1626_v62 = vpop.f32.mrf.mxu1 }
 0x2bb   : > { %v5897_v45 = vadd.f32 %v1626_v62, %v5868_v35 }
 0x2bd   : > { %v1654_v60 = vsel %vm1641_vm15, %v5897_v45, -inf }
 0x2be   : > { %1655 = vmax.xlane.f32.xlu2 %v1654_v60 }
 0x2bf   : > { %3872 = vmatmul.msk.bf16.gmra.mxu3 %vm1576_vm0, %v1908_v55  ;;  %v3950_v55 = vld [vmem:[#allocation2 + $0x20] sm:$0xf] }
 0x2c2   : > { %v1628_v0 = vpop.f32.mrf.mxu1 }
 0x2c3   : > { %v5903_v28 = vadd.f32 %v1628_v0, %v5868_v35  ;;  %v4200_v0 = vld [vmem:[#allocation2 + $0x28] sm:$0xf0] }
 0x2c5   : > { %v1657_v63 = vsel %vm1641_vm15, %v5903_v28, -inf }
 0x2c6   : > { %1658 = vmax.xlane.f32.xlu1 %v1657_v63 }
 0x2ca   : > { %v1631_v47 = vpop.f32.mrf.mxu1 }
 0x2cb   : > { %v5908_v5 = vadd.f32 %v1631_v47, %v5868_v35 }
 0x2cd   : > { %v1660_v8 = vsel %vm1641_vm15, %v5908_v5, -inf }
 0x2ce   : > { %1661 = vmax.xlane.f32.xlu2 %v1660_v8 }
 0x2cf   : > { %3873 = vmatmul.msk.bf16.gmra.mxu3 %vm1576_vm0, %v5833_v32  ;;  %v3917_v32 = vld [vmem:[#allocation2 + $0x60] sm:$0xf] }
 0x2d0   : > { %v3918_v33 = vor.u32 %v4193_v23, %v3917_v32  ;;  %v4208_v23 = vld [vmem:[#allocation2 + $0x68] sm:$0xf0] }
 0x2d2   : > { %v1633_v9 = vpop.f32.mrf.mxu1 }
 0x2d3   : > { %v5915_v59 = vadd.f32 %v1633_v9, %v5868_v35  ;;  %v3951_v9 = vor.u32 %v4200_v0, %v3950_v55 }
 0x2d5   : > { %v1663_v31 = vsel %vm1641_vm15, %v5915_v59, -inf }
 0x2d6   : > { %1664 = vmax.xlane.f32.xlu0 %v1663_v31  ;;  %v4214_v31 = vld [vmem:[#allocation2 + $0x10] sm:$0xf0] }
 0x2da   : > { %v1636_v34 = vpop.f32.mrf.mxu1 }
 0x2db   : > { %v5935_v25 = vadd.f32 %v1636_v34, %v5868_v35 }
 0x2dd   : > { %v1666_v1 = vsel %vm1641_vm15, %v5935_v25, -inf }
 0x2df   : > { %2745 = vrot.lane.b32.xlu1 %v3984_v12, %s5013_s22  ;;  %4009 = vmatmul.msk.bf16.vlgmr.msrb.gmra.mxu3 %vm1576_vm0, %v5838_v49  ;;  %v3889_v49 = vor.u32 %v4187_v27, %v3888_v10  ;;  %v3958_v27 = vld [vmem:[#allocation2 + $0x50] sm:$0xf] }
 0x2e2   : > { %v1638_v42 = vpop.f32.mrf.mxu1 }
 0x2e3   : > { %v5942_v58 = vadd.f32 %v1638_v42, %v5868_v35  ;;  %v4020_v42 = vld [vmem:[#allocation2 + $0x20] sm:$0xf] }
 0x2e5   : > { %v1669_v56 = vsel %vm1641_vm15, %v5942_v58, -inf }
 0x2e6   : > { %2328 = vrot.lane.b32.xlu2 %v3918_v33, %s5014_s8  ;;  %v3987_v33 = vld [vmem:[#allocation2 + $0x60] sm:$0xf] }
 0x2e7   : > { %2138 = vrot.lane.b32.xlu1 %v3893_v37, %s5012_s27  ;;  %v3988_v37 = vor.u32 %v4208_v23, %v3987_v33 }
 0x2ea   : > { %2326 = vrot.lane.b32.xlu0 %v3914_v21, %s5014_s8 }
 0x2ee   : > { %2136 = vrot.lane.b32.xlu2 %v3889_v49, %s5012_s27  ;;  %v4024_v49 = vld [vmem:[#allocation2 + $0x38] sm:$0xf] }
 0x2ef   : > { %2557 = vrot.lane.b32.xlu1 %v3963_v13, %s5014_s8  ;;  %4010 = vmatmul.msk.bf16.gmra.mxu3 %vm1576_vm0, %v5846_v17  ;;  %v4218_v17 = vld [vmem:[#allocation2 + $0x70] sm:$0xf0]  ;;  %v3959_v13 = vor.u32 %v4202_v16, %v3958_v27 }
 0x2f0   : > { %v4033_v19 = vor.u32 %v4218_v17, %v4032_v18 }
 0x2f6   : > { %2134 = vrot.lane.b32.xlu2 %v3885_v22, %s5012_s27 }
 0x2fe   : > { %2132 = vrot.lane.b32.xlu2 %v3881_v2, %s5012_s27 }
 0x2ff   : > { %4011 = vmatmul.msk.bf16.gmra.mxu3 %vm1576_vm0, %v2744_v44 }
 0x306   : > { %2130 = vrot.lane.b32.xlu2 %v3877_v46, %s5012_s27 }
 0x30e   : > { %2976 = vrot.lane.b32.xlu2 %v4033_v19, %s5013_s22 }
 0x311   : > { %v1644_v38 = vpop.xlane.xlu2 %1643 }
 0x312   : > { %v5937_v57 = vpop.f32.mrf.mxu3  ;;  %v1672_v44 = vsub.f32 %v5872_v29, %v1644_v38  ;;  %v4016_v29 = vld [vmem:[#allocation2 + $0x8] sm:$0xf]  ;;  %v4215_v38 = vld [vmem:[#allocation2 + $0x28] sm:$0xf0] }
 0x313   : > { %v4017_v54 = vor.u32 %v4214_v31, %v4016_v29 }
 0x314   : > { %1667 = vmax.xlane.f32.xlu0 %v1666_v1  ;;  %v1682_v62 = vmul.f32 1.442695, %v1672_v44  ;;  %v3946_v44 = vld [vmem:[#allocation2 + $0x8] sm:$0xf] }
 0x316   : > { %2974 = vrot.lane.b32.xlu2 %v4029_v26, %s5013_s22  ;;  %4434 = vpow2.f32 %v1682_v62 }
 0x319   : > { %1670 = vmax.xlane.f32.xlu1 %v1669_v56  ;;  %v1647_v60 = vpop.xlane.xlu2 %1646  ;;  %v4199_v56 = vld [vmem:[#allocation2 + $0x10] sm:$0xf0] }
 0x31a   : > { %v1673_v63 = vsub.f32 %v5879_v48, %v1647_v60  ;;  %v5949_v47 = vpop.f32.mrf.mxu3  ;;  %v3947_v55 = vor.u32 %v4199_v56, %v3946_v44 }
 0x31c   : > { %v1684_v8 = vmul.f32 1.442695, %v1673_v63  ;;  %v5952_v61 = vpop.eup %4434 }
 0x31e   : > { %4436 = vpow2.f32 %v1684_v8  ;;  %2551 = vrot.lane.b32.xlu2 %v3951_v9, %s5014_s8 }
 0x321   : > { %v1650_v43 = vpop.xlane.xlu2 %1649 }
 0x322   : > { %v5954_v12 = vpop.f32.mrf.mxu3  ;;  %v1674_v32 = vsub.f32 %v5886_v51, %v1650_v43  ;;  %v4216_v51 = vld [vmem:[#allocation2 + $0x40] sm:$0xf0] }
 0x323   : > { %v4025_v52 = vor.u32 %v4216_v51, %v4024_v49 }
 0x324   : > { %v5956_v24 = vpop.eup %4436  ;;  %v1686_v11 = vmul.f32 1.442695, %v1674_v32 }
 0x325   : > { %v1732_v48 = vpack.c.bf16 %v5956_v24, %v5952_v61 }
 0x326   : > { %2968 = vrot.lane.b32.xlu2 %v4017_v54, %s5013_s22  ;;  %4438 = vpow2.f32 %v1686_v11  ;;  %v6002_v54 = vadd.f32 %v5954_v12, %v5868_v35 }
 0x327   : > { %3824 = vmatmul.msk.bf16.vlgmr.msra.gmra.mxu2 %vm1641_vm15, %v1732_v48 }
 0x328   : > { %2747 = vrot.lane.b32.xlu0 %v3988_v37, %s5013_s22  ;;  %v6015_v37 = vadd.f32 %v5949_v47, %v5868_v35  ;;  %v1705_v47 = vsel %vm1641_vm15, %v5956_v24, 0.0  ;;  %v6035_v24 = vadd.f32 %v5937_v57, %v5868_v35 }
 0x329   : > { %v1653_v15 = vpop.xlane.xlu0 %1652 }
 0x32a   : > { %v1675_v21 = vsub.f32 %v5892_v6, %v1653_v15  ;;  %v5965_v10 = vpop.f32.mrf.mxu3  ;;  %v3954_v6 = vld [vmem:[#allocation2 + $0x38] sm:$0xf] }
 0x32b   : > { %v3955_v46 = vor.u32 %v4201_v36, %v3954_v6  ;;  %v6049_v57 = vadd.f32 %v5965_v10, %v5868_v35 }
 0x32c   : > { %v1688_v3 = vmul.f32 1.442695, %v1675_v21  ;;  %v5969_v22 = vpop.eup %4438  ;;  %v2013_v21 = vsel %vm1641_vm15, %v6015_v37, -inf }
 0x32e   : > { %4440 = vpow2.f32 %v1688_v3 }
 0x330   : > { %2555 = vrot.lane.b32.xlu0 %v3959_v13, %s5014_s8 }
 0x331   : > { %v1656_v14 = vpop.xlane.xlu2 %1655 }
 0x332   : > { %2972 = vrot.lane.b32.xlu1 %v4025_v52, %s5013_s22  ;;  %v5971_v50 = vpop.f32.mrf.mxu3  ;;  %v1676_v4 = vsub.f32 %v5897_v45, %v1656_v14  ;;  %v4021_v45 = vor.u32 %v4215_v38, %v4020_v42  ;;  %v2019_v38 = vsel %vm1641_vm15, %v6049_v57, -inf }
 0x333   : > { %v6029_v13 = vadd.f32 %v5971_v50, %v5868_v35  ;;  %v2010_v50 = vsel %vm1641_vm15, %v6035_v24, -inf }
 0x334   : > { %v5973_v2 = vpop.eup %4440  ;;  %v1690_v34 = vmul.f32 1.442695, %v1676_v4 }
 0x335   : > { %v1733_v30 = vpack.c.bf16 %v5973_v2, %v5969_v22  ;;  %v2022_v6 = vsel %vm1641_vm15, %v6029_v13, -inf }
 0x336   : > { %4442 = vpow2.f32 %v1690_v34 }
 0x337   : > { %3825 = vmatmul.msk.bf16.gmra.mxu2 %vm1641_vm15, %v1733_v30 }
 0x338   : > { %2553 = vrot.lane.b32.xlu0 %v3955_v46, %s5014_s8 }
 0x339   : > { %v1659_v18 = vpop.xlane.xlu1 %1658 }
 0x33a   : > { %v1677_v17 = vsub.f32 %v5903_v28, %v1659_v18  ;;  %v5981_v19 = vpop.f32.mrf.mxu3 }
 0x33b   : > { %v6062_v10 = vadd.f32 %v5981_v19, %v5868_v35 }
 0x33c   : > { %v1692_v7 = vmul.f32 1.442695, %v1677_v17  ;;  %v5984_v1 = vpop.eup %4442 }
 0x33d   : > { %v2025_v44 = vsel %vm1641_vm15, %v6062_v10, -inf }
 0x33e   : > { %4444 = vpow2.f32 %v1692_v7 }
 0x340   : > { %2970 = vrot.lane.b32.xlu0 %v4021_v45, %s5013_s22 }
 0x341   : > { %v1662_v39 = vpop.xlane.xlu2 %1661 }
 0x342   : > { %v2000_v26 = vpop.f32.mrf.mxu3  ;;  %v1678_v28 = vsub.f32 %v5908_v5, %v1662_v39  ;;  %v1702_v5 = vsel %vm1641_vm15, %v5952_v61, 0.0  ;;  %v2016_v61 = vsel %vm1641_vm15, %v6002_v54, -inf }
 0x343   : > { %v6038_v36 = vadd.f32 %v2000_v26, %v5868_v35 }
 0x344   : > { %v5986_v62 = vpop.eup %4444  ;;  %v1694_v0 = vmul.f32 1.442695, %v1678_v28 }
 0x345   : > { %v1734_v60 = vpack.c.bf16 %v5986_v62, %v5984_v1  ;;  %v2028_v46 = vsel %vm1641_vm15, %v6038_v36, -inf }
 0x346   : > { %4446 = vpow2.f32 %v1694_v0 }
 0x347   : > { %3826 = vmatmul.msk.bf16.gmra.mxu2 %vm1641_vm15, %v1734_v60 }
 0x348   : > { %2549 = vrot.lane.b32.xlu0 %v3947_v55, %s5014_s8 }
 0x349   : > { %v1665_v63 = vpop.xlane.xlu0 %1664  ;;  %v5993_v8 = vpop.permute.xlu2 %2328 }
 0x34a   : > { %v1679_v9 = vsub.f32 %v5915_v59, %v1665_v63  ;;  %v5996_v29 = vpop.f32.mrf.mxu3 }
 0x34b   : > { %v6075_v28 = vadd.f32 %v5996_v29, %v5868_v35 }
 0x34c   : > { %v1696_v31 = vmul.f32 1.442695, %v1679_v9  ;;  %v6005_v48 = vpop.eup %4446 }
 0x34d   : > { %v2031_v63 = vsel %vm1641_vm15, %v6075_v28, -inf }
 0x34e   : > { %4448 = vpow2.f32 %v1696_v31 }
 0x34f   : > { %1703 = vadd.xlane.f32.xlu2 %v1702_v5 }
 0x351   : > { %v2746_v43 = vpop.permute.xlu1 %2745  ;;  %v2137_v23 = vpop.permute.xlu2 %2136 }
 0x352   : > { %4012 = vmatmul.msk.bf16.gmra.mxu3 %vm1576_vm0, %v2746_v43  ;;  %v2005_v59 = vpop.f32.mrf.mxu3 }
 0x353   : > { %v6054_v17 = vadd.f32 %v2005_v59, %v5868_v35 }
 0x354   : > { %v6007_v32 = vpop.eup %4448 }
 0x355   : > { %v1735_v33 = vpack.c.bf16 %v6007_v32, %v6005_v48  ;;  %v2034_v7 = vsel %vm1641_vm15, %v6054_v17, -inf }
 0x357   : > { %2017 = vmax.xlane.f32.xlu2 %v2016_v61  ;;  %3827 = vmatmul.msk.bf16.gmra.mxu2 %vm1641_vm15, %v1735_v33 }
 0x359   : > { %v2139_v12 = vpop.permute.xlu1 %2138  ;;  %v2135_v11 = vpop.permute.xlu2 %2134 }
 0x35a   : > { %2163 = vmatpush.bf16.msra.mxu0 %v2139_v12  ;;  %v2007_v15 = vpop.f32.mrf.mxu3 }
 0x35b   : > { %v6086_v29 = vadd.f32 %v2007_v15, %v5868_v35 }
 0x35c   : > { %2014 = vmax.xlane.f32.xlu1 %v2013_v21  ;;  %v6064_v39 = vpop.permute.xlu0 %2326 }
 0x35e   : > { %2164 = vmatpush.bf16.msra.mxu0 %v2137_v23 }
 0x361   : > { %v2558_v27 = vpop.permute.xlu1 %2557  ;;  %v2133_v16 = vpop.permute.xlu2 %2132 }
 0x362   : > { %2165 = vmatpush.bf16.msra.mxu0 %v2135_v11  ;;  %2582 = vmatpush.bf16.msrb.mxu1 %v2558_v27  ;;  %v2823_v3 = vpop.f32.mrf.mxu3 }
 0x363   : > { %v6023_v49 = vadd.f32 %v2823_v3, %v5868_v35 }
 0x364   : > { %1706 = vadd.xlane.f32.xlu1 %v1705_v47 }
 0x365   : > { %v2848_v51 = vsel %vm1641_vm15, %v6023_v49, -inf }
 0x366   : > { %2166 = vmatpush.bf16.msra.mxu0 %v2133_v16  ;;  %2849 = vmax.xlane.f32.xlu2 %v2848_v51 }
 0x369   : > { %v2131_v52 = vpop.permute.xlu2 %2130 }
 0x36a   : > { %2167 = vmatpush.bf16.msra.mxu0 %v2131_v52  ;;  %v2825_v14 = vpop.f32.mrf.mxu3 }
 0x36b   : > { %v6067_v26 = vadd.f32 %v2825_v14, %v5868_v35 }
 0x36c   : > { %2023 = vmax.xlane.f32.xlu1 %v2022_v6 }
 0x36d   : > { %v2851_v56 = vsel %vm1641_vm15, %v6067_v26, -inf }
 0x371   : > { %v2977_v4 = vpop.permute.xlu2 %2976 }
 0x372   : > { %2011 = vmax.xlane.f32.xlu0 %v2010_v50  ;;  %3001 = vmatpush.bf16.msrb.mxu0 %v2977_v4  ;;  %v2828_v30 = vpop.f32.mrf.mxu3 }
 0x373   : > { %v6045_v34 = vadd.f32 %v2828_v30, %v5868_v35 }
 0x374   : > { %2029 = vmax.xlane.f32.xlu1 %v2028_v46 }
 0x375   : > { %v2854_v18 = vsel %vm1641_vm15, %v6045_v34, -inf }
 0x376   : > { %2855 = vmax.xlane.f32.xlu2 %v2854_v18 }
 0x379   : > { %v2975_v42 = vpop.permute.xlu2 %2974 }
 0x37a   : > { %2020 = vmax.xlane.f32.xlu0 %v2019_v38  ;;  %3002 = vmatpush.bf16.msrb.mxu0 %v2975_v42  ;;  %v2830_v45 = vpop.f32.mrf.mxu3 }
 0x37b   : > { %v6078_v19 = vadd.f32 %v2830_v45, %v5868_v35 }
 0x37c   : > { %2035 = vmax.xlane.f32.xlu1 %v2034_v7 }
 0x37d   : > { %v2857_v9 = vsel %vm1641_vm15, %v6078_v19, -inf }
 0x381   : > { %v2552_v51 = vpop.permute.xlu2 %2551 }
 0x382   : > { %2026 = vmax.xlane.f32.xlu0 %v2025_v44  ;;  %v2833_v55 = vpop.f32.mrf.mxu3 }
 0x383   : > { %v6090_v23 = vadd.f32 %v2833_v55, %v5868_v35 }
 0x384   : > { %2852 = vmax.xlane.f32.xlu1 %v2851_v56 }
 0x385   : > { %v2860_v61 = vsel %vm1641_vm15, %v6090_v23, -inf }
 0x387   : > { %v1668_v60 = vpop.xlane.xlu0 %1667 }
 0x388   : > { %v1680_v0 = vsub.f32 %v5935_v25, %v1668_v60  ;;  %v2037_v25 = vsel %vm1641_vm15, %v6086_v29, -inf }
 0x389   : > { %v2969_v14 = vpop.permute.xlu2 %2968 }
 0x38a   : > { %2032 = vmax.xlane.f32.xlu0 %v2031_v63  ;;  %v1698_v31 = vmul.f32 1.442695, %v1680_v0  ;;  %v2835_v33 = vpop.f32.mrf.mxu3 }
 0x38b   : > { %v6097_v12 = vadd.f32 %v2835_v33, %v5868_v35 }
 0x38c   : > { %v1671_v5 = vpop.xlane.xlu1 %1670  ;;  %2858 = vmax.xlane.f32.xlu1 %v2857_v9  ;;  %4450 = vpow2.f32 %v1698_v31 }
 0x38d   : > { %v1681_v43 = vsub.f32 %v5942_v58, %v1671_v5  ;;  %v2863_v21 = vsel %vm1641_vm15, %v6097_v12, -inf }
 0x38f   : > { %v1700_v59 = vmul.f32 1.442695, %v1681_v43 }
 0x391   : > { %4452 = vpow2.f32 %v1700_v59 }
 0x392   : > { %2038 = vmax.xlane.f32.xlu0 %v2037_v25  ;;  %v6099_v11 = vpop.eup %4450 }
 0x394   : > { %2861 = vmax.xlane.f32.xlu1 %v2860_v61 }
 0x397   : > { %v6101_v58 = vpop.eup %4452 }
 0x398   : > { %v1736_v15 = vpack.c.bf16 %v6101_v58, %v6099_v11 }
 0x39a   : > { %2864 = vmax.xlane.f32.xlu0 %v2863_v21  ;;  %v2748_v27 = vpop.permute.xlu0 %2747  ;;  %3828 = vmatmul.msk.bf16.gmra.mxu2 %vm1641_vm15, %v1736_v15 }
 0x39b   : > { %4013 = vmatmul.msk.bf16.gmra.mxu3 %vm1576_vm0, %v2748_v27 }
 0x3a2   : > { %v2556_v16 = vpop.permute.xlu0 %2555 }
 0x3a3   : > { %2583 = vmatpush.bf16.msrb.mxu1 %v2556_v16 }
 0x3a4   : > { %v2973_v3 = vpop.permute.xlu1 %2972 }
 0x3a5   : > { %3003 = vmatpush.bf16.msrb.mxu0 %v2973_v3 }
 0x3aa   : > { %v2554_v47 = vpop.permute.xlu0 %2553  ;;  %3939 = vmatmul.msk.bf16.vlgmr.msrb.gmra.mxu2 %vm1576_vm0, %v5841_v41  ;;  %v1791_v30 = vpop.f32.mrf.mxu2 }
 0x3ab   : > { %2584 = vmatpush.bf16.msrb.mxu1 %v2554_v47 }
 0x3af   : > { %2585 = vmatpush.bf16.msrb.mxu1 %v2552_v51 }
 0x3b2   : > { %v2971_v52 = vpop.permute.xlu0 %2970  ;;  %v1793_v45 = vpop.f32.mrf.mxu2 }
 0x3b3   : > { %3004 = vmatpush.bf16.msrb.mxu0 %v2971_v52 }
 0x3b7   : > { %3005 = vmatpush.bf16.msrb.mxu0 %v2969_v14 }
 0x3ba   : > { %v2550_v6 = vpop.permute.xlu0 %2549  ;;  %3940 = vmatmul.msk.bf16.gmra.mxu2 %vm1576_vm0, %v5849_v20  ;;  %v6130_v0 = vpop.f32.mrf.mxu2 }
 0x3bb   : > { %2586 = vmatpush.bf16.msrb.mxu1 %v2550_v6 }
 0x3c2   : > { %v1704_v4 = vpop.xlane.xlu2 %1703  ;;  %v6137_v61 = vpop.f32.mrf.mxu2 }
 0x3c3   : > { %4454 = vrcp.f32 %v1704_v4 }
 0x3c9   : > { %v4455_v50 = vpop.eup %4454 }
 0x3ca   : > { %v1826_v46 = vmul.f32 %v4455_v50, %v1791_v30  ;;  %3941 = vmatmul.msk.bf16.gmra.mxu2 %vm1576_vm0, %v5855_v53  ;;  %v2018_v9 = vpop.xlane.xlu2 %2017  ;;  %v6143_v14 = vpop.f32.mrf.mxu2 }
 0x3cb   : > { %v2042_v5 = vsub.f32 %v6002_v54, %v2018_v9 }
 0x3cc   : > { %1836 = vst.msk [vmem:[#allocation3] sm:$0xff] %vm1576_vm0, %v1826_v46 }
 0x3cd   : > { %v2054_v33 = vmul.f32 1.442695, %v2042_v5 }
 0x3cf   : > { %v2015_v41 = vpop.xlane.xlu1 %2014 }
 0x3d0   : > { %v2041_v38 = vsub.f32 %v6015_v37, %v2015_v41 }
 0x3d2   : > { %v2052_v53 = vmul.f32 1.442695, %v2041_v38  ;;  %v6149_v38 = vpop.f32.mrf.mxu2 }
 0x3d5   : > { %v2838_v18 = vpop.f32.mrf.mxu3 }
 0x3d6   : > { %v6117_v42 = vadd.f32 %v2838_v18, %v5868_v35 }
 0x3d7   : > { %v1707_v7 = vpop.xlane.xlu1 %1706 }
 0x3d8   : > { %4456 = vrcp.f32 %v1707_v7  ;;  %v2866_v20 = vsel %vm1641_vm15, %v6117_v42, -inf }
 0x3d9   : > { %2867 = vmax.xlane.f32.xlu0 %v2866_v20  ;;  %4458 = vpow2.f32 %v2052_v53 }
 0x3da   : > { %3942 = vmatmul.msk.bf16.gmra.mxu2 %vm1576_vm0, %v6064_v39 }
 0x3dd   : > { %v2840_v44 = vpop.f32.mrf.mxu3 }
 0x3de   : > { %v4457_v56 = vpop.eup %4456  ;;  %v6125_v60 = vadd.f32 %v2840_v44, %v5868_v35 }
 0x3df   : > { %v1827_v55 = vmul.f32 %v4457_v56, %v1793_v45  ;;  %v4459_v63 = vpop.eup %4458  ;;  %v2024_v43 = vpop.xlane.xlu1 %2023 }
 0x3e0   : > { %v2869_v37 = vsel %vm1641_vm15, %v6125_v60, -inf  ;;  %v2073_v25 = vsel %vm1641_vm15, %v4459_v63, 0.0  ;;  %v2044_v21 = vsub.f32 %v6029_v13, %v2024_v43 }
 0x3e1   : > { %1837 = vst.msk [vmem:[#allocation3 + $0x8] sm:$0xff] %vm1576_vm0, %v1827_v55  ;;  %2870 = vmax.xlane.f32.xlu2 %v2869_v37 }
 0x3e2   : > { %v2058_v47 = vmul.f32 1.442695, %v2044_v21 }
 0x3e5   : > { %v2012_v31 = vpop.xlane.xlu0 %2011 }
 0x3e6   : > { %v2040_v39 = vsub.f32 %v6035_v24, %v2012_v31 }
 0x3e7   : > { %v2030_v3 = vpop.xlane.xlu1 %2029 }
 0x3e8   : > { %v2050_v59 = vmul.f32 1.442695, %v2040_v39 }
 0x3e9   : > { %2074 = vadd.xlane.f32.xlu2 %v2073_v25 }
 0x3ea   : > { %4460 = vpow2.f32 %v2050_v59  ;;  %3943 = vmatmul.msk.bf16.gmra.mxu2 %vm1576_vm0, %v5993_v8 }
 0x3eb   : > { %4462 = vpow2.f32 %v2054_v33 }
 0x3ec   : > { %4464 = vpow2.f32 %v2058_v47 }
 0x3ed   : > { %v2021_v15 = vpop.xlane.xlu0 %2020 }
 0x3ee   : > { %v2043_v24 = vsub.f32 %v6049_v57, %v2021_v15 }
 0x3ef   : > { %v2036_v6 = vpop.xlane.xlu1 %2035 }
 0x3f0   : > { %v4461_v27 = vpop.eup %4460  ;;  %v2056_v51 = vmul.f32 1.442695, %v2043_v24  ;;  %v2048_v46 = vsub.f32 %v6054_v17, %v2036_v6  ;;  %v6154_v17 = vpop.f32.mrf.mxu2 }
 0x3f1   : > { %v2100_v54 = vpack.c.bf16 %v4459_v63, %v4461_v27  ;;  %v2070_v16 = vsel %vm1641_vm15, %v4461_v27, 0.0  ;;  %v4463_v52 = vpop.eup %4462  ;;  %v2046_v63 = vsub.f32 %v6038_v36, %v2030_v3 }
 0x3f2   : > { %2071 = vadd.xlane.f32.xlu0 %v2070_v16  ;;  %4466 = vpow2.f32 %v2056_v51  ;;  %v2076_v13 = vsel %vm1641_vm15, %v4463_v52, 0.0  ;;  %v4465_v57 = vpop.eup %4464  ;;  %v2066_v45 = vmul.f32 1.442695, %v2048_v46  ;;  %v2850_v51 = vpop.xlane.xlu2 %2849 }
 0x3f3   : > { %3894 = vmatmul.msk.bf16.vlgmr.msra.gmra.mxu0 %vm1641_vm15, %v2100_v54  ;;  %v2082_v7 = vsel %vm1641_vm15, %v4465_v57, 0.0  ;;  %v2062_v31 = vmul.f32 1.442695, %v2046_v63 }
 0x3f5   : > { %v2027_v8 = vpop.xlane.xlu0 %2026 }
 0x3f6   : > { %v2045_v41 = vsub.f32 %v6062_v10, %v2027_v8 }
 0x3f7   : > { %v2853_v27 = vpop.xlane.xlu1 %2852 }
 0x3f8   : > { %v4467_v50 = vpop.eup %4466  ;;  %v2060_v53 = vmul.f32 1.442695, %v2045_v41  ;;  %v6159_v9 = vpop.f32.mrf.mxu2  ;;  %v2879_v3 = vsub.f32 %v6067_v26, %v2853_v27 }
 0x3f9   : > { %v2101_v20 = vpack.c.bf16 %v4467_v50, %v4463_v52 }
 0x3fa   : > { %2077 = vadd.xlane.f32.xlu0 %v2076_v13  ;;  %v2890_v8 = vmul.f32 1.442695, %v2879_v3 }
 0x3fd   : > { %v2033_v4 = vpop.xlane.xlu0 %2032 }
 0x3fe   : > { %v2047_v30 = vsub.f32 %v6075_v28, %v2033_v4  ;;  %v2878_v4 = vsub.f32 %v6023_v49, %v2850_v51 }
 0x3ff   : > { %v2859_v46 = vpop.xlane.xlu1 %2858 }
 0x400   : > { %v2064_v18 = vmul.f32 1.442695, %v2047_v30 }
 0x402   : > { %4468 = vpow2.f32 %v2064_v18  ;;  %2083 = vadd.xlane.f32.xlu0 %v2082_v7  ;;  %v2888_v18 = vmul.f32 1.442695, %v2878_v4  ;;  %v2856_v7 = vpop.xlane.xlu2 %2855 }
 0x403   : > { %3895 = vmatmul.msk.bf16.gmra.mxu0 %vm1641_vm15, %v2101_v20  ;;  %4470 = vpow2.f32 %v2066_v45  ;;  %v2880_v49 = vsub.f32 %v6045_v34, %v2856_v7 }
 0x404   : > { %4472 = vpow2.f32 %v2060_v53  ;;  %v2881_v53 = vsub.f32 %v6078_v19, %v2859_v46 }
 0x405   : > { %4474 = vpow2.f32 %v2062_v31  ;;  %v2039_v39 = vpop.xlane.xlu0 %2038 }
 0x406   : > { %v2049_v33 = vsub.f32 %v6086_v29, %v2039_v39  ;;  %v2079_v29 = vsel %vm1641_vm15, %v4467_v50, 0.0 }
 0x407   : > { %v2862_v63 = vpop.xlane.xlu1 %2861 }
 0x408   : > { %v4469_v44 = vpop.eup %4468  ;;  %v2068_v21 = vmul.f32 1.442695, %v2049_v33  ;;  %v2882_v19 = vsub.f32 %v6090_v23, %v2862_v63 }
 0x409   : > { %v2091_v28 = vsel %vm1641_vm15, %v4469_v44, 0.0  ;;  %v4471_v10 = vpop.eup %4470 }
 0x40a   : > { %2092 = vadd.xlane.f32.xlu0 %v2091_v28  ;;  %v4473_v56 = vpop.eup %4472  ;;  %v2094_v55 = vsel %vm1641_vm15, %v4471_v10, 0.0  ;;  %4476 = vpow2.f32 %v2068_v21 }
 0x40b   : > { %v2102_v37 = vpack.c.bf16 %v4473_v56, %v4465_v57  ;;  %v4475_v25 = vpop.eup %4474  ;;  %4478 = vpow2.f32 %v2890_v8  ;;  %v2085_v26 = vsel %vm1641_vm15, %v4473_v56, 0.0  ;;  %v2892_v56 = vmul.f32 1.442695, %v2880_v49 }
 0x40c   : > { %v2103_v15 = vpack.c.bf16 %v4469_v44, %v4475_v25  ;;  %v2088_v30 = vsel %vm1641_vm15, %v4475_v25, 0.0 }
 0x40d   : > { %v2865_v52 = vpop.xlane.xlu0 %2864 }
 0x40e   : > { %v2883_v57 = vsub.f32 %v6097_v12, %v2865_v52 }
 0x410   : > { %v4477_v6 = vpop.eup %4476  ;;  %v2898_v41 = vmul.f32 1.442695, %v2883_v57 }
 0x411   : > { %v2104_v50 = vpack.c.bf16 %v4477_v6, %v4471_v10  ;;  %v4479_v45 = vpop.eup %4478  ;;  %v2097_v28 = vsel %vm1641_vm15, %v4477_v6, 0.0 }
 0x412   : > { %2095 = vadd.xlane.f32.xlu0 %v2094_v55  ;;  %4480 = vpow2.f32 %v2898_v41  ;;  %v2911_v10 = vsel %vm1641_vm15, %v4479_v45, 0.0  ;;  %v2894_v55 = vmul.f32 1.442695, %v2881_v53 }
 0x413   : > { %3896 = vmatmul.msk.bf16.gmra.mxu0 %vm1641_vm15, %v2102_v37  ;;  %4482 = vpow2.f32 %v2888_v18 }
 0x414   : > { %4484 = vpow2.f32 %v2892_v56 }
 0x415   : > { %4486 = vpow2.f32 %v2894_v55 }
 0x418   : > { %v4481_v37 = vpop.eup %4480 }
 0x419   : > { %v4483_v39 = vpop.eup %4482 }
 0x41a   : > { %v2938_v25 = vpack.c.bf16 %v4479_v45, %v4483_v39  ;;  %v4485_v21 = vpop.eup %4484 }
 0x41d   : > { %v6161_v5 = vpop.f32.mrf.mxu2 }
 0x41e   : > { %v2843_v43 = vpop.f32.mrf.mxu3 }
 0x41f   : > { %v6164_v59 = vadd.f32 %v2843_v43, %v5868_v35  ;;  %v2923_v43 = vsel %vm1641_vm15, %v4481_v37, 0.0 }
 0x421   : > { %v2872_v36 = vsel %vm1641_vm15, %v6164_v59, -inf }
 0x422   : > { %2873 = vmax.xlane.f32.xlu2 %v2872_v36  ;;  %v2908_v36 = vsel %vm1641_vm15, %v4483_v39, 0.0 }
 0x423   : > { %3897 = vmatmul.msk.bf16.gmra.mxu0 %vm1641_vm15, %v2103_v15  ;;  %v2896_v15 = vmul.f32 1.442695, %v2882_v19 }
 0x425   : > { %v6170_v24 = vpop.f32.mrf.mxu2  ;;  %4488 = vpow2.f32 %v2896_v15 }
 0x426   : > { %v2845_v54 = vpop.f32.mrf.mxu3 }
 0x427   : > { %v6173_v16 = vadd.f32 %v2845_v54, %v5868_v35  ;;  %v4487_v54 = vpop.eup %4486 }
 0x429   : > { %v2875_v47 = vsel %vm1641_vm15, %v6173_v16, -inf }
 0x42a   : > { %2080 = vadd.xlane.f32.xlu2 %v2079_v29  ;;  %2876 = vmax.xlane.f32.xlu1 %v2875_v47  ;;  %v2917_v29 = vsel %vm1641_vm15, %v4487_v54, 0.0  ;;  %v2914_v47 = vsel %vm1641_vm15, %v4485_v21, 0.0 }
 0x42d   : > { %v2404_v13 = vpop.f32.mrf.mxu2 }
 0x42e   : > { %v6194_v34 = vadd.f32 %v2404_v13, %v5868_v35  ;;  %v4489_v13 = vpop.eup %4488 }
 0x430   : > { %v2429_v33 = vsel %vm1641_vm15, %v6194_v34, -inf }
 0x432   : > { %2086 = vadd.xlane.f32.xlu2 %v2085_v26  ;;  %2089 = vadd.xlane.f32.xlu1 %v2088_v30  ;;  %v2920_v26 = vsel %vm1641_vm15, %v4489_v13, 0.0  ;;  %v2939_v30 = vpack.c.bf16 %v4487_v54, %v4485_v21 }
 0x433   : > { %3898 = vmatmul.msk.bf16.gmra.mxu0 %vm1641_vm15, %v2104_v50 }
 0x435   : > { %v2406_v20 = vpop.f32.mrf.mxu2 }
 0x436   : > { %v6185_v12 = vadd.f32 %v2406_v20, %v5868_v35 }
 0x438   : > { %v2432_v44 = vsel %vm1641_vm15, %v6185_v12, -inf }
 0x439   : > { %2433 = vmax.xlane.f32.xlu0 %v2432_v44 }
 0x43a   : > { %2098 = vadd.xlane.f32.xlu2 %v2097_v28  ;;  %2912 = vadd.xlane.f32.xlu1 %v2911_v10  ;;  %v2940_v10 = vpack.c.bf16 %v4481_v37, %v4489_v13 }
 0x43d   : > { %v2409_v31 = vpop.f32.mrf.mxu2 }
 0x441   : > { %2924 = vadd.xlane.f32.xlu0 %v2923_v43 }
 0x442   : > { %2430 = vmax.xlane.f32.xlu1 %v2429_v33  ;;  %2909 = vadd.xlane.f32.xlu2 %v2908_v36 }
 0x443   : > { %4034 = vmatmul.msk.bf16.vlgmr.msrb.gmra.mxu0 %vm1641_vm15, %v2938_v25 }
 0x445   : > { %v2411_v27 = vpop.f32.mrf.mxu2 }
 0x446   : > { %v6203_v3 = vadd.f32 %v2411_v27, %v5868_v35 }
 0x448   : > { %v2438_v23 = vsel %vm1641_vm15, %v6203_v3, -inf }
 0x449   : > { %2439 = vmax.xlane.f32.xlu0 %v2438_v23 }
 0x44a   : > { %2918 = vadd.xlane.f32.xlu1 %v2917_v29  ;;  %2915 = vadd.xlane.f32.xlu2 %v2914_v47 }
 0x44c   : > { %v2868_v51 = vpop.xlane.xlu0 %2867 }
 0x44d   : > { %v2884_v8 = vsub.f32 %v6117_v42, %v2868_v51  ;;  %v2414_v52 = vpop.f32.mrf.mxu2  ;;  %v6218_v42 = vadd.f32 %v2409_v31, %v5868_v35 }
 0x44e   : > { %v6211_v6 = vadd.f32 %v2414_v52, %v5868_v35 }
 0x44f   : > { %v2900_v57 = vmul.f32 1.442695, %v2884_v8  ;;  %v2435_v45 = vsel %vm1641_vm15, %v6218_v42, -inf }
 0x450   : > { %v2441_v4 = vsel %vm1641_vm15, %v6211_v6, -inf }
 0x451   : > { %4490 = vpow2.f32 %v2900_v57  ;;  %2442 = vmax.xlane.f32.xlu0 %v2441_v4 }
 0x452   : > { %2921 = vadd.xlane.f32.xlu1 %v2920_v26 }
 0x453   : > { %4035 = vmatmul.msk.bf16.gmra.mxu0 %vm1641_vm15, %v2939_v30 }
 0x454   : > { %v2871_v50 = vpop.xlane.xlu2 %2870 }
 0x455   : > { %v2885_v46 = vsub.f32 %v6125_v60, %v2871_v50  ;;  %v2416_v7 = vpop.f32.mrf.mxu2 }
 0x456   : > { %v6225_v49 = vadd.f32 %v2416_v7, %v5868_v35 }
 0x457   : > { %v4491_v41 = vpop.eup %4490  ;;  %v2902_v18 = vmul.f32 1.442695, %v2885_v46 }
 0x458   : > { %v2926_v20 = vsel %vm1641_vm15, %v4491_v41, 0.0  ;;  %v2444_v44 = vsel %vm1641_vm15, %v6225_v49, -inf }
 0x459   : > { %4492 = vpow2.f32 %v2902_v18  ;;  %2927 = vadd.xlane.f32.xlu2 %v2926_v20 }
 0x45a   : > { %2436 = vmax.xlane.f32.xlu1 %v2435_v45 }
 0x45c   : > { %v2075_v15 = vpop.xlane.xlu2 %2074 }
 0x45d   : > { %v2419_v28 = vpop.f32.mrf.mxu2 }
 0x45e   : > { %v6232_v56 = vadd.f32 %v2419_v28, %v5868_v35 }
 0x45f   : > { %v4493_v53 = vpop.eup %4492 }
 0x460   : > { %v2929_v60 = vsel %vm1641_vm15, %v4493_v53, 0.0  ;;  %v2447_v55 = vsel %vm1641_vm15, %v6232_v56, -inf  ;;  %v2941_v39 = vpack.c.bf16 %v4493_v53, %v4491_v41 }
 0x461   : > { %2445 = vmax.xlane.f32.xlu2 %v2444_v44 }
 0x462   : > { %2930 = vadd.xlane.f32.xlu1 %v2929_v60 }
 0x463   : > { %4036 = vmatmul.msk.bf16.gmra.mxu0 %vm1641_vm15, %v2940_v10 }
 0x465   : > { %v2072_v63 = vpop.xlane.xlu0 %2071  ;;  %v2421_v21 = vpop.f32.mrf.mxu2 }
 0x466   : > { %4494 = vrcp.f32 %v2072_v63  ;;  %v6253_v30 = vadd.f32 %v2421_v21, %v5868_v35 }
 0x468   : > { %v2450_v18 = vsel %vm1641_vm15, %v6253_v30, -inf }
 0x469   : > { %2448 = vmax.xlane.f32.xlu2 %v2447_v55 }
 0x46c   : > { %v4495_v19 = vpop.eup %4494 }
 0x46d   : > { %v2078_v33 = vpop.xlane.xlu0 %2077  ;;  %v2424_v47 = vpop.f32.mrf.mxu2 }
 0x46e   : > { %v6268_v60 = vadd.f32 %v2424_v47, %v5868_v35 }
 0x470   : > { %v2169_v31 = vpop.f32.mrf.mxu0 }
 0x471   : > { %v2204_v37 = vmul.f32 %v4495_v19, %v2169_v31 }
 0x473   : > { %4037 = vmatmul.msk.bf16.gmra.mxu0 %vm1641_vm15, %v2941_v39  ;;  %v2453_v39 = vsel %vm1641_vm15, %v6268_v60, -inf }
 0x475   : > { %v6246_v54 = vpop.xlane.xlu0 %2083  ;;  %v2426_v41 = vpop.f32.mrf.mxu2 }
 0x476   : > { %v6261_v7 = vadd.f32 %v2426_v41, %v5868_v35 }
 0x478   : > { %v6237_v43 = vpop.f32.mrf.mxu0  ;;  %v2456_v63 = vsel %vm1641_vm15, %v6261_v7, -inf }
 0x47b   : > { %2224 = vrot.lane.b32.xlu1 %v2204_v37, %s5013_s22 }
 0x47d   : > { %v2093_v52 = vpop.xlane.xlu0 %2092 }
 0x480   : > { %v6240_v25 = vpop.f32.mrf.mxu0 }
 0x485   : > { %v2096_v45 = vpop.xlane.xlu0 %2095 }
 0x488   : > { %v6242_v36 = vpop.f32.mrf.mxu0 }
 0x490   : > { %v6244_v27 = vpop.f32.mrf.mxu0 }
 0x495   : > { %v2874_v23 = vpop.xlane.xlu2 %2873 }
 0x496   : > { %v2886_v29 = vsub.f32 %v6164_v59, %v2874_v23 }
 0x498   : > { %v2904_v51 = vmul.f32 1.442695, %v2886_v29  ;;  %v6249_v8 = vpop.f32.mrf.mxu0 }
 0x49a   : > { %4496 = vpow2.f32 %v2904_v51  ;;  %v1711_v51 = vsel %vm1641_vm15, %v5973_v2, 0.0 }
 0x49b   : > { %4498 = vrcp.f32 %v2093_v52 }
 0x49d   : > { %v2877_v13 = vpop.xlane.xlu1 %2876  ;;  %v2081_v57 = vpop.xlane.xlu2 %2080 }
 0x49e   : > { %v2887_v4 = vsub.f32 %v6173_v16, %v2877_v13 }
 0x4a0   : > { %v4497_v26 = vpop.eup %4496  ;;  %v2906_v50 = vmul.f32 1.442695, %v2887_v4  ;;  %v6255_v46 = vpop.f32.mrf.mxu0 }
 0x4a1   : > { %v2932_v59 = vsel %vm1641_vm15, %v4497_v26, 0.0  ;;  %v4499_v53 = vpop.eup %4498 }
 0x4a2   : > { %4500 = vpow2.f32 %v2906_v50  ;;  %2933 = vadd.xlane.f32.xlu0 %v2932_v59 }
 0x4a3   : > { %4502 = vrcp.f32 %v2096_v45 }
 0x4a5   : > { %v6263_v16 = vpop.xlane.xlu1 %2089  ;;  %2451 = vmax.xlane.f32.xlu1 %v2450_v18  ;;  %v6265_v20 = vpop.xlane.xlu2 %2086 }
 0x4a8   : > { %v4501_v44 = vpop.eup %4500  ;;  %v2186_v28 = vpop.f32.mrf.mxu0 }
 0x4a9   : > { %v6270_v10 = vmul.f32 %v4499_v53, %v2186_v28  ;;  %v2935_v55 = vsel %vm1641_vm15, %v4501_v44, 0.0  ;;  %v2942_v31 = vpack.c.bf16 %v4501_v44, %v4497_v26  ;;  %v4503_v21 = vpop.eup %4502 }
 0x4aa   : > { %2936 = vadd.xlane.f32.xlu2 %v2935_v55  ;;  %2457 = vmax.xlane.f32.xlu0 %v2456_v63  ;;  %v1720_v55 = vsel %vm1641_vm15, %v6005_v48, 0.0 }
 0x4ab   : > { %4038 = vmatmul.msk.bf16.gmra.mxu0 %vm1641_vm15, %v2942_v31 }
 0x4ac   : > { %v2434_v35 = vpop.xlane.xlu0 %2433 }
 0x4ad   : > { %v6278_v19 = vpop.xlane.xlu1 %2912  ;;  %2454 = vmax.xlane.f32.xlu1 %v2453_v39  ;;  %v2099_v37 = vpop.xlane.xlu2 %2098  ;;  %v2460_v29 = vsub.f32 %v6185_v12, %v2434_v35 }
 0x4ae   : > { %4504 = vrcp.f32 %v2099_v37  ;;  %v1723_v37 = vsel %vm1641_vm15, %v6007_v32, 0.0 }
 0x4af   : > { %4506 = vrcp.f32 %v2075_v15  ;;  %v2471_v52 = vmul.f32 1.442695, %v2460_v29  ;;  %v1714_v15 = vsel %vm1641_vm15, %v5984_v1, 0.0 }
 0x4b0   : > { %v2189_v23 = vpop.f32.mrf.mxu0  ;;  %4508 = vrcp.f32 %v2078_v33 }
 0x4b1   : > { %v6281_v47 = vmul.f32 %v4503_v21, %v2189_v23  ;;  %4510 = vpow2.f32 %v2471_v52 }
 0x4b4   : > { %v4505_v26 = vpop.eup %4504  ;;  %v6291_v2 = vpop.xlane.xlu0 %2924 }
 0x4b5   : > { %v2431_v13 = vpop.xlane.xlu1 %2430  ;;  %1712 = vadd.xlane.f32.xlu1 %v1711_v51  ;;  %v6288_v12 = vpop.xlane.xlu2 %2909 }
 0x4b6   : > { %v2459_v4 = vsub.f32 %v6194_v34, %v2431_v13  ;;  %v4507_v18 = vpop.eup %4506 }
 0x4b7   : > { %v2205_v45 = vmul.f32 %v4507_v18, %v6237_v43  ;;  %v4509_v34 = vpop.eup %4508 }
 0x4b8   : > { %v2469_v50 = vmul.f32 1.442695, %v2459_v4  ;;  %v2191_v59 = vpop.f32.mrf.mxu0  ;;  %v6298_v33 = vpop.eup %4510  ;;  %v2206_v28 = vmul.f32 %v4509_v34, %v6240_v25 }
 0x4b9   : > { %v6286_v41 = vmul.f32 %v4505_v26, %v2191_v59 }
 0x4ba   : > { %4512 = vpow2.f32 %v2469_v50 }
 0x4bb   : > { %4514 = vrcp.f32 %v2081_v57 }
 0x4bc   : > { %v2440_v57 = vpop.xlane.xlu0 %2439 }
 0x4bd   : > { %v6295_v53 = vpop.xlane.xlu1 %2918  ;;  %1715 = vadd.xlane.f32.xlu1 %v1714_v15  ;;  %v6307_v1 = vpop.xlane.xlu2 %2915  ;;  %v2462_v25 = vsub.f32 %v6203_v3, %v2440_v57 }
 0x4be   : > { %2226 = vrot.lane.b32.xlu0 %v2205_v45, %s5013_s22 }
 0x4bf   : > { %v2475_v21 = vmul.f32 1.442695, %v2462_v25 }
 0x4c0   : > { %v6300_v44 = vpop.eup %4512  ;;  %v3007_v45 = vpop.f32.mrf.mxu0 }
 0x4c1   : > { %v2519_v43 = vpack.c.bf16 %v6298_v33, %v6300_v44  ;;  %v4515_v63 = vpop.eup %4514  ;;  %4516 = vpow2.f32 %v2475_v21 }
 0x4c2   : > { %2228 = vrot.lane.b32.xlu2 %v2206_v28, %s5013_s22  ;;  %v2207_v39 = vmul.f32 %v4515_v63, %v6242_v36  ;;  %v1729_v36 = vsel %vm1641_vm15, %v6101_v58, 0.0 }
 0x4c3   : > { %3964 = vmatmul.msk.bf16.vlgmr.msrb.gmra.mxu1 %vm1641_vm15, %v2519_v43  ;;  %v1717_v43 = vsel %vm1641_vm15, %v5986_v62, 0.0 }
 0x4c4   : > { %v2443_v52 = vpop.xlane.xlu0 %2442 }
 0x4c5   : > { %v6311_v31 = vpop.xlane.xlu1 %2921  ;;  %1721 = vadd.xlane.f32.xlu1 %v1720_v55 }
 0x4c7   : > { %v6323_v3 = vpop.eup %4516 }
 0x4c8   : > { %v3009_v55 = vpop.f32.mrf.mxu0 }
 0x4ca   : > { %2230 = vrot.lane.b32.xlu2 %v2207_v39, %s5013_s22 }
 0x4cc   : > { %v6316_v35 = vpop.xlane.xlu2 %2927 }
 0x4cd   : > { %v2437_v23 = vpop.xlane.xlu1 %2436  ;;  %1724 = vadd.xlane.f32.xlu1 %v1723_v37 }
 0x4ce   : > { %v2461_v48 = vsub.f32 %v6218_v42, %v2437_v23  ;;  %v2463_v42 = vsub.f32 %v6211_v6, %v2443_v52 }
 0x4d0   : > { %v2473_v29 = vmul.f32 1.442695, %v2461_v48  ;;  %v2477_v50 = vmul.f32 1.442695, %v2463_v42 }
 0x4d2   : > { %4518 = vpow2.f32 %v2473_v29 }
 0x4d4   : > { %v2446_v51 = vpop.xlane.xlu2 %2445 }
 0x4d5   : > { %1730 = vadd.xlane.f32.xlu1 %v1729_v36  ;;  %v2464_v32 = vsub.f32 %v6225_v49, %v2446_v51  ;;  %v6333_v58 = vpop.xlane.xlu1 %2930  ;;  %v1708_v49 = vsel %vm1641_vm15, %v5969_v22, 0.0  ;;  %v1726_v22 = vsel %vm1641_vm15, %v6099_v11, 0.0  ;;  %v3012_v11 = vpop.f32.mrf.mxu0 }
 0x4d7   : > { %v2479_v26 = vmul.f32 1.442695, %v2464_v32 }
 0x4d8   : > { %v6325_v13 = vpop.eup %4518 }
 0x4d9   : > { %v2520_v4 = vpack.c.bf16 %v6323_v3, %v6325_v13  ;;  %4520 = vpow2.f32 %v2479_v26 }
 0x4da   : > { %4522 = vpow2.f32 %v2477_v50 }
 0x4db   : > { %3965 = vmatmul.msk.bf16.gmra.mxu1 %vm1641_vm15, %v2520_v4  ;;  %4524 = vrcp.f32 %v6246_v54 }
 0x4dc   : > { %4526 = vrcp.f32 %v6263_v16  ;;  %v2449_v21 = vpop.xlane.xlu2 %2448 }
 0x4dd   : > { %4528 = vrcp.f32 %v6288_v12  ;;  %v3014_v39 = vpop.f32.mrf.mxu0 }
 0x4de   : > { %4530 = vrcp.f32 %v6265_v20  ;;  %v2465_v20 = vsub.f32 %v6232_v56, %v2449_v21 }
 0x4df   : > { %v6335_v59 = vpop.eup %4520  ;;  %4532 = vrcp.f32 %v6295_v53 }
 0x4e0   : > { %v6339_v18 = vpop.eup %4522  ;;  %4534 = vrcp.f32 %v6278_v19  ;;  %v2481_v23 = vmul.f32 1.442695, %v2465_v20 }
 0x4e1   : > { %v2521_v6 = vpack.c.bf16 %v6335_v59, %v6339_v18  ;;  %v4525_v15 = vpop.eup %4524  ;;  %4536 = vrcp.f32 %v6307_v1 }
 0x4e2   : > { %v2208_v54 = vmul.f32 %v4525_v15, %v6244_v27  ;;  %v4527_v28 = vpop.eup %4526  ;;  %v2492_v27 = vsel %vm1641_vm15, %v6298_v33, 0.0  ;;  %4538 = vpow2.f32 %v2481_v23 }
 0x4e3   : > { %v2210_v16 = vmul.f32 %v4527_v28, %v6255_v46  ;;  %v4529_v63 = vpop.eup %4528 }
 0x4e4   : > { %v3042_v57 = vmul.f32 %v4529_v63, %v3007_v45  ;;  %v4531_v62 = vpop.eup %4530 }
 0x4e5   : > { %v4533_v46 = vpop.eup %4532  ;;  %v2209_v12 = vmul.f32 %v4531_v62, %v6249_v8 }
 0x4e6   : > { %v3045_v25 = vmul.f32 %v4533_v46, %v3014_v39  ;;  %v4535_v33 = vpop.eup %4534 }
 0x4e7   : > { %v3043_v37 = vmul.f32 %v4535_v33, %v3009_v55  ;;  %v4537_v53 = vpop.eup %4536  ;;  %v2498_v55 = vsel %vm1641_vm15, %v6323_v3, 0.0 }
 0x4e8   : > { %1709 = vadd.xlane.f32.xlu0 %v1708_v49  ;;  %v3044_v19 = vmul.f32 %v4537_v53, %v3012_v11  ;;  %v4539_v52 = vpop.eup %4538 }
 0x4e9   : > { %v2507_v63 = vsel %vm1641_vm15, %v4539_v52, 0.0 }
 0x4eb   : > { %3966 = vmatmul.msk.bf16.gmra.mxu1 %vm1641_vm15, %v2521_v6 }
 0x4ed   : > { %v2225_v34 = vpop.permute.xlu1 %2224 }
 0x4ee   : > { %2255 = vst.msk [vmem:[#allocation3] sm:$0xff] %vm2254_vm1, %v2225_v34  ;;  %2232 = vrot.lane.b32.xlu1 %v2208_v54, %s5013_s22 }
 0x4f0   : > { %1727 = vadd.xlane.f32.xlu0 %v1726_v22 }
 0x4f3   : > { %1718 = vadd.xlane.f32.xlu2 %v1717_v43 }
 0x4f6   : > { %2236 = vrot.lane.b32.xlu1 %v2210_v16, %s5013_s22 }
 0x4f8   : > { %2493 = vadd.xlane.f32.xlu0 %v2492_v27 }
 0x4fe   : > { %3062 = vrot.lane.b32.xlu1 %v3042_v57, %s5012_s27 }
 0x50b   : > { %2234 = vrot.lane.b32.xlu2 %v2209_v12, %s5013_s22 }
 0x50c   : > { %3068 = vrot.lane.b32.xlu0 %v3045_v25, %s5012_s27  ;;  %v3017_v25 = vpop.f32.mrf.mxu0 }
 0x513   : > { %3064 = vrot.lane.b32.xlu2 %v3043_v37, %s5012_s27 }
 0x514   : > { %v3019_v37 = vpop.f32.mrf.mxu0 }
 0x515   : > { %v6367_v48 = vpop.xlane.xlu0 %2933 }
 0x518   : > { %v2452_v8 = vpop.xlane.xlu1 %2451 }
 0x519   : > { %v2466_v29 = vsub.f32 %v6253_v30, %v2452_v8  ;;  %v2489_v30 = vsel %vm1641_vm15, %v6300_v44, 0.0 }
 0x51b   : > { %v2483_v36 = vmul.f32 1.442695, %v2466_v29  ;;  %3066 = vrot.lane.b32.xlu2 %v3044_v19, %s5012_s27 }
 0x51d   : > { %4540 = vpow2.f32 %v2483_v36  ;;  %v6371_v51 = vpop.xlane.xlu2 %2936  ;;  %v2458_v32 = vpop.xlane.xlu0 %2457 }
 0x51e   : > { %v2468_v26 = vsub.f32 %v6261_v7, %v2458_v32 }
 0x520   : > { %v2455_v1 = vpop.xlane.xlu1 %2454  ;;  %v2487_v6 = vmul.f32 1.442695, %v2468_v26 }
 0x521   : > { %v2467_v56 = vsub.f32 %v6268_v60, %v2455_v1  ;;  %v2495_v60 = vsel %vm1641_vm15, %v6325_v13, 0.0  ;;  %v2504_v13 = vsel %vm1641_vm15, %v6335_v59, 0.0 }
 0x523   : > { %v4541_v4 = vpop.eup %4540  ;;  %v2485_v50 = vmul.f32 1.442695, %v2467_v56 }
 0x524   : > { %v2522_v42 = vpack.c.bf16 %v4541_v4, %v4539_v52 }
 0x525   : > { %v6378_v49 = vpop.permute.xlu2 %2228 }
 0x526   : > { %3967 = vmatmul.msk.bf16.gmra.mxu1 %vm1641_vm15, %v2522_v42 }
 0x528   : > { %v1713_v45 = vpop.xlane.xlu1 %1712  ;;  %2490 = vadd.xlane.f32.xlu1 %v2489_v30 }
 0x529   : > { %4542 = vrcp.f32 %v1713_v45 }
 0x52a   : > { %4544 = vpow2.f32 %v2485_v50 }
 0x52b   : > { %4546 = vpow2.f32 %v2487_v6 }
 0x52d   : > { %v2231_v44 = vpop.permute.xlu2 %2230 }
 0x52f   : > { %v4543_v15 = vpop.eup %4542 }
 0x530   : > { %v1829_v7 = vmul.f32 %v4543_v15, %v6137_v61  ;;  %v1716_v54 = vpop.xlane.xlu1 %1715  ;;  %2496 = vadd.xlane.f32.xlu1 %v2495_v60  ;;  %v4545_v34 = vpop.eup %4544 }
 0x531   : > { %4548 = vrcp.f32 %v1716_v54  ;;  %v2227_v22 = vpop.permute.xlu0 %2226  ;;  %v4547_v28 = vpop.eup %4546  ;;  %v2513_v3 = vsel %vm1641_vm15, %v4545_v34, 0.0 }
 0x532   : > { %1839 = vst.msk [vmem:[#allocation3 + $0x18] sm:$0xff] %vm1576_vm0, %v1829_v7  ;;  %v2523_v43 = vpack.c.bf16 %v4547_v28, %v4545_v34  ;;  %v2516_v59 = vsel %vm1641_vm15, %v4547_v28, 0.0 }
 0x533   : > { %2258 = vst.msk [vmem:[#allocation3 + $0x18] sm:$0xff] %vm2254_vm1, %v2231_v44 }
 0x534   : > { %2256 = vst.msk [vmem:[#allocation3 + $0x8] sm:$0xff] %vm2254_vm1, %v2227_v22 }
 0x536   : > { %2499 = vadd.xlane.f32.xlu0 %v2498_v55  ;;  %3968 = vmatmul.msk.bf16.gmra.mxu1 %vm1641_vm15, %v2523_v43 }
 0x537   : > { %v4549_v61 = vpop.eup %4548 }
 0x538   : > { %v1830_v16 = vmul.f32 %v4549_v61, %v6143_v14  ;;  %v1722_v27 = vpop.xlane.xlu1 %1721  ;;  %2505 = vadd.xlane.f32.xlu1 %v2504_v13  ;;  %v2501_v14 = vsel %vm1641_vm15, %v6339_v18, 0.0 }
 0x539   : > { %4550 = vrcp.f32 %v1722_v27 }
 0x53a   : > { %1840 = vst.msk [vmem:[#allocation3 + $0x20] sm:$0xff] %vm1576_vm0, %v1830_v16 }
 0x53e   : > { %2508 = vadd.xlane.f32.xlu0 %v2507_v63 }
 0x53f   : > { %v4551_v57 = vpop.eup %4550 }
 0x540   : > { %v1832_v11 = vmul.f32 %v4551_v57, %v6154_v17  ;;  %v1725_v62 = vpop.xlane.xlu1 %1724  ;;  %2514 = vadd.xlane.f32.xlu1 %v2513_v3  ;;  %v2510_v17 = vsel %vm1641_vm15, %v4541_v4, 0.0  ;;  %v2588_v19 = vpop.f32.mrf.mxu1 }
 0x541   : > { %4552 = vrcp.f32 %v1725_v62 }
 0x542   : > { %1842 = vst.msk [vmem:[#allocation3 + $0x30] sm:$0xff] %vm1576_vm0, %v1832_v11 }
 0x544   : > { %2502 = vadd.xlane.f32.xlu2 %v2501_v14 }
 0x546   : > { %2517 = vadd.xlane.f32.xlu0 %v2516_v59 }
 0x547   : > { %v4553_v39 = vpop.eup %4552 }
 0x548   : > { %v1833_v46 = vmul.f32 %v4553_v39, %v6159_v9  ;;  %v1731_v12 = vpop.xlane.xlu1 %1730  ;;  %v2590_v56 = vpop.f32.mrf.mxu1 }
 0x549   : > { %4554 = vrcp.f32 %v1731_v12 }
 0x54a   : > { %1843 = vst.msk [vmem:[#allocation3 + $0x38] sm:$0xff] %vm1576_vm0, %v1833_v46  ;;  %4556 = vrcp.f32 %v6291_v2 }
 0x54c   : > { %2511 = vadd.xlane.f32.xlu2 %v2510_v17 }
 0x54f   : > { %v4555_v33 = vpop.eup %4554 }
 0x550   : > { %v1835_v18 = vmul.f32 %v4555_v33, %v6170_v24  ;;  %v4557_v21 = vpop.eup %4556 }
 0x551   : > { %v3047_v20 = vmul.f32 %v4557_v21, %v3019_v37 }
 0x552   : > { %1845 = vst.msk [vmem:[#allocation3 + $0x48] sm:$0xff] %vm1576_vm0, %v1835_v18 }
 0x558   : > { %v2593_v26 = vpop.f32.mrf.mxu1 }
 0x559   : > { %3072 = vrot.lane.b32.xlu1 %v3047_v20, %s5012_s27 }
 0x55b   : > { %v1710_v9 = vpop.xlane.xlu0 %1709 }
 0x55c   : > { %4558 = vrcp.f32 %v1710_v9 }
 0x560   : > { %v2233_v53 = vpop.permute.xlu1 %2232  ;;  %v2595_v45 = vpop.f32.mrf.mxu1 }
 0x561   : > { %2259 = vst.msk [vmem:[#allocation3 + $0x20] sm:$0xff] %vm2254_vm1, %v2233_v53  ;;  %2240 = vrot.lane.b32.xlu1 %v6281_v47, %s5013_s22 }
 0x562   : > { %v4559_v23 = vpop.eup %4558 }
 0x563   : > { %v1828_v2 = vmul.f32 %v4559_v23, %v6130_v0  ;;  %v1728_v8 = vpop.xlane.xlu0 %1727  ;;  %v4224_v23 = vld [vmem:[#allocation17 + $0x28] sm:$0xff] }
 0x564   : > { %4560 = vrcp.f32 %v1728_v8 }
 0x565   : > { %1838 = vst.msk [vmem:[#allocation3 + $0x10] sm:$0xff] %vm1576_vm0, %v1828_v2 }
 0x566   : > { %2257 = vst.msk [vmem:[#allocation3 + $0x10] sm:$0xff] %vm2254_vm1, %v6378_v49  ;;  %v1719_v24 = vpop.xlane.xlu2 %1718 }
 0x567   : > { %4562 = vrcp.f32 %v1719_v24 }
 0x568   : > { %v2237_v29 = vpop.permute.xlu1 %2236 }
 0x569   : > { %2261 = vst.msk [vmem:[#allocation3 + $0x30] sm:$0xff] %vm2254_vm1, %v2237_v29 }
 0x56a   : > { %v4561_v36 = vpop.eup %4560 }
 0x56b   : > { %v1834_v1 = vmul.f32 %v4561_v36, %v6161_v5  ;;  %v2494_v47 = vpop.xlane.xlu0 %2493  ;;  %v3022_v5 = vpop.f32.mrf.mxu0 }
 0x56c   : > { %4564 = vrcp.f32 %v2494_v47 }
 0x56d   : > { %v4563_v52 = vpop.eup %4562  ;;  %1844 = vst.msk [vmem:[#allocation3 + $0x40] sm:$0xff] %vm1576_vm0, %v1834_v1  ;;  %4566 = vrcp.f32 %v6311_v31  ;;  %v2598_v31 = vpop.f32.mrf.mxu1 }
 0x56e   : > { %v1831_v0 = vmul.f32 %v4563_v52, %v6149_v38  ;;  %v2235_v32 = vpop.permute.xlu2 %2234  ;;  %4568 = vrcp.f32 %v6333_v58  ;;  %v4223_v52 = vld [vmem:[#allocation17 + $0x20] sm:$0xff] }
 0x570   : > { %1841 = vst.msk [vmem:[#allocation3 + $0x28] sm:$0xff] %vm1576_vm0, %v1831_v0  ;;  %v6427_v15 = vpop.permute.xlu1 %3062  ;;  %v4222_v0 = vld [vmem:[#allocation17 + $0x18] sm:$0xff]  ;;  %vm2673_vm0 = vcmask 785920  }
 0x571   : > { %2260 = vst.msk [vmem:[#allocation3 + $0x28] sm:$0xff] %vm2254_vm1, %v2235_v32 }
 0x572   : > { %v4565_v4 = vpop.eup %4564 }
 0x573   : > { %v2624_v42 = vmul.f32 %v4565_v4, %v2590_v56  ;;  %v4567_v50 = vpop.eup %4566  ;;  %v3024_v38 = vpop.f32.mrf.mxu0  ;;  %v4221_v56 = vld [vmem:[#allocation17 + $0x10] sm:$0xff] }
 0x574   : > { %v3046_v30 = vmul.f32 %v4567_v50, %v3017_v25  ;;  %v4569_v49 = vpop.eup %4568  ;;  %v4233_v50 = vld [vmem:[#allocation18 + $0x30] sm:$0xff] }
 0x575   : > { %2645 = vrot.lane.b32.xlu0 %v2624_v42, %s5014_s8  ;;  %v3049_v6 = vmul.f32 %v4569_v49, %v3024_v38  ;;  %v4234_v42 = vld [vmem:[#allocation18 + $0x38] sm:$0xff]  ;;  %v4232_v38 = vld [vmem:[#allocation18 + $0x28] sm:$0xff]  ;;  %v4231_v49 = vld [vmem:[#allocation18 + $0x20] sm:$0xff] }
 0x576   : > { %v6430_v58 = vpop.permute.xlu2 %3064  ;;  %3303 = vmatpush.bf16.msra.mxu1 %v4234_v42 }
 0x57a   : > { %3304 = vmatpush.bf16.msra.mxu1 %v4233_v50 }
 0x57b   : > { %v3027_v63 = vpop.f32.mrf.mxu0 }
 0x57d   : > { %2238 = vrot.lane.b32.xlu0 %v6270_v10, %s5013_s22  ;;  %v2600_v10 = vpop.f32.mrf.mxu1 }
 0x57e   : > { %v6433_v44 = vpop.permute.xlu0 %3068  ;;  %v6436_v61 = vpop.permute.xlu2 %3066  ;;  %3305 = vmatpush.bf16.msra.mxu1 %v4232_v38 }
 0x582   : > { %3306 = vmatpush.bf16.msra.mxu1 %v4231_v49 }
 0x583   : > { %v3029_v17 = vpop.f32.mrf.mxu0 }
 0x585   : > { %3070 = vrot.lane.b32.xlu0 %v3046_v30, %s5012_s27 }
 0x58d   : > { %3076 = vrot.lane.b32.xlu0 %v3049_v6, %s5012_s27 }
 0x59b   : > { %v2491_v60 = vpop.xlane.xlu1 %2490 }
 0x59c   : > { %4570 = vrcp.f32 %v2491_v60 }
 0x59d   : > { %4572 = vrcp.f32 %v6316_v35  ;;  %v4226_v35 = vld [vmem:[#allocation17 + $0x38] sm:$0xff] }
 0x59e   : > { %3183 = vmatpush.bf16.msra.mxu2 %v4226_v35  ;;  %4243 = vmatpush.bf16.msra.mxu3 %v4226_v35 }
 0x5a2   : > { %v4571_v7 = vpop.eup %4570 }
 0x5a3   : > { %v2497_v54 = vpop.xlane.xlu1 %2496  ;;  %v2623_v34 = vmul.f32 %v4571_v7, %v2588_v19  ;;  %v2603_v22 = vpop.f32.mrf.mxu1  ;;  %v4230_v7 = vld [vmem:[#allocation18 + $0x18] sm:$0xff] }
 0x5a4   : > { %v4573_v28 = vpop.eup %4572  ;;  %4574 = vrcp.f32 %v2497_v54  ;;  %3307 = vmatpush.bf16.msra.mxu1 %v4230_v7 }
 0x5a5   : > { %2643 = vrot.lane.b32.xlu2 %v2623_v34, %s5014_s8  ;;  %v3048_v43 = vmul.f32 %v4573_v28, %v3022_v5  ;;  %v4220_v5 = vld [vmem:[#allocation17 + $0x8] sm:$0xff]  ;;  %v4229_v34 = vld [vmem:[#allocation18 + $0x10] sm:$0xff] }
 0x5a8   : > { %3308 = vmatpush.bf16.msra.mxu1 %v4229_v34 }
 0x5a9   : > { %v2500_v13 = vpop.xlane.xlu0 %2499 }
 0x5aa   : > { %v4575_v3 = vpop.eup %4574 }
 0x5ab   : > { %v2506_v55 = vpop.xlane.xlu1 %2505  ;;  %v2605_v16 = vpop.f32.mrf.mxu1  ;;  %v2625_v39 = vmul.f32 %v4575_v3, %v2593_v26  ;;  %v4219_v26 = vld [vmem:[#allocation17] sm:$0xff] }
 0x5ad   : > { %3074 = vrot.lane.b32.xlu2 %v3048_v43, %s5012_s27 }
 0x5b1   : > { %v2509_v11 = vpop.xlane.xlu0 %2508 }
 0x5b3   : > { %v2515_v27 = vpop.xlane.xlu1 %2514  ;;  %v2608_v14 = vpop.f32.mrf.mxu1 }
 0x5b4   : > { %4576 = vrcp.f32 %v2515_v27 }
 0x5b5   : > { %2242 = vrot.lane.b32.xlu2 %v6286_v41, %s5013_s22  ;;  %v4225_v41 = vld [vmem:[#allocation17 + $0x30] sm:$0xff]  ;;  %s6624_s22 = sld [smem:[#allocation44_spill]] }
 0x5b6   : > { %3184 = vmatpush.bf16.msra.mxu2 %v4225_v41  ;;  %4244 = vmatpush.bf16.msra.mxu3 %v4225_v41 }
 0x5b7   : > { %v2503_v57 = vpop.xlane.xlu2 %2502 }
 0x5b8   : > { %4578 = vrcp.f32 %v2503_v57 }
 0x5b9   : > { %4580 = vrcp.f32 %v2500_v13  ;;  %v2518_v37 = vpop.xlane.xlu0 %2517  ;;  %v4227_v13 = vld [vmem:[#allocation18] sm:$0xff] }
 0x5ba   : > { %v4577_v62 = vpop.eup %4576  ;;  %4582 = vrcp.f32 %v6371_v51  ;;  %3185 = vmatpush.bf16.msra.mxu2 %v4224_v23  ;;  %4245 = vmatpush.bf16.msra.mxu3 %v4224_v23  ;;  %v4392_v23 = vld [vmem:[%s6570_s9] ss:$0 sm:$0xff] }
 0x5bb   : > { %v2631_v59 = vmul.f32 %v4577_v62, %v2608_v14  ;;  %4584 = vrcp.f32 %v2509_v11  ;;  %v2610_v19 = vpop.f32.mrf.mxu1 }
 0x5bc   : > { %4586 = vrcp.f32 %v2506_v55 }
 0x5bd   : > { %2647 = vrot.lane.b32.xlu2 %v2625_v39, %s5014_s8  ;;  %2659 = vrot.lane.b32.xlu0 %v2631_v59, %s5014_s8  ;;  %4588 = vrcp.f32 %v2518_v37  ;;  %v3221_v59 = vshrl.u32 %v1491_v40, 7 }
 0x5be   : > { %v4579_v46 = vpop.eup %4578  ;;  %3186 = vmatpush.bf16.msra.mxu2 %v4223_v52  ;;  %4246 = vmatpush.bf16.msra.mxu3 %v4223_v52 }
 0x5bf   : > { %v2627_v12 = vmul.f32 %v4579_v46, %v2598_v31  ;;  %v4581_v25 = vpop.eup %4580  ;;  %v2512_v20 = vpop.xlane.xlu2 %2511  ;;  %v3222_v41 = vadd.s32 8, %v3221_v59 }
 0x5c0   : > { %v4583_v33 = vpop.eup %4582  ;;  %v2626_v21 = vmul.f32 %v4581_v25, %v2595_v45  ;;  %4590 = vrcp.f32 %v2512_v20 }
 0x5c1   : > { %2651 = vrot.lane.b32.xlu1 %v2627_v12, %s5014_s8  ;;  %v3051_v18 = vmul.f32 %v4583_v33, %v3029_v17  ;;  %v4585_v51 = vpop.eup %4584  ;;  %4592 = vrcp.f32 %v6367_v48  ;;  %v3223_v17 = vstv %s5858_s10  ;;  %s3320_s10 = scalar_lea.sflag [#allocation8], %s5249_s11 }
 0x5c2   : > { %v2629_v9 = vmul.f32 %v4585_v51, %v2603_v22  ;;  %v4587_v53 = vpop.eup %4586  ;;  %3187 = vmatpush.bf16.msra.mxu2 %v4222_v0  ;;  %4247 = vmatpush.bf16.msra.mxu3 %v4222_v0  ;;  %vm3224_vm3 = vcmp.lt.s32.totalorder %v3221_v59, %v3223_v17  ;;  %vm3225_vm4 = vcmp.lt.s32.totalorder %v3222_v41, %v3223_v17 }
 0x5c3   : > { %v2628_v8 = vmul.f32 %v4587_v53, %v2600_v10  ;;  %v4589_v24 = vpop.eup %4588 }
 0x5c4   : > { %v2632_v29 = vmul.f32 %v4589_v24, %v2610_v19 }
 0x5c5   : > { %2649 = vrot.lane.b32.xlu2 %v2626_v21, %s5014_s8  ;;  %3080 = vrot.lane.b32.xlu0 %v3051_v18, %s5012_s27  ;;  %v5016_v18 = vmov 0.0  }
 0x5c6   : > { %v4591_v36 = vpop.eup %4590  ;;  %3188 = vmatpush.bf16.msra.mxu2 %v4221_v56  ;;  %4248 = vmatpush.bf16.msra.mxu3 %v4221_v56  ;;  %v4071_v37 = vsel %vm3224_vm3, 1.0, %v5016_v18  ;;  %v4072_v21 = vsel %vm3225_vm4, 1.0, %v5016_v18 }
 0x5c7   : > { %v2630_v47 = vmul.f32 %v4591_v36, %v2605_v16  ;;  %v4593_v32 = vpop.eup %4592 }
 0x5c8   : > { %v3050_v4 = vmul.f32 %v4593_v32, %v3027_v63 }
 0x5c9   : > { %2655 = vrot.lane.b32.xlu1 %v2629_v9, %s5014_s8 }
 0x5ca   : > { %3189 = vmatpush.bf16.msra.mxu2 %v4220_v5  ;;  %4249 = vmatpush.bf16.msra.mxu3 %v4220_v5  ;;  %v4393_v5 = vld [vmem:[#allocation20] ss:$0 sm:$0xff] }
 0x5cb   : > { %v6447_v2 = vpop.permute.xlu1 %3072 }
 0x5cd   : > { %2653 = vrot.lane.b32.xlu2 %v2628_v8, %s5014_s8 }
 0x5ce   : > { %3190 = vmatpush.bf16.msra.mxu2 %v4219_v26  ;;  %4250 = vmatpush.bf16.msra.mxu3 %v4219_v26 }
 0x5d1   : > { %2661 = vrot.lane.b32.xlu1 %v2632_v29, %s5014_s8 }
 0x5d3   : > { %v2241_v1 = vpop.permute.xlu1 %2240 }
 0x5d4   : > { %2263 = vst.msk [vmem:[#allocation3 + $0x40] sm:$0xff] %vm2254_vm1, %v2241_v1 }
 0x5d5   : > { %2657 = vrot.lane.b32.xlu2 %v2630_v47, %s5014_s8  ;;  %s3353_s8 = scalar_lea.hbm %s6624_s22, %s4236_s19 }
 0x5d6   : > { %s3356_s18 = sshll.u32 %s3353_s8, 4  ;;  %s3357_s18 = int_to_ptr.hbm [resolvable:$true] %s3356_s18 }
 0x5dd   : > { %3078 = vrot.lane.b32.xlu2 %v3050_v4, %s5012_s27 }
 0x5e7   : > { %v2646_v48 = vpop.permute.xlu0 %2645 }
 0x5e8   : > { %2675 = vst.msk [vmem:[#allocation3 + $0x8] sm:$0xff] %vm2673_vm0, %v2646_v48 }
 0x5e9   : > { %3094 = vst.msk [vmem:[#allocation3 + $0x8] sm:$0xff] %vm3092_vm2, %v6430_v58 }
 0x5ef   : > { %v2239_v30 = vpop.permute.xlu0 %2238 }
 0x5f0   : > { %2262 = vst.msk [vmem:[#allocation3 + $0x38] sm:$0xff] %vm2254_vm1, %v2239_v30  ;;  %v3104_v60 = vld [vmem:[#allocation3 + $0x8] sm:$0xff] }
 0x5f7   : > { %v3071_v22 = vpop.permute.xlu0 %3070 }
 0x5ff   : > { %v2644_v45 = vpop.permute.xlu2 %2643  ;;  %v3077_v43 = vpop.permute.xlu0 %3076 }
 0x600   : > { %2674 = vst.msk [vmem:[#allocation3] sm:$0xff] %vm2673_vm0, %v2644_v45 }
 0x601   : > { %3093 = vst.msk [vmem:[#allocation3] sm:$0xff] %vm3092_vm2, %v6427_v15  ;;  %v4228_v15 = vld [vmem:[#allocation18 + $0x8] sm:$0xff] }
 0x602   : > { %3309 = vmatpush.bf16.msra.mxu1 %v4228_v15 }
 0x606   : > { %3310 = vmatpush.bf16.msra.mxu1 %v4227_v13 }
 0x607   : > { %v3075_v6 = vpop.permute.xlu2 %3074 }
 0x608   : > { %v3103_v31 = vld [vmem:[#allocation3] sm:$0xff] }
 0x609   : > { %v3111_v10 = vpack.c.bf16 %v3104_v60, %v3103_v31 }
 0x60b   : > { %3191 = vmatmul.bf16.vlgmr.msra.gmra.mxu2 %v3111_v10 }
 0x60f   : > { %v2243_v54 = vpop.permute.xlu2 %2242 }
 0x610   : > { %2264 = vst.msk [vmem:[#allocation3 + $0x48] sm:$0xff] %vm2254_vm1, %v2243_v54 }
 0x617   : > { %v2648_v58 = vpop.permute.xlu2 %2647 }
 0x618   : > { %2676 = vst.msk [vmem:[#allocation3 + $0x10] sm:$0xff] %vm2673_vm0, %v2648_v58 }
 0x619   : > { %3095 = vst.msk [vmem:[#allocation3 + $0x10] sm:$0xff] %vm3092_vm2, %v6436_v61 }
 0x61f   : > { %v2650_v28 = vpop.permute.xlu2 %2649 }
 0x620   : > { %2677 = vst.msk [vmem:[#allocation3 + $0x18] sm:$0xff] %vm2673_vm0, %v2650_v28  ;;  %v3105_v16 = vld [vmem:[#allocation3 + $0x10] sm:$0xff] }
 0x621   : > { %3096 = vst.msk [vmem:[#allocation3 + $0x18] sm:$0xff] %vm3092_vm2, %v6433_v44 }
 0x627   : > { %v2654_v55 = vpop.permute.xlu2 %2653 }
 0x628   : > { %2679 = vst.msk [vmem:[#allocation3 + $0x28] sm:$0xff] %vm2673_vm0, %v2654_v55  ;;  %v3106_v27 = vld [vmem:[#allocation3 + $0x18] sm:$0xff] }
 0x629   : > { %3098 = vst.msk [vmem:[#allocation3 + $0x28] sm:$0xff] %vm3092_vm2, %v6447_v2  ;;  %v3112_v61 = vpack.c.bf16 %v3106_v27, %v3105_v16 }
 0x62b   : > { %3196 = vmatmul.bf16.gmra.mxu2 %v3112_v61 }
 0x62f   : > { %v2660_v35 = vpop.permute.xlu0 %2659  ;;  %v2658_v63 = vpop.permute.xlu2 %2657 }
 0x630   : > { %2682 = vst.msk [vmem:[#allocation3 + $0x40] sm:$0xff] %vm2673_vm0, %v2660_v35  ;;  %v3108_v62 = vld [vmem:[#allocation3 + $0x28] sm:$0xff] }
 0x631   : > { %2681 = vst.msk [vmem:[#allocation3 + $0x38] sm:$0xff] %vm2673_vm0, %v2658_v63 }
 0x632   : > { %3100 = vst.msk [vmem:[#allocation3 + $0x38] sm:$0xff] %vm3092_vm2, %v3077_v43 }
 0x633   : > { %v2652_v44 = vpop.permute.xlu1 %2651 }
 0x634   : > { %2678 = vst.msk [vmem:[#allocation3 + $0x20] sm:$0xff] %vm2673_vm0, %v2652_v44 }
 0x635   : > { %3097 = vst.msk [vmem:[#allocation3 + $0x20] sm:$0xff] %vm3092_vm2, %v3071_v22 }
 0x637   : > { %v3079_v57 = vpop.permute.xlu2 %3078  ;;  %v3081_v46 = vpop.permute.xlu0 %3080 }
 0x638   : > { %3101 = vst.msk [vmem:[#allocation3 + $0x40] sm:$0xff] %vm3092_vm2, %v3079_v57 }
 0x639   : > { %v3110_v25 = vld [vmem:[#allocation3 + $0x38] sm:$0xff] }
 0x63b   : > { %v2656_v3 = vpop.permute.xlu1 %2655 }
 0x63c   : > { %2680 = vst.msk [vmem:[#allocation3 + $0x30] sm:$0xff] %vm2673_vm0, %v2656_v3  ;;  %v3107_v11 = vld [vmem:[#allocation3 + $0x20] sm:$0xff] }
 0x63d   : > { %3099 = vst.msk [vmem:[#allocation3 + $0x30] sm:$0xff] %vm3092_vm2, %v3075_v6  ;;  %v3113_v14 = vpack.c.bf16 %v3108_v62, %v3107_v11 }
 0x63f   : > { %3201 = vmatmul.bf16.gmra.mxu2 %v3113_v14  ;;  %v3230_v51 = vld [vmem:[#allocation3 + $0x40] sm:$0xff] }
 0x640   : > { %v3232_v20 = vmul.f32 %v4071_v37, %v3230_v51 }
 0x643   : > { %v2662_v39 = vpop.permute.xlu1 %2661 }
 0x644   : > { %2683 = vst.msk [vmem:[#allocation3 + $0x48] sm:$0xff] %vm2673_vm0, %v2662_v39  ;;  %v3109_v12 = vld [vmem:[#allocation3 + $0x30] sm:$0xff] }
 0x645   : > { %3102 = vst.msk [vmem:[#allocation3 + $0x48] sm:$0xff] %vm3092_vm2, %v3081_v46  ;;  %v3114_v33 = vpack.c.bf16 %v3110_v25, %v3109_v12 }
 0x647   : > { %3206 = vmatmul.bf16.vlgmr.msra.gmra.mxu3 %v3114_v33 }
 0x64c   : > { %v3231_v40 = vld [vmem:[#allocation3 + $0x48] sm:$0xff] }
 0x64d   : > { %v3233_v9 = vmul.f32 %v4072_v21, %v3231_v40 }
 0x64f   : > { %v3234_v53 = vpack.c.bf16 %v3233_v9, %v3232_v20 }
 0x651   : > { %3311 = vmatmul.bf16.vlgmr.msra.gmra.mxu1 %v3234_v53 }
 0x68e   : > { %v3192_v2 = vpop.f32.mrf.mxu2 }
 0x68f   : > { %v3193_v8 = vadd.f32 %v4392_v23, %v3192_v2 }
 0x691   : > { %3212 = vst [vmem:[%s6489_s16] sm:$0xff] %v3193_v8 }
 0x696   : > { %v3194_v24 = vpop.f32.mrf.mxu2 }
 0x697   : > { %v3195_v19 = vadd.f32 %v4392_v23, %v3194_v24 }
 0x699   : > { %3213 = vst [vmem:[%s6489_s16 + $0x8] sm:$0xff] %v3195_v19 }
 0x6ae   : > { %v3197_v29 = vpop.f32.mrf.mxu2 }
 0x6af   : > { %v3198_v36 = vadd.f32 %v4392_v23, %v3197_v29 }
 0x6b1   : > { %3214 = vst [vmem:[%s6489_s16 + $0x10] sm:$0xff] %v3198_v36 }
 0x6b6   : > { %v3199_v1 = vpop.f32.mrf.mxu2 }
 0x6b7   : > { %v3200_v47 = vadd.f32 %v4392_v23, %v3199_v1 }
 0x6b9   : > { %3215 = vst [vmem:[%s6489_s16 + $0x18] sm:$0xff] %v3200_v47 }
 0x6c2   : > { %v3202_v52 = vpop.f32.mrf.mxu2 }
 0x6c3   : > { %v3203_v0 = vadd.f32 %v4392_v23, %v3202_v52 }
 0x6c5   : > { %3216 = vst [vmem:[%s6489_s16 + $0x20] sm:$0xff] %v3203_v0 }
 0x6ca   : > { %v3204_v32 = vpop.f32.mrf.mxu2  ;;  %v3207_v4 = vpop.f32.mrf.mxu3 }
 0x6cb   : > { %v3205_v56 = vadd.f32 %v4392_v23, %v3204_v32  ;;  %v3208_v42 = vadd.f32 %v4392_v23, %v3207_v4 }
 0x6cd   : > { %3217 = vst [vmem:[%s6489_s16 + $0x28] sm:$0xff] %v3205_v56 }
 0x6ce   : > { %3218 = vst [vmem:[%s6489_s16 + $0x30] sm:$0xff] %v3208_v42  ;;  %v3312_v48 = vpop.f32.mrf.mxu1 }
 0x6cf   : > { %v3313_v26 = vadd.f32 %v4393_v5, %v3312_v48 }
 0x6d1   : > { %3317 = vst [vmem:[%s6508_s17] sm:$0xff] %v3313_v26 }
 0x6d2   : > { %v3209_v50 = vpop.f32.mrf.mxu3 }
 0x6d3   : > { %v3210_v30 = vadd.f32 %v4392_v23, %v3209_v50 }
 0x6d5   : > { %3219 = vst [vmem:[%s6489_s16 + $0x38] sm:$0xff] %v3210_v30 }
 0x6d6   : > { %v3314_v38 = vpop.f32.mrf.mxu1 }
 0x6d7   : > { %4903 = shalt.err (!%p4900_p8)
}
 0x6d8   : > { %s5017_s16 = smov 128   ;;  %s5018_s1 = smov 8   ;;  %v3315_v49 = vadd.f32 %v4393_v5, %v3314_v38 }
 0x6d9   : > { %4283 = dma.vmem_to_hbm [thread:$0]  (%p5192_p0), %s6504_s24, 1024, %s3340_s26, %s3320_s10, %s5017_s16, %s5017_s16, %s5018_s1  }
 0x6da   : > { %3318 = vst [vmem:[%s6508_s17 + $0x8] sm:$0xff] %v3315_v49  ;;  %s3325_s19 = scalar_lea.sflag [#allocation23], %s5249_s11  ;;  %s4918_s12 = sshra.s32 %s3357_s18, 4  ;;  %s4919_s12 = int_to_ptr.hbm [resolvable:$true] %s4918_s12 }
 0x6db   : > { %s4920_s27 = scalar_lea.hbm %s4919_s12, 16  ;;  %s4924_s20 = scalar_lea.hbm %s6624_s22, 32 }
 0x6dc   : > { %p4921_p10 = scmp.ne.s32.totalorder %s4919_s12, %s4920_s27  ;;  %p4925_p2 = scmp.lt.s32.totalorder %s4919_s12, %s6624_s22 }
 0x6dd   : > { %p4926_p4 = scmp.lt.s32.totalorder %s4924_s20, %s4920_s27 }
 0x6de   : > { %p4922_p11 = pnand %p4921_p10, %p5192_p0 }
 0x6df   : > { %p4927_p1 = por %p4926_p4, %p4925_p2 }
 0x6e0   : > { %p4923_p12 = pneg %p4922_p11 }
 0x6e2   : > { %p4928_p3 = pnand %p4927_p1, %p4923_p12 }
 0x6e4   : > { %4931 = shalt.err (!%p4928_p3)
}
 0x6e5   : > { %4284 = dma.vmem_to_hbm [thread:$0]  (%p5192_p0), %s6515_s25, 256, %s3357_s18, %s3325_s19, %s5017_s16, %s5017_s16, %s5018_s1  }
 0x6e6 PF: > { %s3371_s11 = sand.u32 1, %s4984_s29   ;;  %p6625_p13 = scmp.ge.s32.totalorder %s4996_s14, 2 }
 0x6e7   : > { %s3372_s24 = scalar_lea.sflag [#allocation8], %s3371_s11 }
 0x6e8   : > { %p4317_p7 = pnand %p6625_p13, %p5200_p6 }
 0x6ea   : > { %p4318_p9 = pneg %p4317_p7 }
 0x6ec   : > { %4975 = dma.done.wait (%p4318_p9), %s3372_s24, 1024  }
 0x6ed   : > { %4977 = vsyncadd (%p4318_p9), %s3372_s24, 4294966272  ;;  %s3382_s26 = scalar_lea.sflag [#allocation23], %s3371_s11 }
 0x6ee   : > { %4979 = dma.done.wait (%p4318_p9), %s3382_s26, 256  }
 0x6ef   : > { %4981 = vsyncadd (%p4318_p9), %s3382_s26, 4294967040  ;;  %s6626_s13 = sld [smem:[#allocation33_spill]]  ;;  %p44_p0 = scmp.ge.s32.totalorder %s5168_s3, 4  }
 0x6f0   : > { %s6627_s30 = sld [smem:[#allocation34_spill]]  ;;  %s6628_s29 = smov %s4988_s0 }
 0x6f1   : > { %s6630_s14 = smov %s5168_s3  ;;  %46 = sbr.rel (!%p44_p0) target bundleno = 27 (0x1b), region = 167 }
 0x6f5   : > { %s6629_s0 = smov %s6626_s13 }
 0x6f6   :  { %3388 = vsyncpa [#allocation7], 1 }
 0x6f7   :  { %3390 = vsyncpa [#allocation7 + $0x1], 1 }
 0x6f8   :  { %3391 = vsyncpa [#allocation10], 1 }
 0x6f9   :  { %3393 = vsyncpa [#allocation10 + $0x1], 1 }
 0x6fa   :  { %3394 = vsyncpa [#allocation13], 1 }
 0x6fb   :  { %3395 = vsyncpa [#allocation16], 1 }
 0x6fc   :  { %3396 = vsyncpa [#allocation19], 1 }
 0x6fd   :  { %3397 = vsyncpa [#allocation8], 1 }
 0x6fe   :  { %3399 = vsyncpa [#allocation8 + $0x1], 1 }
 0x6ff   :  { %3400 = vsyncpa [#allocation23], 1 }
 0x700   :  { %3402 = vsyncpa [#allocation23 + $0x1], 1 }

</bundles_post_ra>
